<compile_context>
chip_gen: v7x
topology: tpu7x:2x2x1
jax: 0.10.0
libtpu: 0.0.40
codegen_flags: <defaults>
</compile_context>

<pallas_src>
import functools

import numpy as np

import jax
import jax.numpy as jnp
from jax.experimental import pallas as pl
from jax.experimental.pallas import tpu as pltpu


def _round_up(x, m):
    return ((x + m - 1) // m) * m


def _softplus(x):
    # Numerically stable softplus built from ops guaranteed to lower on TPU
    # (avoids relying on a log1p lowering): max(x,0) + log(1 + exp(-|x|)).
    return jnp.maximum(x, 0.0) + jnp.log(1.0 + jnp.exp(-jnp.abs(x)))


def _exclusive_cumprod_lanes(t):
    """Exclusive cumulative product of t (RT, n) along axis 1 (lanes).

    Hillis-Steele shift-and-multiply scan: ceil(log2(n)) stages of
    (slice, concat-with-ones, multiply).  Equivalent (up to fp reassociation)
    to torch.cumprod(cat([ones, t], -1), -1)[..., :-1].  All slices/concats
    are static; compute cost is irrelevant on this HBM-bound kernel.
    """
    rt, n = t.shape
    y = jnp.concatenate([jnp.ones((rt, 1), jnp.float32), t[:, : n - 1]], axis=1)
    off = 1
    while off < n:
        shifted = jnp.concatenate(
            [jnp.ones((rt, off), jnp.float32), y[:, : n - off]], axis=1)
        y = y * shifted
        off *= 2
    return y


def _ray_march_kernel(clamp_mode, bg_colors, col_ref, den_ref, dep_ref,
                      rgb_ref, cdep_ref, w_ref):
    """One (batch, ray-tile) block: rays on sublanes, depth samples on lanes."""
    d = dep_ref[0].astype(jnp.float32)        # (RT, S)
    dens = den_ref[0].astype(jnp.float32)     # (RT, S)

    d_lo = d[:, :-1]
    d_hi = d[:, 1:]
    deltas = d_hi - d_lo                      # (RT, S-1)
    depths_mid = (d_lo + d_hi) * 0.5          # (RT, S-1)
    densities_mid = (dens[:, :-1] + dens[:, 1:]) * 0.5

    if clamp_mode == "softplus":
        densities_mid = _softplus(densities_mid - 1.0)
    else:  # "relu" (validated in the wrapper)
        densities_mid = jnp.maximum(densities_mid, 0.0)

    density_delta = densities_mid * deltas
    alpha = 1.0 - jnp.exp(-density_delta)     # (RT, S-1)
    trans = 1.0 - alpha + 1e-10

    # == torch.cumprod(cat([1, trans], -1), -1)[..., :-1]
    transmittance = _exclusive_cumprod_lanes(trans)
    weights = alpha * transmittance           # (RT, S-1)
    w_ref[0] = weights                        # final layout: rays-major

    weight_total = jnp.sum(weights, axis=1, keepdims=True)     # (RT, 1)

    # Raw composite depth; nan->inf and the global clamp happen in the wrapper
    # on the tiny (B, R, 1) output (clamp bounds are a global reduction).
    cdep_ref[0] = jnp.sum(weights * depths_mid, axis=1,
                          keepdims=True) / weight_total

    # rgb: per-channel accumulation (no (C, S-1, RT) temporary); background
    # blend and the *2-1 affine fused into the epilogue.
    one_minus_wt = 1.0 - weight_total
    num_c = rgb_ref.shape[2]
    rows = []
    for c in range(num_c):                    # static channel loop (C ~ 3)
        col_c = col_ref[0, c].astype(jnp.float32)        # (RT, S)
        col_mid = (col_c[:, :-1] + col_c[:, 1:]) * 0.5   # (RT, S-1)
        rgb_c = jnp.sum(weights * col_mid, axis=1, keepdims=True)  # (RT, 1)
        if bg_colors is not None:
            rgb_c = rgb_c + one_minus_wt * bg_colors[c]
        rows.append(rgb_c * 2.0 - 1.0)
    rgb_ref[0] = jnp.concatenate(rows, axis=1)           # (RT, C)


def mip_ray_marcher2(colors, densities, depths, rendering_options, *,
                     ray_tile=2048):
    """colors [B,R,S,C], densities [B,R,S,1], depths [B,R,S,1].

    Returns (composite_rgb [B,R,C], composite_depth [B,R,1],
             weights [B,R,S-1,1]) matching PyTorch MipRayMarcher2.forward.
    """
    clamp_mode = rendering_options["clamp_mode"]
    if clamp_mode not in ("softplus", "relu"):
        raise ValueError(
            "MipRayMarcher only supports clamp_mode in {'softplus','relu'}")
    B, R, S, C = colors.shape
    if S < 2:
        raise ValueError("need at least 2 depth samples per ray")

    # Only remaining layout pass: channel-major colors so each channel is a
    # contiguous (RT, S) tile.  densities/depths are consumed untransposed.
    colors_t = jnp.transpose(colors, (0, 3, 1, 2))   # (B, C, R, S), dtype kept
    dens_r = densities[..., 0]                       # (B, R, S), free squeeze
    dep_r = depths[..., 0]                           # (B, R, S)

    # Ray tiling: rays sit on sublanes now, so RT only needs to be a multiple
    # of 8.  Padding rays are zeros; their outputs are sliced away below.
    rt = _round_up(min(ray_tile, _round_up(R, 8)), 8)
    r_pad = _round_up(R, rt)
    if r_pad != R:
        pad = r_pad - R
        colors_t = jnp.pad(colors_t, ((0, 0), (0, 0), (0, pad), (0, 0)))
        dens_r = jnp.pad(dens_r, ((0, 0), (0, pad), (0, 0)))
        dep_r = jnp.pad(dep_r, ((0, 0), (0, pad), (0, 0)))

    bg = rendering_options.get("bg_color", False)
    if bg:
        bg_colors = tuple(
            float(v) for v in np.broadcast_to(np.asarray(bg, np.float32), (C,)))
    else:
        # NOTE: bg_color == 0.0 skips the blend, matching the PyTorch module's
        # truthiness check exactly.
        bg_colors = None

    kernel = functools.partial(_ray_march_kernel, clamp_mode, bg_colors)

    out_shapes = (
        jax.ShapeDtypeStruct((B, r_pad, C), jnp.float32),       # rgb
        jax.ShapeDtypeStruct((B, r_pad, 1), jnp.float32),       # raw depth
        jax.ShapeDtypeStruct((B, r_pad, S - 1), jnp.float32),   # weights
    )

    rgb, cdep, w = pl.pallas_call(
        kernel,
        out_shape=out_shapes,
        grid=(B, r_pad // rt),
        in_specs=[
            pl.BlockSpec((1, C, rt, S), lambda b, r: (b, 0, r, 0)),
            pl.BlockSpec((1, rt, S), lambda b, r: (b, r, 0)),
            pl.BlockSpec((1, rt, S), lambda b, r: (b, r, 0)),
        ],
        out_specs=(
            pl.BlockSpec((1, rt, C), lambda b, r: (b, r, 0)),
            pl.BlockSpec((1, rt, 1), lambda b, r: (b, r, 0)),
            pl.BlockSpec((1, rt, S - 1), lambda b, r: (b, r, 0)),
        ),
        compiler_params=pltpu.CompilerParams(
            dimension_semantics=("parallel", "parallel"),
            vmem_limit_bytes=48 * 1024 * 1024),
    )(colors_t, dens_r, dep_r)

    composite_rgb = rgb[:, :R, :]                    # (B, R, C)
    composite_depth = cdep[:, :R, :]                 # (B, R, 1)
    weights = w[:, :R, :][..., None]                 # (B, R, S-1, 1)

    # Tiny epilogue on (B,R,1): nan->inf then clamp to global depth bounds
    # (one fused min/max reduction over `depths`).
    dmin = jnp.min(depths).astype(jnp.float32)
    dmax = jnp.max(depths).astype(jnp.float32)
    composite_depth = jnp.where(jnp.isnan(composite_depth), jnp.inf,
                                composite_depth)
    composite_depth = jnp.clip(composite_depth, dmin, dmax)
    return composite_rgb, composite_depth, weights


def _reference(colors, densities, depths, rendering_options):
    """Pure-JAX transcription of the PyTorch module for validation."""
    deltas = depths[:, :, 1:] - depths[:, :, :-1]
    colors_mid = (colors[:, :, :-1] + colors[:, :, 1:]) / 2
    densities_mid = (densities[:, :, :-1] + densities[:, :, 1:]) / 2
    depths_mid = (depths[:, :, :-1] + depths[:, :, 1:]) / 2
    if rendering_options["clamp_mode"] == "softplus":
        densities_mid = jax.nn.softplus(densities_mid - 1)
    else:
        densities_mid = jnp.maximum(densities_mid, 0)
    density_delta = densities_mid * deltas
    alpha = 1 - jnp.exp(-density_delta)
    alpha_shifted = jnp.concatenate(
        [jnp.ones_like(alpha[:, :, :1]), 1 - alpha + 1e-10], axis=-2)
    weights = alpha * jnp.cumprod(alpha_shifted, axis=-2)[:, :, :-1]
    composite_rgb = jnp.sum(weights * colors_mid, axis=-2)
    weight_total = weights.sum(2)
    composite_depth = jnp.sum(weights * depths_mid, axis=-2) / weight_total
    composite_depth = jnp.where(jnp.isnan(composite_depth), jnp.inf,
                                composite_depth)
    composite_depth = jnp.clip(composite_depth, jnp.min(depths),
                               jnp.max(depths))
    bg = rendering_options.get("bg_color", False)
    if bg:
        bg_color = jnp.broadcast_to(jnp.asarray(bg, jnp.float32),
                                    composite_rgb.shape)
        composite_rgb = composite_rgb + (1 - weight_total) * bg_color
    composite_rgb = composite_rgb * 2 - 1
    return composite_rgb, composite_depth, weights


if __name__ == "__main__":
    key = jax.random.PRNGKey(0)
    k_c, k_d, k_z = jax.random.split(key, 3)

    # batch, rays, samples-per-ray, rgb channels; R=320 with ray_tile=256
    # exercises both a multi-tile ray grid (2x2) and ray padding (320 -> 512).
    B, R, S, C = 2, 320, 8, 3
    colors = jax.random.uniform(k_c, (B, R, S, C), dtype=jnp.float32)
    densities = jax.random.normal(k_d, (B, R, S, 1), dtype=jnp.float32)
    depths = jnp.sort(
        jax.random.uniform(k_z, (B, R, S, 1), dtype=jnp.float32,
                           minval=2.0, maxval=3.0), axis=2)

    for opts in ({"clamp_mode": "softplus"},
                 {"clamp_mode": "relu", "bg_color": 1.0}):
        rgb, depth, weights = mip_ray_marcher2(colors, densities, depths, opts,
                                               ray_tile=256)
        jax.block_until_ready((rgb, depth, weights))

        rgb_ref, depth_ref, w_ref = _reference(colors, densities, depths, opts)

        assert rgb.shape == (B, R, C) and depth.shape == (B, R, 1)
        assert weights.shape == (B, R, S - 1, 1)
        assert jnp.allclose(rgb, rgb_ref, rtol=1e-4, atol=1e-5)
        assert jnp.allclose(depth, depth_ref, rtol=1e-4, atol=1e-5)
        assert jnp.allclose(weights, w_ref, rtol=1e-4, atol=1e-5)

    print("KERNEL_OK")
</pallas_src>

<mosaic_0001>
module attributes {stable_mosaic.version = 11 : i64} {
  func.func @_ray_march_kernel(%arg0: i32, %arg1: i32, %arg2: memref<1x3x256x8xf32, #tpu.memory_space<vmem>>, %arg3: memref<1x256x8xf32, #tpu.memory_space<vmem>>, %arg4: memref<1x256x8xf32, #tpu.memory_space<vmem>>, %arg5: memref<1x256x3xf32, #tpu.memory_space<vmem>>, %arg6: memref<1x256x1xf32, #tpu.memory_space<vmem>>, %arg7: memref<1x256x7xf32, #tpu.memory_space<vmem>>) attributes {dimension_semantics = [#tpu.dimension_semantics<parallel>, #tpu.dimension_semantics<parallel>], iteration_bounds = array<i64: 2, 2>, scalar_prefetch = 0 : i64, scratch_operands = 0 : i64, tpu.core_type = #tpu.core_type<tc>, window_params = [{transform_indices = @transform_0, window_bounds = array<i64: 1, 3, 256, 8>}, {transform_indices = @transform_1, window_bounds = array<i64: 1, 256, 8>}, {transform_indices = @transform_2, window_bounds = array<i64: 1, 256, 8>}, {transform_indices = @transform_3, window_bounds = array<i64: 1, 256, 3>}, {transform_indices = @transform_4, window_bounds = array<i64: 1, 256, 1>}, {transform_indices = @transform_5, window_bounds = array<i64: 1, 256, 7>}]} {
    %c0 = arith.constant 0 : index
    %c0_0 = arith.constant 0 : index
    %c0_1 = arith.constant 0 : index
    %0 = vector.load %arg4[%c0, %c0_0, %c0_1] : memref<1x256x8xf32, #tpu.memory_space<vmem>>, vector<1x256x8xf32>
    %1 = vector.shape_cast %0 : vector<1x256x8xf32> to vector<256x8xf32>
    %c0_2 = arith.constant 0 : index
    %c0_3 = arith.constant 0 : index
    %c0_4 = arith.constant 0 : index
    %2 = vector.load %arg3[%c0_2, %c0_3, %c0_4] : memref<1x256x8xf32, #tpu.memory_space<vmem>>, vector<1x256x8xf32>
    %3 = vector.shape_cast %2 : vector<1x256x8xf32> to vector<256x8xf32>
    %4 = vector.extract_strided_slice %1 {offsets = [0, 0], sizes = [256, 7], strides = [1, 1]} : vector<256x8xf32> to vector<256x7xf32>
    %5 = vector.extract_strided_slice %1 {offsets = [0, 1], sizes = [256, 7], strides = [1, 1]} : vector<256x8xf32> to vector<256x7xf32>
    %6 = arith.subf %5, %4 : vector<256x7xf32>
    %7 = arith.addf %4, %5 : vector<256x7xf32>
    %cst = arith.constant 5.000000e-01 : f32
    %8 = vector.broadcast %cst : f32 to vector<256x7xf32>
    %9 = arith.mulf %7, %8 : vector<256x7xf32>
    %10 = vector.extract_strided_slice %3 {offsets = [0, 0], sizes = [256, 7], strides = [1, 1]} : vector<256x8xf32> to vector<256x7xf32>
    %11 = vector.extract_strided_slice %3 {offsets = [0, 1], sizes = [256, 7], strides = [1, 1]} : vector<256x8xf32> to vector<256x7xf32>
    %12 = arith.addf %10, %11 : vector<256x7xf32>
    %cst_5 = arith.constant 5.000000e-01 : f32
    %13 = vector.broadcast %cst_5 : f32 to vector<256x7xf32>
    %14 = arith.mulf %12, %13 : vector<256x7xf32>
    %cst_6 = arith.constant 1.000000e+00 : f32
    %15 = vector.broadcast %cst_6 : f32 to vector<256x7xf32>
    %16 = arith.subf %14, %15 : vector<256x7xf32>
    %cst_7 = arith.constant 0.000000e+00 : f32
    %17 = vector.broadcast %cst_7 : f32 to vector<256x7xf32>
    %18 = arith.maximumf %16, %17 : vector<256x7xf32>
    %19 = math.absf %16 : vector<256x7xf32>
    %cst_8 = arith.constant 0.000000e+00 : f32
    %20 = vector.broadcast %cst_8 : f32 to vector<256x7xf32>
    %21 = arith.subf %20, %19 : vector<256x7xf32>
    %22 = math.exp %21 : vector<256x7xf32>
    %cst_9 = arith.constant 1.000000e+00 : f32
    %23 = vector.broadcast %cst_9 : f32 to vector<256x7xf32>
    %24 = arith.addf %23, %22 : vector<256x7xf32>
    %25 = math.log %24 : vector<256x7xf32>
    %26 = arith.addf %18, %25 : vector<256x7xf32>
    %27 = arith.mulf %26, %6 : vector<256x7xf32>
    %cst_10 = arith.constant 0.000000e+00 : f32
    %28 = vector.broadcast %cst_10 : f32 to vector<256x7xf32>
    %29 = arith.subf %28, %27 : vector<256x7xf32>
    %30 = math.exp %29 : vector<256x7xf32>
    %cst_11 = arith.constant 1.000000e+00 : f32
    %31 = vector.broadcast %cst_11 : f32 to vector<256x7xf32>
    %32 = arith.subf %31, %30 : vector<256x7xf32>
    %cst_12 = arith.constant 1.000000e+00 : f32
    %33 = vector.broadcast %cst_12 : f32 to vector<256x7xf32>
    %34 = arith.subf %33, %32 : vector<256x7xf32>
    %cst_13 = arith.constant 1.000000e-10 : f32
    %35 = vector.broadcast %cst_13 : f32 to vector<256x7xf32>
    %36 = arith.addf %34, %35 : vector<256x7xf32>
    %cst_14 = arith.constant 1.000000e+00 : f32
    %37 = vector.broadcast %cst_14 : f32 to vector<256x1xf32>
    %38 = vector.extract_strided_slice %36 {offsets = [0, 0], sizes = [256, 6], strides = [1, 1]} : vector<256x7xf32> to vector<256x6xf32>
    %39 = tpu.concatenate %37, %38 in 1 : vector<256x1xf32>, vector<256x6xf32> -> vector<256x7xf32>
    %cst_15 = arith.constant 1.000000e+00 : f32
    %40 = vector.broadcast %cst_15 : f32 to vector<256x1xf32>
    %41 = vector.extract_strided_slice %39 {offsets = [0, 0], sizes = [256, 6], strides = [1, 1]} : vector<256x7xf32> to vector<256x6xf32>
    %42 = tpu.concatenate %40, %41 in 1 : vector<256x1xf32>, vector<256x6xf32> -> vector<256x7xf32>
    %43 = arith.mulf %39, %42 : vector<256x7xf32>
    %cst_16 = arith.constant 1.000000e+00 : f32
    %44 = vector.broadcast %cst_16 : f32 to vector<256x2xf32>
    %45 = vector.extract_strided_slice %43 {offsets = [0, 0], sizes = [256, 5], strides = [1, 1]} : vector<256x7xf32> to vector<256x5xf32>
    %46 = tpu.concatenate %44, %45 in 1 : vector<256x2xf32>, vector<256x5xf32> -> vector<256x7xf32>
    %47 = arith.mulf %43, %46 : vector<256x7xf32>
    %cst_17 = arith.constant 1.000000e+00 : f32
    %48 = vector.broadcast %cst_17 : f32 to vector<256x4xf32>
    %49 = vector.extract_strided_slice %47 {offsets = [0, 0], sizes = [256, 3], strides = [1, 1]} : vector<256x7xf32> to vector<256x3xf32>
    %50 = tpu.concatenate %48, %49 in 1 : vector<256x4xf32>, vector<256x3xf32> -> vector<256x7xf32>
    %51 = arith.mulf %47, %50 : vector<256x7xf32>
    %52 = arith.mulf %32, %51 : vector<256x7xf32>
    %c0_18 = arith.constant 0 : index
    %c0_19 = arith.constant 0 : index
    %c0_20 = arith.constant 0 : index
    %53 = vector.load %arg7[%c0_18, %c0_19, %c0_20] : memref<1x256x7xf32, #tpu.memory_space<vmem>>, vector<1x256x7xf32>
    %54 = vector.shape_cast %53 : vector<1x256x7xf32> to vector<256x7xf32>
    %55 = vector.shape_cast %52 : vector<256x7xf32> to vector<1x256x7xf32>
    tpu.vector_store %arg7[%c0_18, %c0_19, %c0_20], %55 {strides = array<i32>} : memref<1x256x7xf32, #tpu.memory_space<vmem>>, vector<1x256x7xf32>,
    %cst_21 = arith.constant dense<0.000000e+00> : vector<256xf32>
    %56 = vector.multi_reduction <add>, %52, %cst_21 [1] : vector<256x7xf32> to vector<256xf32>
    %57 = vector.shape_cast %56 : vector<256xf32> to vector<256x1xf32>
    %58 = arith.mulf %52, %9 : vector<256x7xf32>
    %cst_22 = arith.constant dense<0.000000e+00> : vector<256xf32>
    %59 = vector.multi_reduction <add>, %58, %cst_22 [1] : vector<256x7xf32> to vector<256xf32>
    %60 = vector.shape_cast %59 : vector<256xf32> to vector<256x1xf32>
    %61 = arith.divf %60, %57 : vector<256x1xf32>
    %c0_23 = arith.constant 0 : index
    %c0_24 = arith.constant 0 : index
    %c0_25 = arith.constant 0 : index
    %62 = vector.load %arg6[%c0_23, %c0_24, %c0_25] : memref<1x256x1xf32, #tpu.memory_space<vmem>>, vector<1x256x1xf32>
    %63 = vector.shape_cast %62 : vector<1x256x1xf32> to vector<256x1xf32>
    %64 = vector.shape_cast %61 : vector<256x1xf32> to vector<1x256x1xf32>
    tpu.vector_store %arg6[%c0_23, %c0_24, %c0_25], %64 {strides = array<i32>} : memref<1x256x1xf32, #tpu.memory_space<vmem>>, vector<1x256x1xf32>,
    %c0_26 = arith.constant 0 : index
    %c0_27 = arith.constant 0 : index
    %c0_28 = arith.constant 0 : index
    %c0_29 = arith.constant 0 : index
    %65 = vector.load %arg2[%c0_26, %c0_27, %c0_28, %c0_29] : memref<1x3x256x8xf32, #tpu.memory_space<vmem>>, vector<1x1x256x8xf32>
    %66 = vector.shape_cast %65 : vector<1x1x256x8xf32> to vector<256x8xf32>
    %67 = vector.extract_strided_slice %66 {offsets = [0, 0], sizes = [256, 7], strides = [1, 1]} : vector<256x8xf32> to vector<256x7xf32>
    %68 = vector.extract_strided_slice %66 {offsets = [0, 1], sizes = [256, 7], strides = [1, 1]} : vector<256x8xf32> to vector<256x7xf32>
    %69 = arith.addf %67, %68 : vector<256x7xf32>
    %cst_30 = arith.constant 5.000000e-01 : f32
    %70 = vector.broadcast %cst_30 : f32 to vector<256x7xf32>
    %71 = arith.mulf %69, %70 : vector<256x7xf32>
    %72 = arith.mulf %52, %71 : vector<256x7xf32>
    %cst_31 = arith.constant dense<0.000000e+00> : vector<256xf32>
    %73 = vector.multi_reduction <add>, %72, %cst_31 [1] : vector<256x7xf32> to vector<256xf32>
    %74 = vector.shape_cast %73 : vector<256xf32> to vector<256x1xf32>
    %cst_32 = arith.constant 2.000000e+00 : f32
    %75 = vector.broadcast %cst_32 : f32 to vector<256x1xf32>
    %76 = arith.mulf %74, %75 : vector<256x1xf32>
    %cst_33 = arith.constant 1.000000e+00 : f32
    %77 = vector.broadcast %cst_33 : f32 to vector<256x1xf32>
    %78 = arith.subf %76, %77 : vector<256x1xf32>
    %c0_34 = arith.constant 0 : index
    %c1 = arith.constant 1 : index
    %c0_35 = arith.constant 0 : index
    %c0_36 = arith.constant 0 : index
    %79 = vector.load %arg2[%c0_34, %c1, %c0_35, %c0_36] : memref<1x3x256x8xf32, #tpu.memory_space<vmem>>, vector<1x1x256x8xf32>
    %80 = vector.shape_cast %79 : vector<1x1x256x8xf32> to vector<256x8xf32>
    %81 = vector.extract_strided_slice %80 {offsets = [0, 0], sizes = [256, 7], strides = [1, 1]} : vector<256x8xf32> to vector<256x7xf32>
    %82 = vector.extract_strided_slice %80 {offsets = [0, 1], sizes = [256, 7], strides = [1, 1]} : vector<256x8xf32> to vector<256x7xf32>
    %83 = arith.addf %81, %82 : vector<256x7xf32>
    %cst_37 = arith.constant 5.000000e-01 : f32
    %84 = vector.broadcast %cst_37 : f32 to vector<256x7xf32>
    %85 = arith.mulf %83, %84 : vector<256x7xf32>
    %86 = arith.mulf %52, %85 : vector<256x7xf32>
    %cst_38 = arith.constant dense<0.000000e+00> : vector<256xf32>
    %87 = vector.multi_reduction <add>, %86, %cst_38 [1] : vector<256x7xf32> to vector<256xf32>
    %88 = vector.shape_cast %87 : vector<256xf32> to vector<256x1xf32>
    %cst_39 = arith.constant 2.000000e+00 : f32
    %89 = vector.broadcast %cst_39 : f32 to vector<256x1xf32>
    %90 = arith.mulf %88, %89 : vector<256x1xf32>
    %cst_40 = arith.constant 1.000000e+00 : f32
    %91 = vector.broadcast %cst_40 : f32 to vector<256x1xf32>
    %92 = arith.subf %90, %91 : vector<256x1xf32>
    %c0_41 = arith.constant 0 : index
    %c2 = arith.constant 2 : index
    %c0_42 = arith.constant 0 : index
    %c0_43 = arith.constant 0 : index
    %93 = vector.load %arg2[%c0_41, %c2, %c0_42, %c0_43] : memref<1x3x256x8xf32, #tpu.memory_space<vmem>>, vector<1x1x256x8xf32>
    %94 = vector.shape_cast %93 : vector<1x1x256x8xf32> to vector<256x8xf32>
    %95 = vector.extract_strided_slice %94 {offsets = [0, 0], sizes = [256, 7], strides = [1, 1]} : vector<256x8xf32> to vector<256x7xf32>
    %96 = vector.extract_strided_slice %94 {offsets = [0, 1], sizes = [256, 7], strides = [1, 1]} : vector<256x8xf32> to vector<256x7xf32>
    %97 = arith.addf %95, %96 : vector<256x7xf32>
    %cst_44 = arith.constant 5.000000e-01 : f32
    %98 = vector.broadcast %cst_44 : f32 to vector<256x7xf32>
    %99 = arith.mulf %97, %98 : vector<256x7xf32>
    %100 = arith.mulf %52, %99 : vector<256x7xf32>
    %cst_45 = arith.constant dense<0.000000e+00> : vector<256xf32>
    %101 = vector.multi_reduction <add>, %100, %cst_45 [1] : vector<256x7xf32> to vector<256xf32>
    %102 = vector.shape_cast %101 : vector<256xf32> to vector<256x1xf32>
    %cst_46 = arith.constant 2.000000e+00 : f32
    %103 = vector.broadcast %cst_46 : f32 to vector<256x1xf32>
    %104 = arith.mulf %102, %103 : vector<256x1xf32>
    %cst_47 = arith.constant 1.000000e+00 : f32
    %105 = vector.broadcast %cst_47 : f32 to vector<256x1xf32>
    %106 = arith.subf %104, %105 : vector<256x1xf32>
    %107 = tpu.concatenate %78, %92, %106 in 1 : vector<256x1xf32>, vector<256x1xf32>, vector<256x1xf32> -> vector<256x3xf32>
    %c0_48 = arith.constant 0 : index
    %c0_49 = arith.constant 0 : index
    %c0_50 = arith.constant 0 : index
    %108 = vector.load %arg5[%c0_48, %c0_49, %c0_50] : memref<1x256x3xf32, #tpu.memory_space<vmem>>, vector<1x256x3xf32>
    %109 = vector.shape_cast %108 : vector<1x256x3xf32> to vector<256x3xf32>
    %110 = vector.shape_cast %107 : vector<256x3xf32> to vector<1x256x3xf32>
    tpu.vector_store %arg5[%c0_48, %c0_49, %c0_50], %110 {strides = array<i32>} : memref<1x256x3xf32, #tpu.memory_space<vmem>>, vector<1x256x3xf32>,
    return
  }
  func.func @transform_0(%arg0: i32, %arg1: i32) -> (i32, i32, i32, i32) {
    %c0_i32 = arith.constant 0 : i32
    %c0_i32_0 = arith.constant 0 : i32
    %c0_i32_1 = arith.constant 0 : i32
    return %arg0, %c0_i32, %arg1, %c0_i32_0 : i32, i32, i32, i32
  }
  func.func @transform_1(%arg0: i32, %arg1: i32) -> (i32, i32, i32) {
    %c0_i32 = arith.constant 0 : i32
    %c0_i32_0 = arith.constant 0 : i32
    return %arg0, %arg1, %c0_i32 : i32, i32, i32
  }
  func.func @transform_2(%arg0: i32, %arg1: i32) -> (i32, i32, i32) {
    %c0_i32 = arith.constant 0 : i32
    %c0_i32_0 = arith.constant 0 : i32
    return %arg0, %arg1, %c0_i32 : i32, i32, i32
  }
  func.func @transform_3(%arg0: i32, %arg1: i32) -> (i32, i32, i32) {
    %c0_i32 = arith.constant 0 : i32
    %c0_i32_0 = arith.constant 0 : i32
    return %arg0, %arg1, %c0_i32 : i32, i32, i32
  }
  func.func @transform_4(%arg0: i32, %arg1: i32) -> (i32, i32, i32) {
    %c0_i32 = arith.constant 0 : i32
    %c0_i32_0 = arith.constant 0 : i32
    return %arg0, %arg1, %c0_i32 : i32, i32, i32
  }
  func.func @transform_5(%arg0: i32, %arg1: i32) -> (i32, i32, i32) {
    %c0_i32 = arith.constant 0 : i32
    %c0_i32_0 = arith.constant 0 : i32
    return %arg0, %arg1, %c0_i32 : i32, i32, i32
  }
}

</mosaic_0001>

<bundles_post_ra>
// kernel: tpu_custom_call.1
= control target key start
LH: loop header
LB: loop body
LE: loop exit
PB: predicated region body
PF: predicated region fallthrough
CT: control target
= control target key end

     0   :  { %s5420_s18 = smov 0   ;;  %s5422_s19 = smov 0   ;;  %s9192_s0 = inlined_call_operand.vmem [shape: f32[2,3,512,8], index: 0, kind: input, shape index: {}]   ;;  %s9193_s1 = inlined_call_operand.vmem [shape: f32[2,512,8], index: 1, kind: input, shape index: {}]   ;;  %s9194_s2 = inlined_call_operand.vmem [shape: f32[2,512,8], index: 2, kind: input, shape index: {}]   ;;  %s9195_s3 = inlined_call_operand.vmem [shape: f32[2,512,3], index: 3, kind: output, shape index: {0}]   ;;  %s9196_s4 = inlined_call_operand.vmem [shape: f32[2,512,1], index: 4, kind: output, shape index: {1}]   ;;  %s9197_s5 = inlined_call_operand.vmem [shape: f32[2,512,7], index: 5, kind: output, shape index: {2}]  }
   0x1   :  { %s5424_s20 = smov 0   ;;  %s5426_s21 = smov 0  }
   0x2   :  { %s5428_s22 = smov 0   ;;  %s5430_s23 = smov 0  }
   0x3   :  { %s5432_s24 = smov 0  }
   0x4 LB: > { %s25_s25 = sadd.s32 1, %s5376_s22  ;;  %s28_s26 = sadd.s32 1, %s5380_s23  ;;  %s5384_s24 = sphi %s5432_s24, %s16_s24   ;;  %s5380_s23 = sphi %s5430_s23, %s9827_s23   ;;  %s5376_s22 = sphi %s5428_s22, %s9826_s22   ;;  %s5372_s21 = sphi %s5426_s21, %s9825_s21   ;;  %s5368_s20 = sphi %s5424_s20, %s9824_s20   ;;  %s5364_s19 = sphi %s5422_s19, %s9823_s19   ;;  %s5360_s18 = sphi %s5420_s18, %s9822_s18  }
   0x5   : > { %p26_p0 = scmp.ge.s32.totalorder %s25_s25, 2  ;;  %p44_p1 = scmp.ne.s32.totalorder %s5364_s19, %s5360_s18 }
   0x6   : > { %p45_p2 = scmp.eq.s32.totalorder %s5384_s24, 0  ;;  %s37_s30 = sadd.s32 1, %s5364_s19 }
   0x7   : > { %s9829_s25 = smov (%p26_p0, %s25_s25), 0  ;;  %s9831_s26 = smov (!%p26_p0, %s28_s26), %s5380_s23 }
   0x8   : > { %p46_p3 = por %p45_p2, %p44_p1  ;;  %p30_p4 = scmp.ge.s32.totalorder %s9831_s26, 2 }
   0x9   : > { %s33_s27 = ssub.s32 %s5376_s22, %s9829_s25  ;;  %p4738_p6 = scmp.ge.s32.totalorder %s5384_s24, 4 }
   0xa   : > { %s9833_s26 = smov (%p30_p4, %s9831_s26), 0 }
   0xb   : > { %s32_s28 = ssub.s32 %s5380_s23, %s9833_s26  ;;  %210 = sbr.rel (%p4738_p6) target bundleno = 74 (0x4a), region = 16 }
   0xc   : > { %s34_s29 = sor.u32 %s33_s27, %s32_s28 }
   0xd   : > { %p35_p5 = scmp.eq.s32.totalorder %s34_s29, 0 }
   0xf   : > { %s5471_s6 = scalar_select %p35_p5, %s5364_s19, %s37_s30  }
  0x12   : > { %213 = sbr.rel (!%p46_p3) target bundleno = 74 (0x4a), region = 20  ;;  %s215_s7 = sand.u32 (%p46_p3), 1, %s5364_s19  }
  0x13   : > { %s4951_s8 = smul.u32 (%p46_p3), 768, %s215_s7  ;;  %s4739_s9 = sshll.u32 (%p46_p3), %s5376_s22, 5 }
  0x14   : > { %s4952_s10 = smul.u32 (%p46_p3), 192, %s5380_s23 }
  0x15   : > { %s5485_s16 = scalar_lea.vmem (%p46_p3), [#allocation2], %s4951_s8 }
  0x16   : > { %s220_s11 = sadd.s32 (%p46_p3), %s4952_s10, %s4739_s9 }
  0x17   : > { %s4740_s12 = sshll.u32 (%p46_p3), %s220_s11, 3 }
  0x18   : > { %s5480_s15 = scalar_lea.vmem (%p46_p3), %s9192_s0, %s4740_s12 }
  0x19   : > { %v440_v0 = vld [vmem:[%s5480_s15] sm:$0xff]  ;;  %v442_v1 = vld [vmem:[%s5480_s15 + $0x8] sm:$0xff]  ;;  %v444_v2 = vld [vmem:[%s5480_s15 + $0x10] sm:$0xff] }
  0x1a   : > { %441 = vst [vmem:[%s5485_s16] sm:$0xff] %v440_v0  ;;  %443 = vst [vmem:[%s5485_s16 + $0x8] sm:$0xff] %v442_v1  ;;  %v446_v3 = vld [vmem:[%s5480_s15 + $0x18] sm:$0xff]  ;;  %v448_v4 = vld [vmem:[%s5480_s15 + $0x20] sm:$0xff] }
  0x1b   : > { %445 = vst [vmem:[%s5485_s16 + $0x10] sm:$0xff] %v444_v2  ;;  %v450_v5 = vld [vmem:[%s5480_s15 + $0x28] sm:$0xff]  ;;  %447 = vst [vmem:[%s5485_s16 + $0x18] sm:$0xff] %v446_v3  ;;  %v452_v6 = vld [vmem:[%s5480_s15 + $0x30] sm:$0xff] }
  0x1c   : > { %449 = vst [vmem:[%s5485_s16 + $0x20] sm:$0xff] %v448_v4  ;;  %451 = vst [vmem:[%s5485_s16 + $0x28] sm:$0xff] %v450_v5  ;;  %v454_v7 = vld [vmem:[%s5480_s15 + $0x38] sm:$0xff]  ;;  %v456_v8 = vld [vmem:[%s5480_s15 + $0x40] sm:$0xff] }
  0x1d   : > { %453 = vst [vmem:[%s5485_s16 + $0x30] sm:$0xff] %v452_v6  ;;  %455 = vst [vmem:[%s5485_s16 + $0x38] sm:$0xff] %v454_v7  ;;  %v458_v9 = vld [vmem:[%s5480_s15 + $0x48] sm:$0xff]  ;;  %v460_v10 = vld [vmem:[%s5480_s15 + $0x50] sm:$0xff] }
  0x1e   : > { %457 = vst [vmem:[%s5485_s16 + $0x40] sm:$0xff] %v456_v8  ;;  %v462_v11 = vld [vmem:[%s5480_s15 + $0x58] sm:$0xff]  ;;  %459 = vst [vmem:[%s5485_s16 + $0x48] sm:$0xff] %v458_v9  ;;  %v464_v12 = vld [vmem:[%s5480_s15 + $0x60] sm:$0xff] }
  0x1f   : > { %461 = vst [vmem:[%s5485_s16 + $0x50] sm:$0xff] %v460_v10  ;;  %463 = vst [vmem:[%s5485_s16 + $0x58] sm:$0xff] %v462_v11  ;;  %v466_v13 = vld [vmem:[%s5480_s15 + $0x68] sm:$0xff]  ;;  %v468_v14 = vld [vmem:[%s5480_s15 + $0x70] sm:$0xff] }
  0x20   : > { %465 = vst [vmem:[%s5485_s16 + $0x60] sm:$0xff] %v464_v12  ;;  %467 = vst [vmem:[%s5485_s16 + $0x68] sm:$0xff] %v466_v13  ;;  %v470_v15 = vld [vmem:[%s5480_s15 + $0x78] sm:$0xff]  ;;  %v472_v16 = vld [vmem:[%s5480_s15 + $0x80] sm:$0xff] }
  0x21   : > { %469 = vst [vmem:[%s5485_s16 + $0x70] sm:$0xff] %v468_v14  ;;  %v474_v17 = vld [vmem:[%s5480_s15 + $0x88] sm:$0xff]  ;;  %471 = vst [vmem:[%s5485_s16 + $0x78] sm:$0xff] %v470_v15  ;;  %v476_v18 = vld [vmem:[%s5480_s15 + $0x90] sm:$0xff] }
  0x22   : > { %473 = vst [vmem:[%s5485_s16 + $0x80] sm:$0xff] %v472_v16  ;;  %475 = vst [vmem:[%s5485_s16 + $0x88] sm:$0xff] %v474_v17  ;;  %v478_v19 = vld [vmem:[%s5480_s15 + $0x98] sm:$0xff]  ;;  %v480_v20 = vld [vmem:[%s5480_s15 + $0xa0] sm:$0xff] }
  0x23   : > { %477 = vst [vmem:[%s5485_s16 + $0x90] sm:$0xff] %v476_v18  ;;  %479 = vst [vmem:[%s5485_s16 + $0x98] sm:$0xff] %v478_v19  ;;  %v482_v21 = vld [vmem:[%s5480_s15 + $0xa8] sm:$0xff]  ;;  %v484_v22 = vld [vmem:[%s5480_s15 + $0xb0] sm:$0xff] }
  0x24   : > { %481 = vst [vmem:[%s5485_s16 + $0xa0] sm:$0xff] %v480_v20  ;;  %v486_v23 = vld [vmem:[%s5480_s15 + $0xb8] sm:$0xff]  ;;  %483 = vst [vmem:[%s5485_s16 + $0xa8] sm:$0xff] %v482_v21  ;;  %v488_v24 = vld [vmem:[%s5480_s15 + $0xc0] sm:$0xff] }
  0x25   : > { %485 = vst [vmem:[%s5485_s16 + $0xb0] sm:$0xff] %v484_v22  ;;  %487 = vst [vmem:[%s5485_s16 + $0xb8] sm:$0xff] %v486_v23  ;;  %v490_v25 = vld [vmem:[%s5480_s15 + $0xc8] sm:$0xff]  ;;  %v492_v26 = vld [vmem:[%s5480_s15 + $0xd0] sm:$0xff] }
  0x26   : > { %489 = vst [vmem:[%s5485_s16 + $0xc0] sm:$0xff] %v488_v24  ;;  %491 = vst [vmem:[%s5485_s16 + $0xc8] sm:$0xff] %v490_v25  ;;  %v494_v27 = vld [vmem:[%s5480_s15 + $0xd8] sm:$0xff]  ;;  %v496_v28 = vld [vmem:[%s5480_s15 + $0xe0] sm:$0xff] }
  0x27   : > { %493 = vst [vmem:[%s5485_s16 + $0xd0] sm:$0xff] %v492_v26  ;;  %v498_v29 = vld [vmem:[%s5480_s15 + $0xe8] sm:$0xff]  ;;  %495 = vst [vmem:[%s5485_s16 + $0xd8] sm:$0xff] %v494_v27  ;;  %v500_v30 = vld [vmem:[%s5480_s15 + $0xf0] sm:$0xff] }
  0x28   : > { %497 = vst [vmem:[%s5485_s16 + $0xe0] sm:$0xff] %v496_v28  ;;  %499 = vst [vmem:[%s5485_s16 + $0xe8] sm:$0xff] %v498_v29  ;;  %v502_v31 = vld [vmem:[%s5480_s15 + $0xf8] sm:$0xff]  ;;  %v504_v32 = vld [vmem:[%s5480_s15 + $0x200] sm:$0xff] }
  0x29   : > { %501 = vst [vmem:[%s5485_s16 + $0xf0] sm:$0xff] %v500_v30  ;;  %503 = vst [vmem:[%s5485_s16 + $0xf8] sm:$0xff] %v502_v31  ;;  %v506_v33 = vld [vmem:[%s5480_s15 + $0x208] sm:$0xff]  ;;  %v508_v34 = vld [vmem:[%s5480_s15 + $0x210] sm:$0xff] }
  0x2a   : > { %505 = vst [vmem:[%s5485_s16 + $0x100] sm:$0xff] %v504_v32  ;;  %v510_v35 = vld [vmem:[%s5480_s15 + $0x218] sm:$0xff]  ;;  %507 = vst [vmem:[%s5485_s16 + $0x108] sm:$0xff] %v506_v33  ;;  %v512_v36 = vld [vmem:[%s5480_s15 + $0x220] sm:$0xff] }
  0x2b   : > { %509 = vst [vmem:[%s5485_s16 + $0x110] sm:$0xff] %v508_v34  ;;  %511 = vst [vmem:[%s5485_s16 + $0x118] sm:$0xff] %v510_v35  ;;  %v514_v37 = vld [vmem:[%s5480_s15 + $0x228] sm:$0xff]  ;;  %v516_v38 = vld [vmem:[%s5480_s15 + $0x230] sm:$0xff] }
  0x2c   : > { %513 = vst [vmem:[%s5485_s16 + $0x120] sm:$0xff] %v512_v36  ;;  %515 = vst [vmem:[%s5485_s16 + $0x128] sm:$0xff] %v514_v37  ;;  %v518_v39 = vld [vmem:[%s5480_s15 + $0x238] sm:$0xff]  ;;  %v520_v40 = vld [vmem:[%s5480_s15 + $0x240] sm:$0xff] }
  0x2d   : > { %517 = vst [vmem:[%s5485_s16 + $0x130] sm:$0xff] %v516_v38  ;;  %v522_v41 = vld [vmem:[%s5480_s15 + $0x248] sm:$0xff]  ;;  %519 = vst [vmem:[%s5485_s16 + $0x138] sm:$0xff] %v518_v39  ;;  %v524_v42 = vld [vmem:[%s5480_s15 + $0x250] sm:$0xff] }
  0x2e   : > { %521 = vst [vmem:[%s5485_s16 + $0x140] sm:$0xff] %v520_v40  ;;  %523 = vst [vmem:[%s5485_s16 + $0x148] sm:$0xff] %v522_v41  ;;  %v526_v43 = vld [vmem:[%s5480_s15 + $0x258] sm:$0xff]  ;;  %v528_v44 = vld [vmem:[%s5480_s15 + $0x260] sm:$0xff] }
  0x2f   : > { %525 = vst [vmem:[%s5485_s16 + $0x150] sm:$0xff] %v524_v42  ;;  %527 = vst [vmem:[%s5485_s16 + $0x158] sm:$0xff] %v526_v43  ;;  %v530_v45 = vld [vmem:[%s5480_s15 + $0x268] sm:$0xff]  ;;  %v532_v46 = vld [vmem:[%s5480_s15 + $0x270] sm:$0xff] }
  0x30   : > { %529 = vst [vmem:[%s5485_s16 + $0x160] sm:$0xff] %v528_v44  ;;  %v534_v47 = vld [vmem:[%s5480_s15 + $0x278] sm:$0xff]  ;;  %531 = vst [vmem:[%s5485_s16 + $0x168] sm:$0xff] %v530_v45  ;;  %v536_v48 = vld [vmem:[%s5480_s15 + $0x280] sm:$0xff] }
  0x31   : > { %533 = vst [vmem:[%s5485_s16 + $0x170] sm:$0xff] %v532_v46  ;;  %535 = vst [vmem:[%s5485_s16 + $0x178] sm:$0xff] %v534_v47  ;;  %v538_v49 = vld [vmem:[%s5480_s15 + $0x288] sm:$0xff]  ;;  %v540_v50 = vld [vmem:[%s5480_s15 + $0x290] sm:$0xff] }
  0x32   : > { %537 = vst [vmem:[%s5485_s16 + $0x180] sm:$0xff] %v536_v48  ;;  %539 = vst [vmem:[%s5485_s16 + $0x188] sm:$0xff] %v538_v49  ;;  %v542_v51 = vld [vmem:[%s5480_s15 + $0x298] sm:$0xff]  ;;  %v544_v52 = vld [vmem:[%s5480_s15 + $0x2a0] sm:$0xff] }
  0x33   : > { %541 = vst [vmem:[%s5485_s16 + $0x190] sm:$0xff] %v540_v50  ;;  %v546_v53 = vld [vmem:[%s5480_s15 + $0x2a8] sm:$0xff]  ;;  %543 = vst [vmem:[%s5485_s16 + $0x198] sm:$0xff] %v542_v51  ;;  %v548_v54 = vld [vmem:[%s5480_s15 + $0x2b0] sm:$0xff] }
  0x34   : > { %545 = vst [vmem:[%s5485_s16 + $0x1a0] sm:$0xff] %v544_v52  ;;  %547 = vst [vmem:[%s5485_s16 + $0x1a8] sm:$0xff] %v546_v53  ;;  %v550_v55 = vld [vmem:[%s5480_s15 + $0x2b8] sm:$0xff]  ;;  %v552_v56 = vld [vmem:[%s5480_s15 + $0x2c0] sm:$0xff] }
  0x35   : > { %549 = vst [vmem:[%s5485_s16 + $0x1b0] sm:$0xff] %v548_v54  ;;  %551 = vst [vmem:[%s5485_s16 + $0x1b8] sm:$0xff] %v550_v55  ;;  %v554_v57 = vld [vmem:[%s5480_s15 + $0x2c8] sm:$0xff]  ;;  %v556_v58 = vld [vmem:[%s5480_s15 + $0x2d0] sm:$0xff] }
  0x36   : > { %553 = vst [vmem:[%s5485_s16 + $0x1c0] sm:$0xff] %v552_v56  ;;  %v558_v59 = vld [vmem:[%s5480_s15 + $0x2d8] sm:$0xff]  ;;  %555 = vst [vmem:[%s5485_s16 + $0x1c8] sm:$0xff] %v554_v57  ;;  %v560_v60 = vld [vmem:[%s5480_s15 + $0x2e0] sm:$0xff] }
  0x37   : > { %557 = vst [vmem:[%s5485_s16 + $0x1d0] sm:$0xff] %v556_v58  ;;  %559 = vst [vmem:[%s5485_s16 + $0x1d8] sm:$0xff] %v558_v59  ;;  %v562_v61 = vld [vmem:[%s5480_s15 + $0x2e8] sm:$0xff]  ;;  %v564_v62 = vld [vmem:[%s5480_s15 + $0x2f0] sm:$0xff] }
  0x38   : > { %561 = vst [vmem:[%s5485_s16 + $0x1e0] sm:$0xff] %v560_v60  ;;  %563 = vst [vmem:[%s5485_s16 + $0x1e8] sm:$0xff] %v562_v61  ;;  %v566_v63 = vld [vmem:[%s5480_s15 + $0x2f8] sm:$0xff]  ;;  %v568_v0 = vld [vmem:[%s5480_s15 + $0x400] sm:$0xff] }
  0x39   : > { %565 = vst [vmem:[%s5485_s16 + $0x1f0] sm:$0xff] %v564_v62  ;;  %v570_v1 = vld [vmem:[%s5480_s15 + $0x408] sm:$0xff]  ;;  %567 = vst [vmem:[%s5485_s16 + $0x1f8] sm:$0xff] %v566_v63  ;;  %v572_v2 = vld [vmem:[%s5480_s15 + $0x410] sm:$0xff] }
  0x3a   : > { %569 = vst [vmem:[%s5485_s16 + $0x200] sm:$0xff] %v568_v0  ;;  %571 = vst [vmem:[%s5485_s16 + $0x208] sm:$0xff] %v570_v1  ;;  %v574_v3 = vld [vmem:[%s5480_s15 + $0x418] sm:$0xff]  ;;  %v576_v4 = vld [vmem:[%s5480_s15 + $0x420] sm:$0xff] }
  0x3b   : > { %573 = vst [vmem:[%s5485_s16 + $0x210] sm:$0xff] %v572_v2  ;;  %575 = vst [vmem:[%s5485_s16 + $0x218] sm:$0xff] %v574_v3  ;;  %v578_v5 = vld [vmem:[%s5480_s15 + $0x428] sm:$0xff]  ;;  %v580_v6 = vld [vmem:[%s5480_s15 + $0x430] sm:$0xff] }
  0x3c   : > { %577 = vst [vmem:[%s5485_s16 + $0x220] sm:$0xff] %v576_v4  ;;  %v582_v7 = vld [vmem:[%s5480_s15 + $0x438] sm:$0xff]  ;;  %579 = vst [vmem:[%s5485_s16 + $0x228] sm:$0xff] %v578_v5  ;;  %v584_v8 = vld [vmem:[%s5480_s15 + $0x440] sm:$0xff] }
  0x3d   : > { %581 = vst [vmem:[%s5485_s16 + $0x230] sm:$0xff] %v580_v6  ;;  %583 = vst [vmem:[%s5485_s16 + $0x238] sm:$0xff] %v582_v7  ;;  %v586_v9 = vld [vmem:[%s5480_s15 + $0x448] sm:$0xff]  ;;  %v588_v10 = vld [vmem:[%s5480_s15 + $0x450] sm:$0xff] }
  0x3e   : > { %585 = vst [vmem:[%s5485_s16 + $0x240] sm:$0xff] %v584_v8  ;;  %587 = vst [vmem:[%s5485_s16 + $0x248] sm:$0xff] %v586_v9  ;;  %v590_v11 = vld [vmem:[%s5480_s15 + $0x458] sm:$0xff]  ;;  %v592_v12 = vld [vmem:[%s5480_s15 + $0x460] sm:$0xff] }
  0x3f   : > { %589 = vst [vmem:[%s5485_s16 + $0x250] sm:$0xff] %v588_v10  ;;  %v594_v13 = vld [vmem:[%s5480_s15 + $0x468] sm:$0xff]  ;;  %591 = vst [vmem:[%s5485_s16 + $0x258] sm:$0xff] %v590_v11  ;;  %v596_v14 = vld [vmem:[%s5480_s15 + $0x470] sm:$0xff] }
  0x40   : > { %593 = vst [vmem:[%s5485_s16 + $0x260] sm:$0xff] %v592_v12  ;;  %595 = vst [vmem:[%s5485_s16 + $0x268] sm:$0xff] %v594_v13  ;;  %v598_v15 = vld [vmem:[%s5480_s15 + $0x478] sm:$0xff]  ;;  %v600_v16 = vld [vmem:[%s5480_s15 + $0x480] sm:$0xff] }
  0x41   : > { %597 = vst [vmem:[%s5485_s16 + $0x270] sm:$0xff] %v596_v14  ;;  %599 = vst [vmem:[%s5485_s16 + $0x278] sm:$0xff] %v598_v15  ;;  %v602_v17 = vld [vmem:[%s5480_s15 + $0x488] sm:$0xff]  ;;  %v604_v18 = vld [vmem:[%s5480_s15 + $0x490] sm:$0xff] }
  0x42   : > { %601 = vst [vmem:[%s5485_s16 + $0x280] sm:$0xff] %v600_v16  ;;  %v606_v19 = vld [vmem:[%s5480_s15 + $0x498] sm:$0xff]  ;;  %603 = vst [vmem:[%s5485_s16 + $0x288] sm:$0xff] %v602_v17  ;;  %v608_v20 = vld [vmem:[%s5480_s15 + $0x4a0] sm:$0xff] }
  0x43   : > { %605 = vst [vmem:[%s5485_s16 + $0x290] sm:$0xff] %v604_v18  ;;  %607 = vst [vmem:[%s5485_s16 + $0x298] sm:$0xff] %v606_v19  ;;  %v610_v21 = vld [vmem:[%s5480_s15 + $0x4a8] sm:$0xff]  ;;  %v612_v22 = vld [vmem:[%s5480_s15 + $0x4b0] sm:$0xff] }
  0x44   : > { %609 = vst [vmem:[%s5485_s16 + $0x2a0] sm:$0xff] %v608_v20  ;;  %611 = vst [vmem:[%s5485_s16 + $0x2a8] sm:$0xff] %v610_v21  ;;  %v614_v23 = vld [vmem:[%s5480_s15 + $0x4b8] sm:$0xff]  ;;  %v616_v24 = vld [vmem:[%s5480_s15 + $0x4c0] sm:$0xff] }
  0x45   : > { %613 = vst [vmem:[%s5485_s16 + $0x2b0] sm:$0xff] %v612_v22  ;;  %v618_v25 = vld [vmem:[%s5480_s15 + $0x4c8] sm:$0xff]  ;;  %615 = vst [vmem:[%s5485_s16 + $0x2b8] sm:$0xff] %v614_v23  ;;  %v620_v26 = vld [vmem:[%s5480_s15 + $0x4d0] sm:$0xff] }
  0x46   : > { %617 = vst [vmem:[%s5485_s16 + $0x2c0] sm:$0xff] %v616_v24  ;;  %619 = vst [vmem:[%s5485_s16 + $0x2c8] sm:$0xff] %v618_v25  ;;  %v622_v27 = vld [vmem:[%s5480_s15 + $0x4d8] sm:$0xff]  ;;  %v624_v28 = vld [vmem:[%s5480_s15 + $0x4e0] sm:$0xff] }
  0x47   : > { %621 = vst [vmem:[%s5485_s16 + $0x2d0] sm:$0xff] %v620_v26  ;;  %623 = vst [vmem:[%s5485_s16 + $0x2d8] sm:$0xff] %v622_v27  ;;  %v626_v29 = vld [vmem:[%s5480_s15 + $0x4e8] sm:$0xff]  ;;  %v628_v30 = vld [vmem:[%s5480_s15 + $0x4f0] sm:$0xff] }
  0x48   : > { %625 = vst [vmem:[%s5485_s16 + $0x2e0] sm:$0xff] %v624_v28  ;;  %v630_v31 = vld [vmem:[%s5480_s15 + $0x4f8] sm:$0xff]  ;;  %627 = vst [vmem:[%s5485_s16 + $0x2e8] sm:$0xff] %v626_v29 }
  0x49   : > { %629 = vst [vmem:[%s5485_s16 + $0x2f0] sm:$0xff] %v628_v30  ;;  %631 = vst [vmem:[%s5485_s16 + $0x2f8] sm:$0xff] %v630_v31 }
  0x4a PF: > { %p4741_p7 = scmp.ge.s32.totalorder %s5384_s24, 1  ;;  %p662_p8 = scmp.lt.s32.totalorder %s5384_s24, 5 }
  0x4c   : > { %p663_p9 = pnand %p4741_p7, %p662_p8 }
  0x4e   : > { %666 = sbr.rel (%p663_p9) target bundleno = 1788 (0x6fc), region = 66 }
  0x55   : > { %s4742_s17 = sshll.u32 %s5368_s20, 5  ;;  %p738_p10 = scmp.lt.s32.totalorder %s5372_s21, 1  ;;  %vm2163_vm0 = vcmask 7168   ;;  %vm2516_vm1 = vcmask 15360   ;;  %vm2709_vm2 = vcmask 31744   ;;  %vm2806_vm3 = vcmask 56320  }
  0x56   : > { %p740_p11 = scmp.lt.s32.totalorder %s4742_s17, 63  ;;  %s5386_s20 = smov 1   ;;  %vm4473_vm4 = vcmask 23552  }
  0x57   : > { %s9835_s21 = smov (!%p738_p10, %s5372_s21), 1  ;;  %s669_s12 = sand.u32 1, %s5360_s18  }
  0x58   : > { %s9837_s17 = smov (!%p740_p11, %s4742_s17), 63  ;;  %s4743_s27 = sshll.u32 %s9835_s21, 6 }
  0x59   : > { %s743_s28 = sadd.s32 %s4743_s27, %s9837_s17  ;;  %s5387_s21 = smov 127  }
  0x5a   : > { %s5681_s29 = sshll.u32 %s743_s28, 3  ;;  %s4953_s13 = smul.u32 768, %s669_s12 }
  0x5b   : > { %s5687_s8 = scalar_lea.vmem %s9194_s2, %s5681_s29  ;;  %s5925_s11 = scalar_lea.vmem %s9193_s1, %s5681_s29 }
  0x5c   : > { %v5690_v32 = vld [vmem:[%s5687_s8 + $0x10] sm:$0xff]  ;;  %v5693_v33 = vld [vmem:[%s5687_s8] sm:$0xff]  ;;  %v5700_v34 = vld [vmem:[%s5687_s8 + $0x18] sm:$0xff]  ;;  %s7034_s18 = scalar_lea.vmem [#allocation2], %s4953_s13  ;;  %s5388_s14 = smov 2  }
  0x5d   : > { %887 = vrot.lane.b32.xlu1 %v5690_v32, %s5386_s20  ;;  %883 = vrot.lane.b32.xlu0 %v5693_v33, %s5386_s20  ;;  %v5703_v35 = vld [vmem:[%s5687_s8 + $0x8] sm:$0xff]  ;;  %v5713_v37 = vld [vmem:[%s5687_s8 + $0x20] sm:$0xff]  ;;  %s5389_s15 = smov 4   ;;  %s7543_s27 = scalar_lea.vmem %s9197_s5, %s5681_s29 }
  0x5e   : > { %v5710_v36 = vld [vmem:[%s5687_s8 + $0x28] sm:$0xff]  ;;  %v5720_v38 = vld [vmem:[%s5687_s8 + $0x38] sm:$0xff]  ;;  %v5723_v39 = vld [vmem:[%s5687_s8 + $0x30] sm:$0xff]  ;;  %s8185_s7 = scalar_lea.vmem %s9196_s4, %s5681_s29 }
  0x5f   : > { %v5730_v40 = vld [vmem:[%s5687_s8 + $0x48] sm:$0xff]  ;;  %v5733_v41 = vld [vmem:[%s5687_s8 + $0x40] sm:$0xff]  ;;  %v5740_v42 = vld [vmem:[%s5687_s8 + $0x58] sm:$0xff] }
  0x60   : > { %v5743_v43 = vld [vmem:[%s5687_s8 + $0x50] sm:$0xff]  ;;  %v5750_v44 = vld [vmem:[%s5687_s8 + $0x68] sm:$0xff]  ;;  %v5753_v45 = vld [vmem:[%s5687_s8 + $0x60] sm:$0xff] }
  0x61   : > { %889 = vrot.lane.b32.xlu1 %v5700_v34, %s5386_s20  ;;  %885 = vrot.lane.b32.xlu0 %v5703_v35, %s5386_s20  ;;  %v5760_v46 = vld [vmem:[%s5687_s8 + $0x78] sm:$0xff]  ;;  %v5763_v47 = vld [vmem:[%s5687_s8 + $0x70] sm:$0xff] }
  0x62   : > { %v5770_v48 = vld [vmem:[%s5687_s8 + $0x88] sm:$0xff]  ;;  %v5773_v49 = vld [vmem:[%s5687_s8 + $0x80] sm:$0xff]  ;;  %v5780_v50 = vld [vmem:[%s5687_s8 + $0x98] sm:$0xff] }
  0x63   : > { %v5783_v51 = vld [vmem:[%s5687_s8 + $0x90] sm:$0xff]  ;;  %v5790_v52 = vld [vmem:[%s5687_s8 + $0xa8] sm:$0xff]  ;;  %v5793_v53 = vld [vmem:[%s5687_s8 + $0xa0] sm:$0xff] }
  0x64   : > { %v5800_v54 = vld [vmem:[%s5687_s8 + $0xb8] sm:$0xff]  ;;  %v5803_v55 = vld [vmem:[%s5687_s8 + $0xb0] sm:$0xff]  ;;  %v5810_v56 = vld [vmem:[%s5687_s8 + $0xc8] sm:$0xff] }
  0x65   : > { %893 = vrot.lane.b32.xlu1 %v5710_v36, %s5386_s20  ;;  %891 = vrot.lane.b32.xlu0 %v5713_v37, %s5386_s20  ;;  %v5813_v57 = vld [vmem:[%s5687_s8 + $0xc0] sm:$0xff]  ;;  %v5820_v58 = vld [vmem:[%s5687_s8 + $0xd8] sm:$0xff] }
  0x66   : > { %v5823_v59 = vld [vmem:[%s5687_s8 + $0xd0] sm:$0xff]  ;;  %v5830_v60 = vld [vmem:[%s5687_s8 + $0xe8] sm:$0xff]  ;;  %v5833_v61 = vld [vmem:[%s5687_s8 + $0xe0] sm:$0xff] }
  0x67   : > { %9332 = vst [vmem:[#allocation3_spill] sm:$0xff] %v5830_v60  ;;  %9333 = vst [vmem:[#allocation4_spill] sm:$0xff] %v5833_v61  ;;  %v5840_v62 = vld [vmem:[%s5687_s8 + $0xf8] sm:$0xff]  ;;  %v5843_v63 = vld [vmem:[%s5687_s8 + $0xf0] sm:$0xff] }
  0x68   : > { %9334 = vst [vmem:[#allocation5_spill] sm:$0xff] %v5840_v62  ;;  %9335 = vst [vmem:[#allocation6_spill] sm:$0xff] %v5843_v63  ;;  %v5932_v6 = vld [vmem:[%s5925_s11 + $0x8] sm:$0xff]  ;;  %v5935_v7 = vld [vmem:[%s5925_s11] sm:$0xff] }
  0x69   : > { %897 = vrot.lane.b32.xlu1 %v5720_v38, %s5386_s20  ;;  %895 = vrot.lane.b32.xlu0 %v5723_v39, %s5386_s20  ;;  %9336 = vst [vmem:[#allocation7_spill] sm:$0xff] %v5932_v6  ;;  %9337 = vst [vmem:[#allocation8_spill] sm:$0xff] %v5935_v7  ;;  %v5946_v10 = vld [vmem:[%s5925_s11 + $0x18] sm:$0xff]  ;;  %v5949_v11 = vld [vmem:[%s5925_s11 + $0x10] sm:$0xff] }
  0x6a   : > { %9338 = vst [vmem:[#allocation9_spill] sm:$0xff] %v5946_v10  ;;  %9339 = vst [vmem:[#allocation10_spill] sm:$0xff] %v5949_v11  ;;  %v5960_v14 = vld [vmem:[%s5925_s11 + $0x28] sm:$0xff]  ;;  %v5963_v15 = vld [vmem:[%s5925_s11 + $0x20] sm:$0xff] }
  0x6b   : > { %9340 = vst [vmem:[#allocation11_spill] sm:$0xff] %v5960_v14  ;;  %9341 = vst [vmem:[#allocation12_spill] sm:$0xff] %v5963_v15  ;;  %v5974_v18 = vld [vmem:[%s5925_s11 + $0x38] sm:$0xff]  ;;  %v5977_v19 = vld [vmem:[%s5925_s11 + $0x30] sm:$0xff] }
  0x6c   : > { %9342 = vst [vmem:[#allocation13_spill] sm:$0xff] %v5974_v18  ;;  %9343 = vst [vmem:[#allocation14_spill] sm:$0xff] %v5977_v19  ;;  %v5988_v22 = vld [vmem:[%s5925_s11 + $0x48] sm:$0xff]  ;;  %v5991_v23 = vld [vmem:[%s5925_s11 + $0x40] sm:$0xff] }
  0x6d   : > { %901 = vrot.lane.b32.xlu1 %v5730_v40, %s5386_s20  ;;  %899 = vrot.lane.b32.xlu0 %v5733_v41, %s5386_s20  ;;  %9344 = vst [vmem:[#allocation15_spill] sm:$0xff] %v5988_v22  ;;  %9345 = vst [vmem:[#allocation16_spill] sm:$0xff] %v5991_v23  ;;  %v6002_v26 = vld [vmem:[%s5925_s11 + $0x58] sm:$0xff]  ;;  %v6005_v27 = vld [vmem:[%s5925_s11 + $0x50] sm:$0xff] }
  0x6e   : > { %9346 = vst [vmem:[#allocation17_spill] sm:$0xff] %v6002_v26  ;;  %9347 = vst [vmem:[#allocation18_spill] sm:$0xff] %v6005_v27  ;;  %v6016_v30 = vld [vmem:[%s5925_s11 + $0x68] sm:$0xff]  ;;  %v6019_v31 = vld [vmem:[%s5925_s11 + $0x60] sm:$0xff] }
  0x6f   : > { %9348 = vst [vmem:[#allocation19_spill] sm:$0xff] %v6016_v30  ;;  %9349 = vst [vmem:[#allocation20_spill] sm:$0xff] %v6019_v31 }
  0x71   : > { %905 = vrot.lane.b32.xlu1 %v5740_v42, %s5386_s20  ;;  %903 = vrot.lane.b32.xlu0 %v5743_v43, %s5386_s20 }
  0x75   : > { %909 = vrot.lane.b32.xlu1 %v5750_v44, %s5386_s20  ;;  %907 = vrot.lane.b32.xlu0 %v5753_v45, %s5386_s20 }
  0x79   : > { %913 = vrot.lane.b32.xlu1 %v5760_v46, %s5386_s20  ;;  %911 = vrot.lane.b32.xlu0 %v5763_v47, %s5386_s20 }
  0x7d   : > { %917 = vrot.lane.b32.xlu1 %v5770_v48, %s5386_s20  ;;  %915 = vrot.lane.b32.xlu0 %v5773_v49, %s5386_s20 }
  0x81   : > { %921 = vrot.lane.b32.xlu1 %v5780_v50, %s5386_s20  ;;  %919 = vrot.lane.b32.xlu0 %v5783_v51, %s5386_s20 }
  0x85   : > { %925 = vrot.lane.b32.xlu1 %v5790_v52, %s5386_s20  ;;  %923 = vrot.lane.b32.xlu0 %v5793_v53, %s5386_s20 }
  0x89   : > { %929 = vrot.lane.b32.xlu1 %v5800_v54, %s5386_s20  ;;  %927 = vrot.lane.b32.xlu0 %v5803_v55, %s5386_s20 }
  0x8d   : > { %933 = vrot.lane.b32.xlu1 %v5810_v56, %s5386_s20  ;;  %931 = vrot.lane.b32.xlu0 %v5813_v57, %s5386_s20 }
  0x91   : > { %937 = vrot.lane.b32.xlu1 %v5820_v58, %s5386_s20  ;;  %935 = vrot.lane.b32.xlu0 %v5823_v59, %s5386_s20 }
  0x95   : > { %941 = vrot.lane.b32.xlu1 %v5830_v60, %s5386_s20  ;;  %939 = vrot.lane.b32.xlu0 %v5833_v61, %s5386_s20 }
  0x99   : > { %945 = vrot.lane.b32.xlu1 %v5840_v62, %s5386_s20  ;;  %943 = vrot.lane.b32.xlu0 %v5843_v63, %s5386_s20 }
  0x9d   : > { %1013 = vrot.lane.b32.xlu1 %v5703_v35, %s5387_s21  ;;  %1011 = vrot.lane.b32.xlu0 %v5693_v33, %s5387_s21 }
  0xa1   : > { %1017 = vrot.lane.b32.xlu1 %v5700_v34, %s5387_s21  ;;  %1015 = vrot.lane.b32.xlu0 %v5690_v32, %s5387_s21 }
  0xa5   : > { %1021 = vrot.lane.b32.xlu1 %v5710_v36, %s5387_s21  ;;  %1019 = vrot.lane.b32.xlu0 %v5713_v37, %s5387_s21 }
  0xa9   : > { %1025 = vrot.lane.b32.xlu1 %v5720_v38, %s5387_s21  ;;  %1023 = vrot.lane.b32.xlu0 %v5723_v39, %s5387_s21 }
  0xad   : > { %1029 = vrot.lane.b32.xlu1 %v5730_v40, %s5387_s21  ;;  %1027 = vrot.lane.b32.xlu0 %v5733_v41, %s5387_s21 }
  0xb1   : > { %1033 = vrot.lane.b32.xlu1 %v5740_v42, %s5387_s21  ;;  %1031 = vrot.lane.b32.xlu0 %v5743_v43, %s5387_s21 }
  0xb5   : > { %1037 = vrot.lane.b32.xlu1 %v5750_v44, %s5387_s21  ;;  %1035 = vrot.lane.b32.xlu0 %v5753_v45, %s5387_s21 }
  0xb9   : > { %1041 = vrot.lane.b32.xlu1 %v5760_v46, %s5387_s21  ;;  %1039 = vrot.lane.b32.xlu0 %v5763_v47, %s5387_s21 }
  0xbd   : > { %1045 = vrot.lane.b32.xlu1 %v5770_v48, %s5387_s21  ;;  %1043 = vrot.lane.b32.xlu0 %v5773_v49, %s5387_s21 }
  0xc1   : > { %1049 = vrot.lane.b32.xlu1 %v5780_v50, %s5387_s21  ;;  %1047 = vrot.lane.b32.xlu0 %v5783_v51, %s5387_s21 }
  0xc5   : > { %1053 = vrot.lane.b32.xlu1 %v5790_v52, %s5387_s21  ;;  %1051 = vrot.lane.b32.xlu0 %v5793_v53, %s5387_s21 }
  0xc9   : > { %1057 = vrot.lane.b32.xlu1 %v5800_v54, %s5387_s21  ;;  %1055 = vrot.lane.b32.xlu0 %v5803_v55, %s5387_s21 }
  0xcd   : > { %1061 = vrot.lane.b32.xlu1 %v5810_v56, %s5387_s21  ;;  %1059 = vrot.lane.b32.xlu0 %v5813_v57, %s5387_s21 }
  0xcf   : > { %v5901_v0 = vpop.permute.xlu1 %887  ;;  %v5903_v1 = vpop.permute.xlu0 %883 }
  0xd1   : > { %1065 = vrot.lane.b32.xlu1 %v5820_v58, %s5387_s21  ;;  %1063 = vrot.lane.b32.xlu0 %v5823_v59, %s5387_s21 }
  0xd3   : > { %v5909_v2 = vpop.permute.xlu1 %889  ;;  %v5911_v3 = vpop.permute.xlu0 %885 }
  0xd5   : > { %1069 = vrot.lane.b32.xlu1 %v5830_v60, %s5387_s21  ;;  %1067 = vrot.lane.b32.xlu0 %v5833_v61, %s5387_s21  ;;  %v6089_v61 = vld [vmem:[%s5925_s11 + $0xb0] sm:$0xff] }
  0xd6   : > { %9359 = vst [vmem:[#allocation30_spill] sm:$0xff] %v6089_v61 }
  0xd7   : > { %v5917_v4 = vpop.permute.xlu1 %893  ;;  %v5919_v5 = vpop.permute.xlu0 %891 }
  0xd9   : > { %1073 = vrot.lane.b32.xlu1 %v5840_v62, %s5387_s21  ;;  %1071 = vrot.lane.b32.xlu0 %v5843_v63, %s5387_s21  ;;  %v6061_v63 = vld [vmem:[%s5925_s11 + $0x90] sm:$0xff] }
  0xda   : > { %9355 = vst [vmem:[#allocation26_spill] sm:$0xff] %v6061_v63 }
  0xdb   : > { %v5937_v8 = vpop.permute.xlu1 %897  ;;  %v5939_v9 = vpop.permute.xlu0 %895 }
  0xdd   : > { %1205 = vrot.lane.b32.xlu1 %v5932_v6, %s5387_s21  ;;  %1203 = vrot.lane.b32.xlu0 %v5935_v7, %s5387_s21  ;;  %v6103_v7 = vld [vmem:[%s5925_s11 + $0xc0] sm:$0xff] }
  0xde   : > { %9363 = vst [vmem:[#allocation34_spill] sm:$0xff] %v6103_v7 }
  0xdf   : > { %v5951_v12 = vpop.permute.xlu1 %901  ;;  %v5953_v13 = vpop.permute.xlu0 %899 }
  0xe1   : > { %1209 = vrot.lane.b32.xlu1 %v5946_v10, %s5387_s21  ;;  %1207 = vrot.lane.b32.xlu0 %v5949_v11, %s5387_s21  ;;  %v6075_v11 = vld [vmem:[%s5925_s11 + $0xa0] sm:$0xff] }
  0xe2   : > { %9357 = vst [vmem:[#allocation28_spill] sm:$0xff] %v6075_v11 }
  0xe3   : > { %v5965_v16 = vpop.permute.xlu1 %905  ;;  %v5967_v17 = vpop.permute.xlu0 %903 }
  0xe5   : > { %1213 = vrot.lane.b32.xlu1 %v5960_v14, %s5387_s21  ;;  %1211 = vrot.lane.b32.xlu0 %v5963_v15, %s5387_s21  ;;  %v6047_v15 = vld [vmem:[%s5925_s11 + $0x80] sm:$0xff] }
  0xe6   : > { %9353 = vst [vmem:[#allocation24_spill] sm:$0xff] %v6047_v15 }
  0xe7   : > { %v5979_v20 = vpop.permute.xlu1 %909  ;;  %v5981_v21 = vpop.permute.xlu0 %907 }
  0xe9   : > { %1217 = vrot.lane.b32.xlu1 %v5974_v18, %s5387_s21  ;;  %1215 = vrot.lane.b32.xlu0 %v5977_v19, %s5387_s21  ;;  %v6033_v19 = vld [vmem:[%s5925_s11 + $0x70] sm:$0xff] }
  0xea   : > { %9351 = vst [vmem:[#allocation22_spill] sm:$0xff] %v6033_v19 }
  0xeb   : > { %v5993_v24 = vpop.permute.xlu1 %913  ;;  %v5995_v25 = vpop.permute.xlu0 %911 }
  0xed   : > { %1221 = vrot.lane.b32.xlu1 %v5988_v22, %s5387_s21  ;;  %1219 = vrot.lane.b32.xlu0 %v5991_v23, %s5387_s21 }
  0xef   : > { %v6007_v28 = vpop.permute.xlu1 %917  ;;  %v6009_v29 = vpop.permute.xlu0 %915 }
  0xf1   : > { %1225 = vrot.lane.b32.xlu1 %v6002_v26, %s5387_s21  ;;  %1223 = vrot.lane.b32.xlu0 %v6005_v27, %s5387_s21  ;;  %v6030_v26 = vld [vmem:[%s5925_s11 + $0x78] sm:$0xff] }
  0xf2   : > { %9350 = vst [vmem:[#allocation21_spill] sm:$0xff] %v6030_v26 }
  0xf3   : > { %v6021_v23 = vpop.permute.xlu1 %921  ;;  %v6023_v22 = vpop.permute.xlu0 %919 }
  0xf5   : > { %1229 = vrot.lane.b32.xlu1 %v6016_v30, %s5387_s21  ;;  %1227 = vrot.lane.b32.xlu0 %v6019_v31, %s5387_s21  ;;  %v6044_v30 = vld [vmem:[%s5925_s11 + $0x88] sm:$0xff] }
  0xf6   : > { %9352 = vst [vmem:[#allocation23_spill] sm:$0xff] %v6044_v30 }
  0xf7   : > { %v6035_v27 = vpop.permute.xlu1 %925  ;;  %v6037_v18 = vpop.permute.xlu0 %923 }
  0xf9   : > { %1233 = vrot.lane.b32.xlu1 %v6030_v26, %s5387_s21  ;;  %1231 = vrot.lane.b32.xlu0 %v6033_v19, %s5387_s21  ;;  %v6058_v26 = vld [vmem:[%s5925_s11 + $0x98] sm:$0xff] }
  0xfa   : > { %9354 = vst [vmem:[#allocation25_spill] sm:$0xff] %v6058_v26 }
  0xfb   : > { %v6049_v31 = vpop.permute.xlu1 %929  ;;  %v6051_v14 = vpop.permute.xlu0 %927 }
  0xfd   : > { %1237 = vrot.lane.b32.xlu1 %v6044_v30, %s5387_s21  ;;  %1235 = vrot.lane.b32.xlu0 %v6047_v15, %s5387_s21  ;;  %v6072_v30 = vld [vmem:[%s5925_s11 + $0xa8] sm:$0xff] }
  0xfe   : > { %9356 = vst [vmem:[#allocation27_spill] sm:$0xff] %v6072_v30 }
  0xff   : > { %v6063_v19 = vpop.permute.xlu1 %933  ;;  %v6065_v62 = vpop.permute.xlu0 %931 }
 0x101   : > { %1241 = vrot.lane.b32.xlu1 %v6058_v26, %s5387_s21  ;;  %1239 = vrot.lane.b32.xlu0 %v6061_v63, %s5387_s21  ;;  %v6086_v26 = vld [vmem:[%s5925_s11 + $0xb8] sm:$0xff] }
 0x102   : > { %9358 = vst [vmem:[#allocation29_spill] sm:$0xff] %v6086_v26 }
 0x103   : > { %v6077_v15 = vpop.permute.xlu1 %937  ;;  %v6079_v10 = vpop.permute.xlu0 %935 }
 0x105   : > { %1245 = vrot.lane.b32.xlu1 %v6072_v30, %s5387_s21  ;;  %1243 = vrot.lane.b32.xlu0 %v6075_v11, %s5387_s21  ;;  %v6100_v30 = vld [vmem:[%s5925_s11 + $0xc8] sm:$0xff] }
 0x106   : > { %9362 = vst [vmem:[#allocation33_spill] sm:$0xff] %v6100_v30 }
 0x107   : > { %v6091_v63 = vpop.permute.xlu1 %941  ;;  %v6093_v60 = vpop.permute.xlu0 %939 }
 0x108   : > { %9360 = vst [vmem:[#allocation31_spill] sm:$0xff] %v6091_v63  ;;  %9361 = vst [vmem:[#allocation32_spill] sm:$0xff] %v6093_v60  ;;  %v6117_v60 = vld [vmem:[%s5925_s11 + $0xd0] sm:$0xff] }
 0x109   : > { %1249 = vrot.lane.b32.xlu1 %v6086_v26, %s5387_s21  ;;  %1247 = vrot.lane.b32.xlu0 %v6089_v61, %s5387_s21  ;;  %v6114_v26 = vld [vmem:[%s5925_s11 + $0xd8] sm:$0xff]  ;;  %9367 = vst [vmem:[#allocation38_spill] sm:$0xff] %v6117_v60 }
 0x10a   : > { %9366 = vst [vmem:[#allocation37_spill] sm:$0xff] %v6114_v26 }
 0x10b   : > { %v6105_v11 = vpop.permute.xlu1 %945  ;;  %v6107_v6 = vpop.permute.xlu0 %943 }
 0x10c   : > { %9364 = vst [vmem:[#allocation35_spill] sm:$0xff] %v6105_v11  ;;  %9365 = vst [vmem:[#allocation36_spill] sm:$0xff] %v6107_v6  ;;  %v6128_v6 = vld [vmem:[%s5925_s11 + $0xe8] sm:$0xff] }
 0x10d   : > { %1253 = vrot.lane.b32.xlu1 %v6100_v30, %s5387_s21  ;;  %1251 = vrot.lane.b32.xlu0 %v6103_v7, %s5387_s21  ;;  %9370 = vst [vmem:[#allocation41_spill] sm:$0xff] %v6128_v6  ;;  %v6131_v30 = vld [vmem:[%s5925_s11 + $0xe0] sm:$0xff] }
 0x10e   : > { %9371 = vst [vmem:[#allocation42_spill] sm:$0xff] %v6131_v30 }
 0x10f   : > { %v6119_v61 = vpop.permute.xlu1 %1013  ;;  %v6121_v63 = vpop.permute.xlu0 %1011 }
 0x110   : > { %9368 = vst [vmem:[#allocation39_spill] sm:$0xff] %v6119_v61  ;;  %9369 = vst [vmem:[#allocation40_spill] sm:$0xff] %v6121_v63  ;;  %v6142_v63 = vld [vmem:[%s5925_s11 + $0xf8] sm:$0xff]  ;;  %v6145_v61 = vld [vmem:[%s5925_s11 + $0xf0] sm:$0xff] }
 0x111   : > { %1257 = vrot.lane.b32.xlu1 %v6114_v26, %s5387_s21  ;;  %1255 = vrot.lane.b32.xlu0 %v6117_v60, %s5387_s21  ;;  %9374 = vst [vmem:[#allocation45_spill] sm:$0xff] %v6145_v61 }
 0x113   : > { %v6133_v11 = vpop.permute.xlu1 %1017  ;;  %v6135_v7 = vpop.permute.xlu0 %1015 }
 0x114   : > { %9372 = vst [vmem:[#allocation43_spill] sm:$0xff] %v6133_v11  ;;  %9373 = vst [vmem:[#allocation44_spill] sm:$0xff] %v6135_v7  ;;  %v979_v7 = vsub.f32 %v5693_v33, %v5903_v1  ;;  %v980_v11 = vsub.f32 %v5703_v35, %v5911_v3  ;;  %v984_v35 = vsub.f32 %v5710_v36, %v5917_v4 }
 0x115   : > { %1261 = vrot.lane.b32.xlu1 %v6128_v6, %s5387_s21  ;;  %1259 = vrot.lane.b32.xlu0 %v6131_v30, %s5387_s21  ;;  %v983_v1 = vsub.f32 %v5713_v37, %v5919_v5  ;;  %v988_v37 = vsub.f32 %v5730_v40, %v5951_v12  ;;  %v989_v5 = vsub.f32 %v5743_v43, %v5967_v17 }
 0x116   : > { %v994_v43 = vsub.f32 %v5760_v46, %v5993_v24  ;;  %v997_v17 = vsub.f32 %v5783_v51, %v6023_v22  ;;  %v1002_v51 = vsub.f32 %v5800_v54, %v6049_v31  ;;  %v1001_v22 = vsub.f32 %v5803_v55, %v6051_v14  ;;  %v9406_v31 = vld [vmem:[#allocation3_spill] sm:$0xff] }
 0x117   : > { %v6147_v26 = vpop.permute.xlu1 %1021  ;;  %v6149_v60 = vpop.permute.xlu0 %1019  ;;  %v1006_v55 = vsub.f32 %v5820_v58, %v6077_v15  ;;  %v1005_v14 = vsub.f32 %v5823_v59, %v6079_v10  ;;  %v9409_v10 = vld [vmem:[#allocation9_spill] sm:$0xff] }
 0x118   : > { %9375 = vst [vmem:[#allocation46_spill] sm:$0xff] %v6147_v26  ;;  %9376 = vst [vmem:[#allocation47_spill] sm:$0xff] %v6149_v60  ;;  %v981_v60 = vsub.f32 %v5690_v32, %v5901_v0  ;;  %v982_v26 = vsub.f32 %v5700_v34, %v5909_v2  ;;  %v986_v34 = vsub.f32 %v5720_v38, %v5937_v8 }
 0x119   : > { %1265 = vrot.lane.b32.xlu1 %v6142_v63, %s5387_s21  ;;  %1263 = vrot.lane.b32.xlu0 %v6145_v61, %s5387_s21  ;;  %v987_v2 = vsub.f32 %v5733_v41, %v5953_v13  ;;  %v992_v41 = vsub.f32 %v5750_v44, %v5979_v20  ;;  %v991_v8 = vsub.f32 %v5753_v45, %v5981_v21 }
 0x11a   : > { %v996_v45 = vsub.f32 %v5770_v48, %v6007_v28  ;;  %v995_v13 = vsub.f32 %v5773_v49, %v6009_v29  ;;  %v1000_v49 = vsub.f32 %v5790_v52, %v6035_v27  ;;  %v999_v21 = vsub.f32 %v5793_v53, %v6037_v18  ;;  %v9404_v28 = vld [vmem:[#allocation8_spill] sm:$0xff]  ;;  %v9405_v29 = vld [vmem:[#allocation31_spill] sm:$0xff] }
 0x11b   : > { %v6159_v30 = vpop.permute.xlu1 %1025  ;;  %v6161_v6 = vpop.permute.xlu0 %1023  ;;  %v1004_v53 = vsub.f32 %v5810_v56, %v6063_v19  ;;  %v1003_v18 = vsub.f32 %v5813_v57, %v6065_v62  ;;  %v9403_v56 = vld [vmem:[#allocation7_spill] sm:$0xff] }
 0x11c   : > { %9377 = vst [vmem:[#allocation48_spill] sm:$0xff] %v6159_v30  ;;  %9378 = vst [vmem:[#allocation49_spill] sm:$0xff] %v6161_v6 }
 0x11d   : > { %1717 = vrot.lane.b32.xlu1 %v980_v11, %s5387_s21  ;;  %1715 = vrot.lane.b32.xlu0 %v979_v7, %s5387_s21  ;;  %v993_v11 = vsub.f32 %v5763_v47, %v5995_v25  ;;  %v998_v47 = vsub.f32 %v5780_v50, %v6021_v23 }
 0x11f   : > { %v6169_v61 = vpop.permute.xlu1 %1029  ;;  %v6171_v33 = vpop.permute.xlu0 %1027 }
 0x120   : > { %9379 = vst [vmem:[#allocation50_spill] sm:$0xff] %v6169_v61  ;;  %9380 = vst [vmem:[#allocation51_spill] sm:$0xff] %v6171_v33 }
 0x121   : > { %1721 = vrot.lane.b32.xlu1 %v982_v26, %s5387_s21  ;;  %1719 = vrot.lane.b32.xlu0 %v981_v60, %s5387_s21  ;;  %v985_v60 = vsub.f32 %v5723_v39, %v5939_v9  ;;  %v990_v39 = vsub.f32 %v5740_v42, %v5965_v16 }
 0x123   : > { %v6179_v3 = vpop.permute.xlu1 %1033  ;;  %v6181_v32 = vpop.permute.xlu0 %1031 }
 0x124   : > { %9381 = vst [vmem:[#allocation52_spill] sm:$0xff] %v6179_v3  ;;  %9382 = vst [vmem:[#allocation53_spill] sm:$0xff] %v6181_v32  ;;  %v9443_v32 = vld [vmem:[#allocation38_spill] sm:$0xff] }
 0x125   : > { %1725 = vrot.lane.b32.xlu1 %v984_v35, %s5387_s21  ;;  %1723 = vrot.lane.b32.xlu0 %v983_v1, %s5387_s21  ;;  %v1008_v35 = vsub.f32 %v9406_v31, %v9405_v29  ;;  %v9407_v1 = vld [vmem:[#allocation32_spill] sm:$0xff]  ;;  %v9417_v29 = vld [vmem:[#allocation13_spill] sm:$0xff] }
 0x127   : > { %v6189_v0 = vpop.permute.xlu1 %1037  ;;  %v6191_v36 = vpop.permute.xlu0 %1035 }
 0x128   : > { %9383 = vst [vmem:[#allocation54_spill] sm:$0xff] %v6189_v0  ;;  %9384 = vst [vmem:[#allocation55_spill] sm:$0xff] %v6191_v36  ;;  %v9440_v0 = vld [vmem:[#allocation34_spill] sm:$0xff] }
 0x129   : > { %1729 = vrot.lane.b32.xlu1 %v986_v34, %s5387_s21  ;;  %1727 = vrot.lane.b32.xlu0 %v985_v60, %s5387_s21  ;;  %v9408_v34 = vld [vmem:[#allocation4_spill] sm:$0xff] }
 0x12a   : > { %v1007_v58 = vsub.f32 %v9408_v34, %v9407_v1 }
 0x12b   : > { %v6199_v4 = vpop.permute.xlu1 %1041  ;;  %v6201_v38 = vpop.permute.xlu0 %1039 }
 0x12c   : > { %9385 = vst [vmem:[#allocation56_spill] sm:$0xff] %v6199_v4  ;;  %9386 = vst [vmem:[#allocation57_spill] sm:$0xff] %v6201_v38 }
 0x12d   : > { %1733 = vrot.lane.b32.xlu1 %v988_v37, %s5387_s21  ;;  %1731 = vrot.lane.b32.xlu0 %v987_v2, %s5387_s21  ;;  %v9410_v2 = vld [vmem:[#allocation10_spill] sm:$0xff] }
 0x12f   : > { %v6209_v7 = vpop.permute.xlu1 %1045  ;;  %v6211_v40 = vpop.permute.xlu0 %1043 }
 0x130   : > { %9387 = vst [vmem:[#allocation58_spill] sm:$0xff] %v6209_v7  ;;  %9388 = vst [vmem:[#allocation59_spill] sm:$0xff] %v6211_v40 }
 0x131   : > { %1737 = vrot.lane.b32.xlu1 %v990_v39, %s5387_s21  ;;  %1735 = vrot.lane.b32.xlu0 %v989_v5, %s5387_s21 }
 0x133   : > { %v6219_v9 = vpop.permute.xlu1 %1049  ;;  %v6221_v42 = vpop.permute.xlu0 %1047 }
 0x134   : > { %9389 = vst [vmem:[#allocation60_spill] sm:$0xff] %v6219_v9  ;;  %9390 = vst [vmem:[#allocation61_spill] sm:$0xff] %v6221_v42 }
 0x135   : > { %1741 = vrot.lane.b32.xlu1 %v992_v41, %s5387_s21  ;;  %1739 = vrot.lane.b32.xlu0 %v991_v8, %s5387_s21  ;;  %v9411_v41 = vld [vmem:[#allocation35_spill] sm:$0xff]  ;;  %v9412_v8 = vld [vmem:[#allocation5_spill] sm:$0xff] }
 0x137   : > { %v6229_v12 = vpop.permute.xlu1 %1053  ;;  %v6231_v44 = vpop.permute.xlu0 %1051 }
 0x138   : > { %9391 = vst [vmem:[#allocation62_spill] sm:$0xff] %v6229_v12  ;;  %9392 = vst [vmem:[#allocation63_spill] sm:$0xff] %v6231_v44 }
 0x139   : > { %1745 = vrot.lane.b32.xlu1 %v994_v43, %s5387_s21  ;;  %1743 = vrot.lane.b32.xlu0 %v993_v11, %s5387_s21  ;;  %v1010_v43 = vsub.f32 %v9412_v8, %v9411_v41  ;;  %v9413_v11 = vld [vmem:[#allocation36_spill] sm:$0xff] }
 0x13b   : > { %v6239_v16 = vpop.permute.xlu1 %1057  ;;  %v6241_v46 = vpop.permute.xlu0 %1055 }
 0x13c   : > { %9393 = vst [vmem:[#allocation64_spill] sm:$0xff] %v6239_v16  ;;  %9394 = vst [vmem:[#allocation65_spill] sm:$0xff] %v6241_v46 }
 0x13d   : > { %1749 = vrot.lane.b32.xlu1 %v996_v45, %s5387_s21  ;;  %1747 = vrot.lane.b32.xlu0 %v995_v13, %s5387_s21  ;;  %v9414_v45 = vld [vmem:[#allocation6_spill] sm:$0xff] }
 0x13e   : > { %v1009_v13 = vsub.f32 %v9414_v45, %v9413_v11  ;;  %v9420_v45 = vld [vmem:[#allocation16_spill] sm:$0xff] }
 0x13f   : > { %v6249_v20 = vpop.permute.xlu1 %1061  ;;  %v6251_v48 = vpop.permute.xlu0 %1059 }
 0x140   : > { %9395 = vst [vmem:[#allocation66_spill] sm:$0xff] %v6249_v20  ;;  %9396 = vst [vmem:[#allocation67_spill] sm:$0xff] %v6251_v48 }
 0x141   : > { %1753 = vrot.lane.b32.xlu1 %v998_v47, %s5387_s21  ;;  %1751 = vrot.lane.b32.xlu0 %v997_v17, %s5387_s21 }
 0x143   : > { %v6259_v24 = vpop.permute.xlu1 %1065  ;;  %v6261_v50 = vpop.permute.xlu0 %1063 }
 0x144   : > { %9397 = vst [vmem:[#allocation68_spill] sm:$0xff] %v6259_v24  ;;  %9398 = vst [vmem:[#allocation69_spill] sm:$0xff] %v6261_v50 }
 0x145   : > { %1757 = vrot.lane.b32.xlu1 %v1000_v49, %s5387_s21  ;;  %1755 = vrot.lane.b32.xlu0 %v999_v21, %s5387_s21 }
 0x147   : > { %v6269_v23 = vpop.permute.xlu1 %1069  ;;  %v6271_v52 = vpop.permute.xlu0 %1067 }
 0x148   : > { %9399 = vst [vmem:[#allocation70_spill] sm:$0xff] %v6269_v23  ;;  %9400 = vst [vmem:[#allocation71_spill] sm:$0xff] %v6271_v52 }
 0x149   : > { %1761 = vrot.lane.b32.xlu1 %v1002_v51, %s5387_s21  ;;  %1759 = vrot.lane.b32.xlu0 %v1001_v22, %s5387_s21  ;;  %v9415_v22 = vld [vmem:[#allocation11_spill] sm:$0xff] }
 0x14b   : > { %v6279_v25 = vpop.permute.xlu1 %1073  ;;  %v6281_v54 = vpop.permute.xlu0 %1071 }
 0x14c   : > { %9401 = vst [vmem:[#allocation72_spill] sm:$0xff] %v6279_v25  ;;  %9402 = vst [vmem:[#allocation73_spill] sm:$0xff] %v6281_v54  ;;  %v9426_v54 = vld [vmem:[#allocation21_spill] sm:$0xff] }
 0x14d   : > { %1765 = vrot.lane.b32.xlu1 %v1004_v53, %s5387_s21  ;;  %1763 = vrot.lane.b32.xlu0 %v1003_v18, %s5387_s21  ;;  %v9416_v18 = vld [vmem:[#allocation12_spill] sm:$0xff] }
 0x14f   : > { %v1206_v26 = vpop.permute.xlu1 %1205  ;;  %v1204_v27 = vpop.permute.xlu0 %1203 }
 0x150   : > { %v1300_v19 = vadd.f32 %v1206_v26, %v9403_v56  ;;  %v1299_v57 = vadd.f32 %v1204_v27, %v9404_v28 }
 0x151   : > { %1769 = vrot.lane.b32.xlu1 %v1006_v55, %s5387_s21  ;;  %1767 = vrot.lane.b32.xlu0 %v1005_v14, %s5387_s21 }
 0x152   : > { %v1332_v62 = vmul.f32 0.5, %v1300_v19  ;;  %v1331_v15 = vmul.f32 0.5, %v1299_v57 }
 0x153   : > { %v1210_v60 = vpop.permute.xlu1 %1209  ;;  %v1208_v59 = vpop.permute.xlu0 %1207 }
 0x154   : > { %v1302_v37 = vadd.f32 %v1210_v60, %v9409_v10  ;;  %v1301_v39 = vadd.f32 %v1208_v59, %v9410_v2  ;;  %v6299_v5 = vadd.f32 -1.0, %v1332_v62  ;;  %v6307_v47 = vadd.f32 -1.0, %v1331_v15 }
 0x155   : > { %1773 = vrot.lane.b32.xlu1 %v1008_v35, %s5387_s21  ;;  %1771 = vrot.lane.b32.xlu0 %v1007_v58, %s5387_s21  ;;  %v9418_v58 = vld [vmem:[#allocation14_spill] sm:$0xff] }
 0x156   : > { %v1334_v17 = vmul.f32 0.5, %v1302_v37  ;;  %v1333_v49 = vmul.f32 0.5, %v1301_v39  ;;  %v1428_v14 = vand.u32 2147483647, %v6299_v5  ;;  %v1427_v19 = vand.u32 2147483647, %v6307_v47 }
 0x157   : > { %v1214_v21 = vpop.permute.xlu1 %1213  ;;  %v1212_v51 = vpop.permute.xlu0 %1211 }
 0x158   : > { %v1304_v53 = vadd.f32 %v1214_v21, %v9415_v22  ;;  %v1303_v55 = vadd.f32 %v1212_v51, %v9416_v18  ;;  %v6312_v26 = vadd.f32 -1.0, %v1334_v17  ;;  %v6314_v27 = vadd.f32 -1.0, %v1333_v49 }
 0x159   : > { %1777 = vrot.lane.b32.xlu1 %v1010_v43, %s5387_s21  ;;  %1775 = vrot.lane.b32.xlu0 %v1009_v13, %s5387_s21  ;;  %v1460_v35 = vsub.f32 0.0, %v1428_v14  ;;  %v1459_v59 = vsub.f32 0.0, %v1427_v19  ;;  %v9419_v43 = vld [vmem:[#allocation15_spill] sm:$0xff] }
 0x15a   : > { %v1336_v56 = vmul.f32 0.5, %v1304_v53  ;;  %v1335_v28 = vmul.f32 0.5, %v1303_v55  ;;  %v1430_v1 = vand.u32 2147483647, %v6312_v26  ;;  %v1429_v34 = vand.u32 2147483647, %v6314_v27 }
 0x15b   : > { %v1218_v57 = vpop.permute.xlu1 %1217  ;;  %v1216_v62 = vpop.permute.xlu0 %1215  ;;  %v1493_v17 = vmul.f32 1.442695, %v1460_v35  ;;  %v1491_v14 = vmul.f32 1.442695, %v1459_v59 }
 0x15c   : > { %v1306_v31 = vadd.f32 %v1218_v57, %v9417_v29  ;;  %v1305_v15 = vadd.f32 %v1216_v62, %v9418_v58  ;;  %v6323_v60 = vadd.f32 -1.0, %v1336_v56  ;;  %v6325_v10 = vadd.f32 -1.0, %v1335_v28 }
 0x15d   : > { %v1462_v49 = vsub.f32 0.0, %v1430_v1  ;;  %v1461_v21 = vsub.f32 0.0, %v1429_v34  ;;  %v9421_v1 = vld [vmem:[#allocation17_spill] sm:$0xff]  ;;  %5014 = vpow2.f32 %v1493_v17 }
 0x15e   : > { %v1338_v37 = vmul.f32 0.5, %v1306_v31  ;;  %v1337_v2 = vmul.f32 0.5, %v1305_v15  ;;  %v1432_v53 = vand.u32 2147483647, %v6323_v60  ;;  %v1431_v28 = vand.u32 2147483647, %v6325_v10 }
 0x15f   : > { %v1222_v39 = vpop.permute.xlu1 %1221  ;;  %v1220_v41 = vpop.permute.xlu0 %1219  ;;  %v1497_v58 = vmul.f32 1.442695, %v1462_v49  ;;  %v1495_v15 = vmul.f32 1.442695, %v1461_v21  ;;  %5016 = vpow2.f32 %v1491_v14 }
 0x160   : > { %v1308_v11 = vadd.f32 %v1222_v39, %v9419_v43  ;;  %v1307_v13 = vadd.f32 %v1220_v41, %v9420_v45  ;;  %v6330_v51 = vadd.f32 -1.0, %v1338_v37  ;;  %v6334_v18 = vadd.f32 -1.0, %v1337_v2  ;;  %v9422_v37 = vld [vmem:[#allocation18_spill] sm:$0xff] }
 0x161   : > { %v1464_v2 = vsub.f32 0.0, %v1432_v53  ;;  %5018 = vpow2.f32 %v1497_v58 }
 0x162   : > { %v1340_v55 = vmul.f32 0.5, %v1308_v11  ;;  %v1434_v29 = vand.u32 2147483647, %v6330_v51  ;;  %v1339_v35 = vmul.f32 0.5, %v1307_v13  ;;  %v1433_v39 = vand.u32 2147483647, %v6334_v18 }
 0x163   : > { %v1226_v57 = vpop.permute.xlu1 %1225  ;;  %v1224_v62 = vpop.permute.xlu0 %1223  ;;  %v1463_v11 = vsub.f32 0.0, %v1431_v28  ;;  %5020 = vpow2.f32 %v1495_v15  ;;  %v1501_v28 = vmul.f32 1.442695, %v1464_v2 }
 0x164   : > { %v6340_v31 = vadd.f32 -1.0, %v1340_v55  ;;  %v1310_v34 = vadd.f32 %v1226_v57, %v9421_v1  ;;  %v1309_v59 = vadd.f32 %v1224_v62, %v9422_v37  ;;  %v6345_v41 = vadd.f32 -1.0, %v1339_v35  ;;  %v9424_v62 = vld [vmem:[#allocation19_spill] sm:$0xff]  ;;  %v9425_v1 = vld [vmem:[#allocation20_spill] sm:$0xff] }
 0x165   : > { %v1466_v17 = vsub.f32 0.0, %v1434_v29  ;;  %v1465_v37 = vsub.f32 0.0, %v1433_v39  ;;  %5022 = vpow2.f32 %v1501_v28 }
 0x166   : > { %v1342_v43 = vmul.f32 0.5, %v1310_v34  ;;  %v1436_v45 = vand.u32 2147483647, %v6340_v31  ;;  %v1341_v55 = vmul.f32 0.5, %v1309_v59  ;;  %v1435_v49 = vand.u32 2147483647, %v6345_v41 }
 0x167   : > { %v1230_v19 = vpop.permute.xlu1 %1229  ;;  %v1228_v13 = vpop.permute.xlu0 %1227  ;;  %v1499_v59 = vmul.f32 1.442695, %v1463_v11  ;;  %v1505_v8 = vmul.f32 1.442695, %v1466_v17  ;;  %v1503_v11 = vmul.f32 1.442695, %v1465_v37 }
 0x168   : > { %v6350_v21 = vadd.f32 -1.0, %v1342_v43  ;;  %v6352_v53 = vadd.f32 -1.0, %v1341_v55  ;;  %v1312_v35 = vadd.f32 %v1230_v19, %v9424_v62  ;;  %v1311_v14 = vadd.f32 %v1228_v13, %v9425_v1  ;;  %v9428_v13 = vld [vmem:[#allocation22_spill] sm:$0xff] }
 0x169   : > { %v1468_v56 = vsub.f32 0.0, %v1436_v45  ;;  %v1467_v58 = vsub.f32 0.0, %v1435_v49  ;;  %5024 = vpow2.f32 %v1499_v59 }
 0x16a   : > { %9423 = vst [vmem:[#allocation7_spill] sm:$0xff] %v6352_v53  ;;  %v1438_v29 = vand.u32 2147483647, %v6350_v21  ;;  %v1344_v57 = vmul.f32 0.5, %v1312_v35  ;;  %v1343_v55 = vmul.f32 0.5, %v1311_v14  ;;  %v5015_v35 = vpop.eup %5014  ;;  %5026 = vpow2.f32 %v1505_v8 }
 0x16b   : > { %v1234_v22 = vpop.permute.xlu1 %1233  ;;  %v1232_v43 = vpop.permute.xlu0 %1231  ;;  %v1437_v15 = vand.u32 2147483647, %v6352_v53  ;;  %v1509_v17 = vmul.f32 1.442695, %v1468_v56  ;;  %5028 = vpow2.f32 %v1503_v11  ;;  %v9433_v11 = vld [vmem:[#allocation25_spill] sm:$0xff]  ;;  %v9434_v56 = vld [vmem:[#allocation26_spill] sm:$0xff] }
 0x16c   : > { %v1314_v25 = vadd.f32 %v1234_v22, %v9426_v54  ;;  %v6361_v2 = vadd.f32 -1.0, %v1344_v57  ;;  %v1313_v39 = vadd.f32 %v1232_v43, %v9428_v13  ;;  %v6364_v45 = vadd.f32 -1.0, %v1343_v55  ;;  %v6369_v34 = vpop.eup %5016  ;;  %v9431_v43 = vld [vmem:[#allocation23_spill] sm:$0xff]  ;;  %v9432_v55 = vld [vmem:[#allocation24_spill] sm:$0xff] }
 0x16d   : > { %v1470_v49 = vsub.f32 0.0, %v1438_v29  ;;  %v1507_v22 = vmul.f32 1.442695, %v1467_v58  ;;  %v1469_v28 = vsub.f32 0.0, %v1437_v15  ;;  %v6378_v58 = vpop.eup %5018  ;;  %5030 = vpow2.f32 %v1509_v17 }
 0x16e   : > { %9427 = vst [vmem:[#allocation8_spill] sm:$0xff] %v6361_v2  ;;  %9429 = vst [vmem:[#allocation31_spill] sm:$0xff] %v6364_v45  ;;  %v1346_v62 = vmul.f32 0.5, %v1314_v25  ;;  %v1345_v1 = vmul.f32 0.5, %v1313_v39  ;;  %v1440_v19 = vand.u32 2147483647, %v6361_v2  ;;  %v6381_v23 = vpop.eup %5020 }
 0x16f   : > { %v1238_v14 = vpop.permute.xlu1 %1237  ;;  %v1236_v54 = vpop.permute.xlu0 %1235  ;;  %v1439_v8 = vand.u32 2147483647, %v6364_v45  ;;  %v1513_v13 = vmul.f32 1.442695, %v1470_v49  ;;  %5032 = vpow2.f32 %v1507_v22 }
 0x170   : > { %v6367_v57 = vadd.f32 -1.0, %v1346_v62  ;;  %v6371_v37 = vadd.f32 -1.0, %v1345_v1  ;;  %v1316_v25 = vadd.f32 %v1238_v14, %v9431_v43  ;;  %v1315_v59 = vadd.f32 %v1236_v54, %v9432_v55 }
 0x171   : > { %v1472_v39 = vsub.f32 0.0, %v1440_v19  ;;  %v1511_v55 = vmul.f32 1.442695, %v1469_v28  ;;  %v1471_v19 = vsub.f32 0.0, %v1439_v8  ;;  %5034 = vpow2.f32 %v1513_v13 }
 0x172   : > { %9430 = vst [vmem:[#allocation3_spill] sm:$0xff] %v6367_v57  ;;  %v1442_v62 = vand.u32 2147483647, %v6367_v57  ;;  %v1348_v15 = vmul.f32 0.5, %v1316_v25  ;;  %v1441_v14 = vand.u32 2147483647, %v6371_v37 }
 0x173   : > { %v1242_v1 = vpop.permute.xlu1 %1241  ;;  %v1240_v52 = vpop.permute.xlu0 %1239  ;;  %v1347_v54 = vmul.f32 0.5, %v1315_v59  ;;  %v1517_v17 = vmul.f32 1.442695, %v1472_v39  ;;  %v6391_v59 = vadd.f32 1.0, %v5015_v35  ;;  %5036 = vpow2.f32 %v1511_v55  ;;  %v9436_v39 = vld [vmem:[#allocation28_spill] sm:$0xff] }
 0x174   : > { %v1318_v43 = vadd.f32 %v1242_v1, %v9433_v11  ;;  %v6385_v29 = vadd.f32 -1.0, %v1348_v15  ;;  %v1317_v49 = vadd.f32 %v1240_v52, %v9434_v56  ;;  %v1474_v50 = vsub.f32 0.0, %v1442_v62  ;;  %v6393_v1 = vpop.eup %5022  ;;  %v9435_v15 = vld [vmem:[#allocation27_spill] sm:$0xff] }
 0x175   : > { %v6388_v24 = vadd.f32 -1.0, %v1347_v54  ;;  %v1473_v22 = vsub.f32 0.0, %v1441_v14  ;;  %v6399_v8 = vpop.eup %5024  ;;  %v1515_v35 = vmul.f32 1.442695, %v1471_v19  ;;  %5038 = vpow2.f32 %v1517_v17 }
 0x176   : > { %v1350_v25 = vmul.f32 0.5, %v1318_v43  ;;  %v1444_v28 = vand.u32 2147483647, %v6385_v29  ;;  %v1349_v62 = vmul.f32 0.5, %v1317_v49  ;;  %v6403_v11 = vpop.eup %5026  ;;  %v1521_v43 = vmul.f32 1.442695, %v1474_v50 }
 0x177   : > { %v1246_v20 = vpop.permute.xlu1 %1245  ;;  %v1244_v46 = vpop.permute.xlu0 %1243  ;;  %v1443_v52 = vand.u32 2147483647, %v6388_v24  ;;  %v9437_v49 = vld [vmem:[#allocation29_spill] sm:$0xff]  ;;  %5040 = vpow2.f32 %v1515_v35 }
 0x178   : > { %v6397_v56 = vadd.f32 -1.0, %v1350_v25  ;;  %v1320_v13 = vadd.f32 %v1246_v20, %v9435_v15  ;;  %v1319_v54 = vadd.f32 %v1244_v46, %v9436_v39  ;;  %v1476_v48 = vsub.f32 0.0, %v1444_v28  ;;  %v6408_v55 = vpop.eup %5028  ;;  %v9438_v15 = vld [vmem:[#allocation30_spill] sm:$0xff] }
 0x179   : > { %v1475_v14 = vsub.f32 0.0, %v1443_v52  ;;  %v6406_v44 = vadd.f32 -1.0, %v1349_v62  ;;  %v1519_v20 = vmul.f32 1.442695, %v1473_v22  ;;  %v6415_v62 = vpop.eup %5030  ;;  %5042 = vpow2.f32 %v1521_v43  ;;  %v9439_v43 = vld [vmem:[#allocation33_spill] sm:$0xff] }
 0x17a   : > { %v1446_v16 = vand.u32 2147483647, %v6397_v56  ;;  %v1352_v25 = vmul.f32 0.5, %v1320_v13  ;;  %v1351_v12 = vmul.f32 0.5, %v1319_v54  ;;  %v1525_v19 = vmul.f32 1.442695, %v1476_v48  ;;  %v6419_v7 = vpop.eup %5032 }
 0x17b   : > { %v1250_v42 = vpop.permute.xlu1 %1249  ;;  %v1248_v9 = vpop.permute.xlu0 %1247  ;;  %v1445_v28 = vand.u32 2147483647, %v6406_v44  ;;  %v1523_v17 = vmul.f32 1.442695, %v1475_v14  ;;  %5044 = vpow2.f32 %v1519_v20 }
 0x17c   : > { %v1322_v46 = vadd.f32 %v1250_v42, %v9437_v49  ;;  %v1321_v39 = vadd.f32 %v1248_v9, %v9438_v15  ;;  %v1478_v50 = vsub.f32 0.0, %v1446_v16  ;;  %v6413_v52 = vadd.f32 -1.0, %v1352_v25  ;;  %v6425_v35 = vpop.eup %5034 }
 0x17d   : > { %v6417_v13 = vadd.f32 -1.0, %v1351_v12  ;;  %v1477_v22 = vsub.f32 0.0, %v1445_v28  ;;  %5046 = vpow2.f32 %v1525_v19  ;;  %v6432_v28 = vpop.eup %5036 }
 0x17e   : > { %v1354_v54 = vmul.f32 0.5, %v1322_v46  ;;  %v1353_v40 = vmul.f32 0.5, %v1321_v39  ;;  %v1529_v42 = vmul.f32 1.442695, %v1478_v50  ;;  %v1448_v16 = vand.u32 2147483647, %v6413_v52 }
 0x17f   : > { %v1254_v9 = vpop.permute.xlu1 %1253  ;;  %v1252_v48 = vpop.permute.xlu0 %1251  ;;  %v1447_v25 = vand.u32 2147483647, %v6417_v13  ;;  %v1527_v15 = vmul.f32 1.442695, %v1477_v22  ;;  %5048 = vpow2.f32 %v1523_v17 }
 0x180   : > { %v6423_v49 = vadd.f32 -1.0, %v1354_v54  ;;  %v6428_v46 = vadd.f32 -1.0, %v1353_v40  ;;  %v1324_v14 = vadd.f32 %v1254_v9, %v9439_v43  ;;  %v1480_v39 = vsub.f32 0.0, %v1448_v16  ;;  %v6441_v33 = vpop.eup %5038 }
 0x181   : > { %v1479_v50 = vsub.f32 0.0, %v1447_v25  ;;  %5050 = vpow2.f32 %v1529_v42  ;;  %v1323_v9 = vadd.f32 %v1252_v48, %v9440_v0  ;;  %v9442_v25 = vld [vmem:[#allocation37_spill] sm:$0xff]  ;;  %v9445_v42 = vld [vmem:[#allocation42_spill] sm:$0xff] }
 0x182   : > { %v1450_v20 = vand.u32 2147483647, %v6423_v49  ;;  %v1449_v54 = vand.u32 2147483647, %v6428_v46  ;;  %v1356_v4 = vmul.f32 0.5, %v1324_v14  ;;  %5052 = vpow2.f32 %v1527_v15 }
 0x183   : > { %v1258_v36 = vpop.permute.xlu1 %1257  ;;  %v1256_v12 = vpop.permute.xlu0 %1255  ;;  %v1533_v40 = vmul.f32 1.442695, %v1480_v39  ;;  %v1531_v17 = vmul.f32 1.442695, %v1479_v50  ;;  %v1355_v38 = vmul.f32 0.5, %v1323_v9  ;;  %v1555_v14 = vadd.f32 1.0, %v6369_v34 }
 0x184   : > { %v1482_v19 = vsub.f32 0.0, %v1450_v20  ;;  %v1481_v22 = vsub.f32 0.0, %v1449_v54  ;;  %v6437_v16 = vadd.f32 -1.0, %v1356_v4  ;;  %v1326_v43 = vadd.f32 %v1258_v36, %v9442_v25  ;;  %v6447_v20 = vpop.eup %5040  ;;  %v9444_v9 = vld [vmem:[#allocation41_spill] sm:$0xff] }
 0x185   : > { %v1325_v3 = vadd.f32 %v1256_v12, %v9443_v32  ;;  %5054 = vpow2.f32 %v1533_v40  ;;  %v6449_v32 = vadd.f32 -1.0, %v1355_v38  ;;  %v6451_v50 = vpop.eup %5042 }
 0x186   : > { %9441 = vst [vmem:[#allocation32_spill] sm:$0xff] %v6437_v16  ;;  %v1452_v0 = vand.u32 2147483647, %v6437_v16  ;;  %v1537_v36 = vmul.f32 1.442695, %v1482_v19  ;;  %v1358_v12 = vmul.f32 0.5, %v1326_v43  ;;  %v6455_v40 = vpop.eup %5044  ;;  %5056 = vpow2.f32 %v1531_v17 }
 0x187   : > { %v1262_v4 = vpop.permute.xlu1 %1261  ;;  %v1260_v48 = vpop.permute.xlu0 %1259  ;;  %v1357_v15 = vmul.f32 0.5, %v1325_v3  ;;  %v1535_v54 = vmul.f32 1.442695, %v1481_v22  ;;  %v1451_v61 = vand.u32 2147483647, %v6449_v32  ;;  %5058 = vlog2.f32 %v6391_v59 }
 0x188   : > { %v1484_v34 = vsub.f32 0.0, %v1452_v0  ;;  %v1328_v25 = vadd.f32 %v1262_v4, %v9444_v9  ;;  %v1327_v39 = vadd.f32 %v1260_v48, %v9445_v42  ;;  %v6458_v6 = vadd.f32 -1.0, %v1358_v12  ;;  %v6462_v38 = vpop.eup %5046  ;;  %v9448_v42 = vld [vmem:[#allocation45_spill] sm:$0xff] }
 0x189   : > { %v6460_v19 = vadd.f32 -1.0, %v1357_v15  ;;  %5060 = vpow2.f32 %v1537_v36  ;;  %v1483_v4 = vsub.f32 0.0, %v1451_v61  ;;  %v6467_v48 = vpop.eup %5048 }
 0x18a   : > { %v1541_v3 = vmul.f32 1.442695, %v1484_v34  ;;  %v1360_v43 = vmul.f32 0.5, %v1328_v25  ;;  %v1359_v30 = vmul.f32 0.5, %v1327_v39  ;;  %v1454_v17 = vand.u32 2147483647, %v6458_v6 }
 0x18b   : > { %v1266_v22 = vpop.permute.xlu1 %1265  ;;  %v1264_v0 = vpop.permute.xlu0 %1263  ;;  %5062 = vpow2.f32 %v1535_v54  ;;  %v1453_v12 = vand.u32 2147483647, %v6460_v19  ;;  %v1539_v9 = vmul.f32 1.442695, %v1483_v4 }
 0x18c   : > { %v6470_v15 = vadd.f32 -1.0, %v1360_v43  ;;  %v6472_v34 = vadd.f32 -1.0, %v1359_v30  ;;  %v6474_v39 = vpop.eup %5050  ;;  %v1486_v25 = vsub.f32 0.0, %v1454_v17  ;;  %v1330_v59 = vadd.f32 %v1266_v22, %v6142_v63 }
 0x18d   : > { %v1329_v36 = vadd.f32 %v1264_v0, %v9448_v42  ;;  %5064 = vpow2.f32 %v1541_v3  ;;  %v1485_v61 = vsub.f32 0.0, %v1453_v12  ;;  %v1558_v43 = vadd.f32 1.0, %v6378_v58  ;;  %v6482_v2 = vpop.eup %5052 }
 0x18e   : > { %9446 = vst [vmem:[#allocation4_spill] sm:$0xff] %v6470_v15  ;;  %9447 = vst [vmem:[#allocation9_spill] sm:$0xff] %v6472_v34  ;;  %v1456_v57 = vand.u32 2147483647, %v6470_v15  ;;  %5066 = vpow2.f32 %v1539_v9  ;;  %v1545_v30 = vmul.f32 1.442695, %v1486_v25 }
 0x18f   : > { %v1718_v45 = vpop.permute.xlu1 %1717  ;;  %v6479_v54 = vpop.permute.xlu0 %1715  ;;  %v1455_v4 = vand.u32 2147483647, %v6472_v34  ;;  %v1362_v17 = vmul.f32 0.5, %v1330_v59  ;;  %v1543_v63 = vmul.f32 1.442695, %v1485_v61  ;;  %v1361_v3 = vmul.f32 0.5, %v1329_v36 }
 0x190   : > { %v6485_v53 = vpop.eup %5054  ;;  %v1488_v22 = vsub.f32 0.0, %v1456_v57  ;;  %5068 = vlog2.f32 %v1555_v14  ;;  %v1557_v25 = vadd.f32 1.0, %v6381_v23  ;;  %v1560_v36 = vadd.f32 1.0, %v6393_v1 }
 0x191   : > { %5070 = vpow2.f32 %v1545_v30  ;;  %v1487_v42 = vsub.f32 0.0, %v1455_v4  ;;  %v6488_v12 = vadd.f32 -1.0, %v1362_v17  ;;  %v6490_v15 = vadd.f32 -1.0, %v1361_v3  ;;  %v6497_v61 = vpop.eup %5056 }
 0x192   : > { %5072 = vpow2.f32 %v1543_v63  ;;  %v1549_v58 = vmul.f32 1.442695, %v1488_v22  ;;  %v5059_v30 = vpop.eup %5058  ;;  %v1559_v63 = vadd.f32 1.0, %v6399_v8 }
 0x193   : > { %9449 = vst [vmem:[#allocation10_spill] sm:$0xff] %v6488_v12  ;;  %9450 = vst [vmem:[#allocation35_spill] sm:$0xff] %v6490_v15  ;;  %v6492_v9 = vpop.permute.xlu1 %1721  ;;  %v6495_v59 = vpop.permute.xlu0 %1719  ;;  %v1547_v57 = vmul.f32 1.442695, %v1487_v42  ;;  %v1458_v14 = vand.u32 2147483647, %v6488_v12  ;;  %5074 = vlog2.f32 %v1558_v43 }
 0x194   : > { %5076 = vpow2.f32 %v1549_v58  ;;  %v1457_v17 = vand.u32 2147483647, %v6490_v15  ;;  %v6504_v22 = vpop.eup %5060  ;;  %v1590_v42 = vmul.f32 0.6931472, %v5059_v30  ;;  %v9451_v15 = vmax.f32 %v6299_v5, 0.0 }
 0x195   : > { %5078 = vpow2.f32 %v1547_v57  ;;  %v1490_v3 = vsub.f32 0.0, %v1458_v14  ;;  %v6507_v0 = vpop.eup %5062  ;;  %v1562_v57 = vadd.f32 1.0, %v6403_v11  ;;  %v1564_v5 = vadd.f32 1.0, %v6415_v62 }
 0x196   : > { %v1489_v12 = vsub.f32 0.0, %v1457_v17  ;;  %5080 = vlog2.f32 %v1557_v25  ;;  %v1652_v34 = vadd.f32 %v1590_v42, %v9451_v15  ;;  %v1561_v17 = vadd.f32 1.0, %v6408_v55 }
 0x197   : > { %v6511_v58 = vpop.permute.xlu1 %1725  ;;  %v6513_v4 = vpop.permute.xlu0 %1723  ;;  %v1553_v8 = vmul.f32 1.442695, %v1490_v3  ;;  %5082 = vlog2.f32 %v1560_v36  ;;  %v9452_v36 = vmax.f32 %v6307_v47, 0.0  ;;  %v1567_v47 = vadd.f32 1.0, %v6447_v20 }
 0x198   : > { %v6518_v14 = vpop.eup %5064  ;;  %v1551_v43 = vmul.f32 1.442695, %v1489_v12  ;;  %5084 = vlog2.f32 %v1559_v63  ;;  %v1812_v3 = vmul.f32 %v1718_v45, %v1652_v34  ;;  %v1563_v12 = vadd.f32 1.0, %v6419_v7 }
 0x199   : > { %v6522_v25 = vpop.eup %5066  ;;  %5086 = vpow2.f32 %v1553_v8 }
 0x19a   : > { %v5069_v15 = vpop.eup %5068  ;;  %5088 = vpow2.f32 %v1551_v43  ;;  %v1844_v30 = vsub.f32 0.0, %v1812_v3  ;;  %v1566_v43 = vadd.f32 1.0, %v6425_v35  ;;  %v1565_v3 = vadd.f32 1.0, %v6432_v28 }
 0x19b   : > { %v6528_v42 = vpop.permute.xlu1 %1729  ;;  %v6531_v63 = vpop.eup %5070  ;;  %v1588_v1 = vmul.f32 0.6931472, %v5069_v15  ;;  %5090 = vlog2.f32 %v1562_v57 }
 0x19c   : > { %v6534_v45 = vpop.permute.xlu0 %1727  ;;  %v6536_v62 = vpop.eup %5072  ;;  %5092 = vlog2.f32 %v1561_v17  ;;  %v1877_v7 = vmul.f32 1.442695, %v1844_v30  ;;  %v1568_v17 = vadd.f32 1.0, %v6441_v33  ;;  %v9453_v30 = vmax.f32 %v6312_v26, 0.0 }
 0x19d   : > { %v5075_v11 = vpop.eup %5074  ;;  %v1651_v23 = vadd.f32 %v1588_v1, %v9452_v36  ;;  %5094 = vlog2.f32 %v1564_v5  ;;  %v1570_v1 = vadd.f32 1.0, %v6451_v50  ;;  %v1569_v36 = vadd.f32 1.0, %v6455_v40 }
 0x19e   : > { %v6544_v57 = vpop.eup %5076  ;;  %v1594_v55 = vmul.f32 0.6931472, %v5075_v11  ;;  %5096 = vlog2.f32 %v1563_v12  ;;  %v1572_v11 = vadd.f32 1.0, %v6462_v38  ;;  %v6568_v40 = vadd.f32 1.0, %v6474_v39 }
 0x19f   : > { %v6547_v16 = vpop.permute.xlu1 %1733  ;;  %v6550_v8 = vpop.eup %5078  ;;  %5098 = vpow2.f32 %v1877_v7  ;;  %v1811_v35 = vmul.f32 %v6479_v54, %v1651_v23  ;;  %v6562_v54 = vadd.f32 1.0, %v6467_v48 }
 0x1a0   : > { %v5081_v28 = vpop.eup %5080  ;;  %v1654_v5 = vadd.f32 %v1594_v55, %v9453_v30  ;;  %5100 = vlog2.f32 %v1566_v43  ;;  %v6559_v34 = vpop.permute.xlu0 %1731  ;;  %v9454_v43 = vmax.f32 %v6314_v27, 0.0 }
 0x1a1   : > { %v5083_v12 = vpop.eup %5082  ;;  %v1843_v33 = vsub.f32 0.0, %v1811_v35  ;;  %v1592_v15 = vmul.f32 0.6931472, %v5081_v28  ;;  %5102 = vlog2.f32 %v1565_v3 }
 0x1a2   : > { %v5085_v20 = vpop.eup %5084  ;;  %v1814_v50 = vmul.f32 %v6492_v9, %v1654_v5  ;;  %v1598_v23 = vmul.f32 0.6931472, %v5083_v12  ;;  %5104 = vlog2.f32 %v1568_v17  ;;  %v9455_v9 = vmax.f32 %v6323_v60, 0.0 }
 0x1a3   : > { %v6565_v26 = vpop.permute.xlu1 %1737  ;;  %v6570_v38 = vpop.eup %5086  ;;  %v1875_v55 = vmul.f32 1.442695, %v1843_v33  ;;  %v1653_v7 = vadd.f32 %v1592_v15, %v9454_v43  ;;  %v1596_v3 = vmul.f32 0.6931472, %v5085_v20  ;;  %5106 = vlog2.f32 %v1567_v47 }
 0x1a4   : > { %v6574_v48 = vpop.eup %5088  ;;  %v1846_v35 = vsub.f32 0.0, %v1814_v50  ;;  %v1656_v28 = vadd.f32 %v1598_v23, %v9455_v9  ;;  %5108 = vlog2.f32 %v1570_v1  ;;  %v6579_v17 = vadd.f32 1.0, %v6482_v2  ;;  %v1736_v23 = vpop.permute.xlu0 %1735 }
 0x1a5   : > { %v5091_v39 = vpop.eup %5090  ;;  %5110 = vpow2.f32 %v1875_v55  ;;  %v1813_v30 = vmul.f32 %v6495_v59, %v1653_v7  ;;  %v9456_v5 = vmax.f32 %v6325_v10, 0.0  ;;  %v6585_v15 = vadd.f32 1.0, %v6485_v53 }
 0x1a6   : > { %v5093_v47 = vpop.eup %5092  ;;  %v1881_v12 = vmul.f32 1.442695, %v1846_v35  ;;  %v1816_v33 = vmul.f32 %v6511_v58, %v1656_v28  ;;  %v1602_v60 = vmul.f32 0.6931472, %v5091_v39  ;;  %5112 = vlog2.f32 %v1569_v36 }
 0x1a7   : > { %v1655_v27 = vadd.f32 %v1596_v3, %v9456_v5  ;;  %v5095_v1 = vpop.eup %5094  ;;  %v1845_v20 = vsub.f32 0.0, %v1813_v30  ;;  %v1600_v50 = vmul.f32 0.6931472, %v5093_v47  ;;  %5114 = vlog2.f32 %v1572_v11  ;;  %v1742_v7 = vpop.permute.xlu1 %1741 }
 0x1a8   : > { %v5097_v59 = vpop.eup %5096  ;;  %5116 = vpow2.f32 %v1881_v12  ;;  %v1848_v10 = vsub.f32 0.0, %v1816_v33  ;;  %v9457_v55 = vmax.f32 %v6330_v51, 0.0  ;;  %v1606_v43 = vmul.f32 0.6931472, %v5095_v1 }
 0x1a9   : > { %v1815_v2 = vmul.f32 %v6513_v4, %v1655_v27  ;;  %v6591_v3 = vpop.eup %5098  ;;  %v1879_v58 = vmul.f32 1.442695, %v1845_v20  ;;  %v9458_v36 = vmax.f32 %v6334_v18, 0.0  ;;  %v1604_v28 = vmul.f32 0.6931472, %v5097_v59 }
 0x1aa   : > { %v1658_v53 = vadd.f32 %v1602_v60, %v9457_v55  ;;  %v5101_v4 = vpop.eup %5100  ;;  %v9259_v39 = vsub.f32 1.0, %v6591_v3  ;;  %v1885_v11 = vmul.f32 1.442695, %v1848_v10  ;;  %v9459_v5 = vmax.f32 %v6340_v31, 0.0  ;;  %v1740_v10 = vpop.permute.xlu0 %1739 }
 0x1ab   : > { %v1847_v35 = vsub.f32 0.0, %v1815_v2  ;;  %v1657_v9 = vadd.f32 %v1600_v50, %v9458_v36  ;;  %v5103_v27 = vpop.eup %5102  ;;  %5118 = vpow2.f32 %v1879_v58  ;;  %v9460_v33 = vmax.f32 %v6345_v41, 0.0 }
 0x1ac   : > { %v1818_v30 = vmul.f32 %v6528_v42, %v1658_v53  ;;  %v1660_v51 = vadd.f32 %v1606_v43, %v9459_v5  ;;  %v5105_v18 = vpop.eup %5104  ;;  %5120 = vpow2.f32 %v1885_v11  ;;  %v1610_v2 = vmul.f32 0.6931472, %v5101_v4 }
 0x1ad   : > { %v1883_v47 = vmul.f32 1.442695, %v1847_v35  ;;  %v1817_v12 = vmul.f32 %v6534_v45, %v1657_v9  ;;  %v1659_v60 = vadd.f32 %v1604_v28, %v9460_v33  ;;  %v5107_v50 = vpop.eup %5106  ;;  %v1608_v59 = vmul.f32 0.6931472, %v5103_v27  ;;  %v1746_v35 = vpop.permute.xlu1 %1745  ;;  %v9462_v28 = vld [vmem:[#allocation7_spill] sm:$0xff] }
 0x1ae   : > { %v1850_v1 = vsub.f32 0.0, %v1818_v30  ;;  %v1820_v20 = vmul.f32 %v6547_v16, %v1660_v51  ;;  %v5109_v55 = vpop.eup %5108  ;;  %v9461_v45 = vmax.f32 %v6350_v21, 0.0  ;;  %v1972_v58 = vsub.f32 1.0, %v9259_v39 }
 0x1af   : > { %5122 = vpow2.f32 %v1883_v47  ;;  %v1849_v42 = vsub.f32 0.0, %v1817_v12  ;;  %v1819_v31 = vmul.f32 %v6559_v34, %v1659_v60  ;;  %v6608_v36 = vpop.eup %5110  ;;  %v9463_v4 = vmax.f32 %v9462_v28, 0.0  ;;  %v9466_v28 = vld [vmem:[#allocation31_spill] sm:$0xff] }
 0x1b0   : > { %v1889_v53 = vmul.f32 1.442695, %v1850_v1  ;;  %v1852_v43 = vsub.f32 0.0, %v1820_v20  ;;  %v1662_v41 = vadd.f32 %v1610_v2, %v9461_v45  ;;  %v1614_v34 = vmul.f32 0.6931472, %v5105_v18  ;;  %v5113_v30 = vpop.eup %5112  ;;  %v9464_v20 = vld [vmem:[#allocation8_spill] sm:$0xff] }
 0x1b1   : > { %v1887_v16 = vmul.f32 1.442695, %v1849_v42  ;;  %v1851_v9 = vsub.f32 0.0, %v1819_v31  ;;  %v1661_v11 = vadd.f32 %v1608_v59, %v9463_v4  ;;  %v9258_v5 = vsub.f32 1.0, %v6608_v36  ;;  %v5115_v27 = vpop.eup %5114 }
 0x1b2   : > { %5124 = vpow2.f32 %v1889_v53  ;;  %v1893_v51 = vmul.f32 1.442695, %v1852_v43  ;;  %v1822_v21 = vmul.f32 %v6565_v26, %v1662_v41  ;;  %v2004_v33 = vadd.f32 1e-10, %v1972_v58  ;;  %v6614_v60 = vpop.eup %5116  ;;  %v1744_v53 = vpop.permute.xlu0 %1743 }
 0x1b3   : > { %5126 = vpow2.f32 %v1887_v16  ;;  %v1891_v47 = vmul.f32 1.442695, %v1851_v9  ;;  %v1821_v12 = vmul.f32 %v1736_v23, %v1661_v11  ;;  %v9465_v2 = vmax.f32 %v9464_v20, 0.0  ;;  %v1750_v58 = vpop.permute.xlu1 %1749 }
 0x1b4   : > { %5128 = vpow2.f32 %v1893_v51  ;;  %v1854_v1 = vsub.f32 0.0, %v1822_v21  ;;  %v1971_v18 = vsub.f32 1.0, %v9258_v5  ;;  %v9257_v31 = vsub.f32 1.0, %v6614_v60  ;;  %2069 = vrot.lane.b32.xlu1 %v2004_v33, %s5386_s20 }
 0x1b5   : > { %v1664_v42 = vadd.f32 %v1614_v34, %v9465_v2  ;;  %5130 = vpow2.f32 %v1891_v47  ;;  %v1853_v59 = vsub.f32 0.0, %v1821_v12  ;;  %v1612_v26 = vmul.f32 0.6931472, %v5107_v50  ;;  %v6622_v16 = vpop.eup %5118 }
 0x1b6   : > { %v1897_v23 = vmul.f32 1.442695, %v1854_v1  ;;  %v2003_v45 = vadd.f32 1e-10, %v1971_v18  ;;  %v1618_v41 = vmul.f32 0.6931472, %v5109_v55  ;;  %v6628_v21 = vpop.eup %5120 }
 0x1b7   : > { %v1824_v43 = vmul.f32 %v1742_v7, %v1664_v42  ;;  %v1895_v9 = vmul.f32 1.442695, %v1853_v59  ;;  %v9467_v4 = vmax.f32 %v9466_v28, 0.0  ;;  %v1974_v34 = vsub.f32 1.0, %v9257_v31  ;;  %v9468_v7 = vld [vmem:[#allocation3_spill] sm:$0xff] }
 0x1b8   : > { %v1616_v51 = vmul.f32 0.6931472, %v5113_v30  ;;  %v9255_v50 = vsub.f32 1.0, %v6622_v16  ;;  %5132 = vpow2.f32 %v1897_v23  ;;  %2067 = vrot.lane.b32.xlu0 %v2003_v45, %s5386_s20  ;;  %v9469_v55 = vmax.f32 %v9468_v7, 0.0 }
 0x1b9   : > { %v1663_v11 = vadd.f32 %v1612_v26, %v9467_v4  ;;  %v1856_v47 = vsub.f32 0.0, %v1824_v43  ;;  %v6634_v33 = vpop.eup %5122  ;;  %v9254_v1 = vsub.f32 1.0, %v6628_v21  ;;  %5134 = vpow2.f32 %v1895_v9  ;;  %v6645_v9 = vpop.permute.xlu0 %1747 }
 0x1ba   : > { %v1666_v12 = vadd.f32 %v1618_v41, %v9469_v55  ;;  %v2006_v2 = vadd.f32 1e-10, %v1974_v34  ;;  %v9252_v30 = vsub.f32 1.0, %v6634_v33  ;;  %v1973_v59 = vsub.f32 1.0, %v9255_v50 }
 0x1bb   : > { %v1823_v20 = vmul.f32 %v1740_v10, %v1663_v11  ;;  %v1901_v42 = vmul.f32 1.442695, %v1856_v47  ;;  %v9470_v23 = vmax.f32 %v6371_v37, 0.0  ;;  %v1976_v45 = vsub.f32 1.0, %v9254_v1  ;;  %v6651_v11 = vpop.permute.xlu1 %1753 }
 0x1bc   : > { %v1826_v18 = vmul.f32 %v1746_v35, %v1666_v12  ;;  %2073 = vrot.lane.b32.xlu1 %v2006_v2, %s5386_s20  ;;  %v1622_v41 = vmul.f32 0.6931472, %v5115_v27  ;;  %v6647_v10 = vpop.eup %5124  ;;  %v2005_v35 = vadd.f32 1e-10, %v1973_v59  ;;  %v1975_v4 = vsub.f32 1.0, %v9252_v30 }
 0x1bd   : > { %v1855_v26 = vsub.f32 0.0, %v1823_v20  ;;  %v1665_v43 = vadd.f32 %v1616_v51, %v9470_v23  ;;  %5136 = vpow2.f32 %v1901_v42  ;;  %v6653_v34 = vpop.eup %5126  ;;  %v9251_v37 = vsub.f32 1.0, %v6647_v10 }
 0x1be   : > { %v1858_v28 = vsub.f32 0.0, %v1826_v18  ;;  %v2008_v7 = vadd.f32 1e-10, %v1976_v45  ;;  %v6656_v27 = vpop.eup %5128  ;;  %v9250_v55 = vsub.f32 1.0, %v6653_v34  ;;  %2071 = vrot.lane.b32.xlu0 %v2005_v35, %s5386_s20  ;;  %v9471_v20 = vmax.f32 %v6385_v29, 0.0 }
 0x1bf   : > { %v1899_v51 = vmul.f32 1.442695, %v1855_v26  ;;  %v1825_v47 = vmul.f32 %v1744_v53, %v1665_v43  ;;  %v2007_v42 = vadd.f32 1e-10, %v1975_v4  ;;  %v6662_v18 = vpop.eup %5130  ;;  %v9249_v59 = vsub.f32 1.0, %v6656_v27 }
 0x1c0   : > { %v1905_v12 = vmul.f32 1.442695, %v1858_v28  ;;  %v1668_v2 = vadd.f32 %v1622_v41, %v9471_v20  ;;  %2077 = vrot.lane.b32.xlu1 %v2008_v7, %s5386_s20  ;;  %v1978_v53 = vsub.f32 1.0, %v9251_v37  ;;  %v9247_v26 = vsub.f32 1.0, %v6662_v18  ;;  %v6672_v28 = vpop.permute.xlu0 %1751 }
 0x1c1   : > { %5138 = vpow2.f32 %v1899_v51  ;;  %v1857_v23 = vsub.f32 0.0, %v1825_v47  ;;  %v1977_v29 = vsub.f32 1.0, %v9250_v55  ;;  %v1980_v35 = vsub.f32 1.0, %v9249_v59  ;;  %v6680_v47 = vpop.permute.xlu1 %1757  ;;  %v9475_v59 = vld [vmem:[#allocation35_spill] sm:$0xff] }
 0x1c2   : > { %5140 = vpow2.f32 %v1905_v12  ;;  %v1828_v43 = vmul.f32 %v1750_v58, %v1668_v2  ;;  %v2010_v41 = vadd.f32 1e-10, %v1978_v53  ;;  %v6676_v4 = vpop.eup %5132  ;;  %2075 = vrot.lane.b32.xlu0 %v2007_v42, %s5386_s20  ;;  %v1979_v7 = vsub.f32 1.0, %v9247_v26  ;;  %v9472_v53 = vld [vmem:[#allocation4_spill] sm:$0xff]  ;;  %v9474_v26 = vld [vmem:[#allocation10_spill] sm:$0xff] }
 0x1c3   : > { %v1903_v45 = vmul.f32 1.442695, %v1857_v23  ;;  %5142 = vlog2.f32 %v6562_v54  ;;  %v2009_v58 = vadd.f32 1e-10, %v1977_v29  ;;  %v6684_v54 = vpop.eup %5134  ;;  %v9246_v12 = vsub.f32 1.0, %v6676_v4 }
 0x1c4   : > { %v1860_v51 = vsub.f32 0.0, %v1828_v43  ;;  %5144 = vlog2.f32 %v6568_v40  ;;  %2081 = vrot.lane.b32.xlu1 %v2010_v41, %s5386_s20  ;;  %v2012_v20 = vadd.f32 1e-10, %v1980_v35  ;;  %v1575_v2 = vadd.f32 1.0, %v6497_v61 }
 0x1c5   : > { %5146 = vpow2.f32 %v1903_v45  ;;  %v9248_v42 = vsub.f32 1.0, %v6684_v54  ;;  %v1578_v40 = vadd.f32 1.0, %v6504_v22  ;;  %v1424_v43 = vmax.f32 %v9472_v53, 0.0 }
 0x1c6   : > { %v1909_v23 = vmul.f32 1.442695, %v1860_v51  ;;  %5148 = vlog2.f32 %v6579_v17  ;;  %v1982_v29 = vsub.f32 1.0, %v9246_v12  ;;  %v1577_v45 = vadd.f32 1.0, %v6507_v0  ;;  %2079 = vrot.lane.b32.xlu0 %v2009_v58, %s5386_s20  ;;  %v9473_v12 = vld [vmem:[#allocation9_spill] sm:$0xff] }
 0x1c7   : > { %5150 = vlog2.f32 %v6585_v15  ;;  %v6697_v41 = vpop.eup %5136  ;;  %v2011_v61 = vadd.f32 1e-10, %v1979_v7  ;;  %v1981_v17 = vsub.f32 1.0, %v9248_v42  ;;  %v1580_v22 = vadd.f32 1.0, %v6518_v14  ;;  %v6705_v15 = vpop.permute.xlu0 %1755 }
 0x1c8   : > { %5152 = vpow2.f32 %v1909_v23  ;;  %v9253_v35 = vsub.f32 1.0, %v6697_v41  ;;  %2085 = vrot.lane.b32.xlu1 %v2012_v20, %s5386_s20  ;;  %v2014_v51 = vadd.f32 1e-10, %v1982_v29  ;;  %v1579_v0 = vadd.f32 1.0, %v6522_v25  ;;  %v6710_v7 = vpop.permute.xlu1 %1761 }
 0x1c9   : > { %5154 = vlog2.f32 %v1575_v2  ;;  %v1423_v23 = vmax.f32 %v9473_v12, 0.0  ;;  %v1426_v58 = vmax.f32 %v9474_v26, 0.0  ;;  %v1582_v42 = vadd.f32 1.0, %v6531_v63 }
 0x1ca   : > { %5156 = vlog2.f32 %v1578_v40  ;;  %v1425_v55 = vmax.f32 %v9475_v59, 0.0  ;;  %v1984_v20 = vsub.f32 1.0, %v9253_v35  ;;  %v1581_v2 = vadd.f32 1.0, %v6536_v62  ;;  %2083 = vrot.lane.b32.xlu0 %v2011_v61, %s5386_s20 }
 0x1cb   : > { %v6713_v14 = vpop.eup %5138  ;;  %5158 = vlog2.f32 %v1577_v45  ;;  %v2013_v40 = vadd.f32 1e-10, %v1981_v17  ;;  %v1584_v63 = vadd.f32 1.0, %v6544_v57  ;;  %v1583_v35 = vadd.f32 1.0, %v6550_v8 }
 0x1cc   : > { %v6719_v25 = vpop.eup %5140  ;;  %v9256_v29 = vsub.f32 1.0, %v6713_v14  ;;  %5160 = vlog2.f32 %v1580_v22  ;;  %2089 = vrot.lane.b32.xlu1 %v2014_v51, %s5386_s20  ;;  %v2016_v45 = vadd.f32 1e-10, %v1984_v20  ;;  %v1586_v61 = vadd.f32 1.0, %v6570_v38  ;;  %v6732_v22 = vpop.permute.xlu0 %1759 }
 0x1cd   : > { %v5143_v37 = vpop.eup %5142  ;;  %v9260_v30 = vsub.f32 1.0, %v6719_v25  ;;  %5162 = vlog2.f32 %v1579_v0  ;;  %v1585_v0 = vadd.f32 1.0, %v6574_v48  ;;  %v9476_v20 = vmax.f32 %v6388_v24, 0.0  ;;  %v1766_v38 = vpop.permute.xlu1 %1765 }
 0x1ce   : > { %v5145_v62 = vpop.eup %5144  ;;  %v1620_v1 = vmul.f32 0.6931472, %v5143_v37  ;;  %v1983_v50 = vsub.f32 1.0, %v9256_v29  ;;  %5164 = vlog2.f32 %v1582_v42  ;;  %2087 = vrot.lane.b32.xlu0 %v2013_v40, %s5386_s20  ;;  %v9477_v31 = vmax.f32 %v6397_v56, 0.0 }
 0x1cf   : > { %v6730_v17 = vpop.eup %5146  ;;  %v1626_v57 = vmul.f32 0.6931472, %v5145_v62  ;;  %v1986_v51 = vsub.f32 1.0, %v9260_v30  ;;  %5166 = vlog2.f32 %v1581_v2 }
 0x1d0   : > { %v5149_v8 = vpop.eup %5148  ;;  %v9261_v37 = vsub.f32 1.0, %v6730_v17  ;;  %v1667_v29 = vadd.f32 %v1620_v1, %v9476_v20  ;;  %v2015_v42 = vadd.f32 1e-10, %v1983_v50  ;;  %5168 = vlog2.f32 %v1584_v63  ;;  %2093 = vrot.lane.b32.xlu1 %v2016_v45, %s5386_s20 }
 0x1d1   : > { %v5151_v62 = vpop.eup %5150  ;;  %v1670_v5 = vadd.f32 %v1626_v57, %v9477_v31  ;;  %v1624_v39 = vmul.f32 0.6931472, %v5149_v8  ;;  %v2018_v2 = vadd.f32 1e-10, %v1986_v51  ;;  %5170 = vlog2.f32 %v1583_v35 }
 0x1d2   : > { %v6744_v48 = vpop.eup %5152  ;;  %v1827_v30 = vmul.f32 %v6645_v9, %v1667_v29  ;;  %v1630_v24 = vmul.f32 0.6931472, %v5151_v62  ;;  %v1985_v1 = vsub.f32 1.0, %v9261_v37  ;;  %5172 = vlog2.f32 %v1586_v61  ;;  %2091 = vrot.lane.b32.xlu0 %v2015_v42, %s5386_s20  ;;  %v1764_v37 = vpop.permute.xlu0 %1763 }
 0x1d3   : > { %v5155_v50 = vpop.eup %5154  ;;  %v9277_v40 = vsub.f32 1.0, %v6744_v48  ;;  %v1830_v56 = vmul.f32 %v6651_v11, %v1670_v5  ;;  %v9478_v31 = vmax.f32 %v6406_v44, 0.0  ;;  %5174 = vlog2.f32 %v1585_v0  ;;  %v1770_v42 = vpop.permute.xlu1 %1769 }
 0x1d4   : > { %v5157_v45 = vpop.eup %5156  ;;  %v1859_v35 = vsub.f32 0.0, %v1827_v30  ;;  %v9479_v57 = vmax.f32 %v6413_v52, 0.0  ;;  %v1628_v9 = vmul.f32 0.6931472, %v5155_v50  ;;  %v2017_v29 = vadd.f32 1e-10, %v1985_v1  ;;  %2097 = vrot.lane.b32.xlu1 %v2018_v2, %s5386_s20 }
 0x1d5   : > { %v1669_v63 = vadd.f32 %v1624_v39, %v9478_v31  ;;  %v5159_v8 = vpop.eup %5158  ;;  %v1862_v61 = vsub.f32 0.0, %v1830_v56  ;;  %v1634_v62 = vmul.f32 0.6931472, %v5157_v45  ;;  %v1988_v44 = vsub.f32 1.0, %v9277_v40 }
 0x1d6   : > { %v1672_v51 = vadd.f32 %v1630_v24, %v9479_v57  ;;  %v5161_v39 = vpop.eup %5160  ;;  %v1907_v5 = vmul.f32 1.442695, %v1859_v35  ;;  %v9480_v30 = vmax.f32 %v6417_v13, 0.0  ;;  %v1632_v0 = vmul.f32 0.6931472, %v5159_v8  ;;  %2095 = vrot.lane.b32.xlu0 %v2017_v29, %s5386_s20  ;;  %v1768_v29 = vpop.permute.xlu0 %1767 }
 0x1d7   : > { %v1829_v20 = vmul.f32 %v6672_v28, %v1669_v63  ;;  %v5163_v24 = vpop.eup %5162  ;;  %v1913_v1 = vmul.f32 1.442695, %v1862_v61  ;;  %v9481_v28 = vmax.f32 %v6423_v49, 0.0  ;;  %v1638_v31 = vmul.f32 0.6931472, %v5161_v39 }
 0x1d8   : > { %v1832_v52 = vmul.f32 %v6680_v47, %v1672_v51  ;;  %v1671_v11 = vadd.f32 %v1628_v9, %v9480_v30  ;;  %v5165_v2 = vpop.eup %5164  ;;  %5176 = vpow2.f32 %v1907_v5  ;;  %v9482_v35 = vmax.f32 %v6428_v46, 0.0  ;;  %v9483_v9 = vld [vmem:[#allocation32_spill] sm:$0xff] }
 0x1d9   : > { %v1861_v50 = vsub.f32 0.0, %v1829_v20  ;;  %v1674_v56 = vadd.f32 %v1634_v62, %v9481_v28  ;;  %v5167_v13 = vpop.eup %5166  ;;  %5178 = vpow2.f32 %v1913_v1  ;;  %v9484_v8 = vmax.f32 %v9483_v9, 0.0  ;;  %v1774_v28 = vpop.permute.xlu1 %1773 }
 0x1da   : > { %v1864_v63 = vsub.f32 0.0, %v1832_v52  ;;  %v1831_v45 = vmul.f32 %v6705_v15, %v1671_v11  ;;  %v1673_v47 = vadd.f32 %v1632_v0, %v9482_v35  ;;  %v5169_v61 = vpop.eup %5168  ;;  %v1636_v5 = vmul.f32 0.6931472, %v5163_v24 }
 0x1db   : > { %v1911_v57 = vmul.f32 1.442695, %v1861_v50  ;;  %v1834_v51 = vmul.f32 %v6710_v7, %v1674_v56  ;;  %v1676_v49 = vadd.f32 %v1638_v31, %v9484_v8  ;;  %v5171_v15 = vpop.eup %5170  ;;  %v1642_v30 = vmul.f32 0.6931472, %v5165_v2 }
 0x1dc   : > { %v1917_v20 = vmul.f32 1.442695, %v1864_v63  ;;  %v1863_v62 = vsub.f32 0.0, %v1831_v45  ;;  %v1833_v39 = vmul.f32 %v6732_v22, %v1673_v47  ;;  %v5173_v11 = vpop.eup %5172  ;;  %v9485_v7 = vmax.f32 %v6449_v32, 0.0 }
 0x1dd   : > { %5180 = vpow2.f32 %v1911_v57  ;;  %v1866_v46 = vsub.f32 0.0, %v1834_v51  ;;  %v1836_v52 = vmul.f32 %v1766_v38, %v1676_v49  ;;  %v5175_v56 = vpop.eup %5174  ;;  %v9486_v22 = vmax.f32 %v6458_v6, 0.0 }
 0x1de   : > { %5182 = vpow2.f32 %v1917_v20  ;;  %v1915_v0 = vmul.f32 1.442695, %v1863_v62  ;;  %v1865_v1 = vsub.f32 0.0, %v1833_v39  ;;  %v1675_v50 = vadd.f32 %v1636_v5, %v9485_v7 }
 0x1df   : > { %v1921_v31 = vmul.f32 1.442695, %v1866_v46  ;;  %v1868_v63 = vsub.f32 0.0, %v1836_v52  ;;  %v1678_v24 = vadd.f32 %v1642_v30, %v9486_v22  ;;  %v1640_v45 = vmul.f32 0.6931472, %v5167_v13  ;;  %v1772_v13 = vpop.permute.xlu0 %1771 }
 0x1e0   : > { %5184 = vpow2.f32 %v1915_v0  ;;  %v1919_v35 = vmul.f32 1.442695, %v1865_v1  ;;  %v1835_v38 = vmul.f32 %v1764_v37, %v1675_v50  ;;  %v2020_v2 = vadd.f32 1e-10, %v1988_v44 }
 0x1e1   : > { %5186 = vpow2.f32 %v1921_v31  ;;  %v1925_v47 = vmul.f32 1.442695, %v1868_v63  ;;  %v1838_v57 = vmul.f32 %v1770_v42, %v1678_v24  ;;  %v9487_v51 = vmax.f32 %v6460_v19, 0.0  ;;  %v1778_v42 = vpop.permute.xlu1 %1777 }
 0x1e2   : > { %5188 = vpow2.f32 %v1919_v35  ;;  %v1867_v32 = vsub.f32 0.0, %v1835_v38  ;;  %2101 = vrot.lane.b32.xlu1 %v2020_v2, %s5386_s20  ;;  %v1646_v8 = vmul.f32 0.6931472, %v5169_v61  ;;  %v1644_v49 = vmul.f32 0.6931472, %v5171_v15  ;;  %v6780_v39 = vpop.eup %5176 }
 0x1e3   : > { %v1677_v9 = vadd.f32 %v1640_v45, %v9487_v51  ;;  %5190 = vpow2.f32 %v1925_v47  ;;  %v1870_v6 = vsub.f32 0.0, %v1838_v57  ;;  %v1650_v62 = vmul.f32 0.6931472, %v5173_v11  ;;  %v6786_v46 = vpop.eup %5178  ;;  %v1776_v63 = vpop.permute.xlu0 %1775 }
 0x1e4   : > { %v1923_v37 = vmul.f32 1.442695, %v1867_v32  ;;  %v1680_v44 = vadd.f32 %v1646_v8, %v1424_v43  ;;  %v1679_v19 = vadd.f32 %v1644_v49, %v1423_v23  ;;  %v1648_v5 = vmul.f32 0.6931472, %v5175_v56 }
 0x1e5   : > { %v1837_v20 = vmul.f32 %v1768_v29, %v1677_v9  ;;  %v9276_v61 = vsub.f32 1.0, %v6780_v39  ;;  %v1929_v15 = vmul.f32 1.442695, %v1870_v6  ;;  %v1682_v30 = vadd.f32 %v1650_v62, %v1426_v58 }
 0x1e6   : > { %v9275_v29 = vsub.f32 1.0, %v6786_v46  ;;  %5192 = vpow2.f32 %v1923_v37  ;;  %v1840_v11 = vmul.f32 %v1774_v28, %v1680_v44  ;;  %v1839_v53 = vmul.f32 %v1772_v13, %v1679_v19 }
 0x1e7   : > { %v1869_v52 = vsub.f32 0.0, %v1837_v20  ;;  %v6792_v43 = vpop.eup %5180  ;;  %5194 = vpow2.f32 %v1929_v15  ;;  %v1987_v23 = vsub.f32 1.0, %v9276_v61  ;;  %v1842_v0 = vmul.f32 %v1778_v42, %v1682_v30 }
 0x1e8   : > { %v6796_v1 = vpop.eup %5182  ;;  %v9274_v7 = vsub.f32 1.0, %v6792_v43  ;;  %v1872_v50 = vsub.f32 0.0, %v1840_v11  ;;  %v1871_v26 = vsub.f32 0.0, %v1839_v53  ;;  %v1990_v58 = vsub.f32 1.0, %v9275_v29 }
 0x1e9   : > { %v1927_v12 = vmul.f32 1.442695, %v1869_v52  ;;  %v9273_v28 = vsub.f32 1.0, %v6796_v1  ;;  %v2019_v56 = vadd.f32 1e-10, %v1987_v23  ;;  %v1874_v31 = vsub.f32 0.0, %v1842_v0 }
 0x1ea   : > { %v6802_v22 = vpop.eup %5184  ;;  %v1933_v24 = vmul.f32 1.442695, %v1872_v50  ;;  %v1931_v45 = vmul.f32 1.442695, %v1871_v26  ;;  %v2022_v35 = vadd.f32 1e-10, %v1990_v58  ;;  %v1681_v38 = vadd.f32 %v1648_v5, %v1425_v55 }
 0x1eb   : > { %5196 = vpow2.f32 %v1927_v12  ;;  %9488 = vst [vmem:[#allocation5_spill] sm:$0xff] %v6802_v22  ;;  %v6806_v2 = vpop.eup %5186  ;;  %v9272_v47 = vsub.f32 1.0, %v6802_v22  ;;  %2099 = vrot.lane.b32.xlu0 %v2019_v56, %s5386_s20  ;;  %v1937_v57 = vmul.f32 1.442695, %v1874_v31  ;;  %v1989_v51 = vsub.f32 1.0, %v9274_v7 }
 0x1ec   : > { %9489 = vst [vmem:[#allocation36_spill] sm:$0xff] %v6806_v2  ;;  %v1992_v9 = vsub.f32 1.0, %v9273_v28  ;;  %v6814_v32 = vpop.eup %5188  ;;  %v9271_v8 = vsub.f32 1.0, %v6806_v2  ;;  %5198 = vpow2.f32 %v1933_v24  ;;  %2105 = vrot.lane.b32.xlu1 %v2022_v35, %s5386_s20  ;;  %v1841_v55 = vmul.f32 %v1776_v63, %v1681_v38 }
 0x1ed   : > { %9490 = vst [vmem:[#allocation6_spill] sm:$0xff] %v6814_v32  ;;  %v6818_v59 = vpop.eup %5190  ;;  %v9270_v49 = vsub.f32 1.0, %v6814_v32  ;;  %5200 = vpow2.f32 %v1931_v45  ;;  %v2021_v6 = vadd.f32 1e-10, %v1989_v51  ;;  %v1991_v37 = vsub.f32 1.0, %v9272_v47 }
 0x1ee   : > { %9491 = vst [vmem:[#allocation11_spill] sm:$0xff] %v6818_v59  ;;  %v2024_v20 = vadd.f32 1e-10, %v1992_v9  ;;  %v9269_v13 = vsub.f32 1.0, %v6818_v59  ;;  %5202 = vpow2.f32 %v1937_v57  ;;  %v1873_v62 = vsub.f32 0.0, %v1841_v55  ;;  %v3172_v59 = vld [vmem:[%s7034_s18 + $0x68] sm:$0xff] }
 0x1ef   : > { %2103 = vrot.lane.b32.xlu0 %v2021_v6, %s5386_s20  ;;  %v1994_v44 = vsub.f32 1.0, %v9271_v8  ;;  %v1993_v19 = vsub.f32 1.0, %v9270_v49  ;;  %v2023_v15 = vadd.f32 1e-10, %v1991_v37 }
 0x1f0   : > { %v6829_v42 = vpop.eup %5192  ;;  %v1935_v5 = vmul.f32 1.442695, %v1873_v62  ;;  %2109 = vrot.lane.b32.xlu1 %v2024_v20, %s5386_s20  ;;  %v1996_v52 = vsub.f32 1.0, %v9269_v13 }
 0x1f1   : > { %9492 = vst [vmem:[#allocation12_spill] sm:$0xff] %v6829_v42  ;;  %v6834_v30 = vpop.eup %5194  ;;  %v9268_v11 = vsub.f32 1.0, %v6829_v42  ;;  %v2026_v53 = vadd.f32 1e-10, %v1994_v44  ;;  %v2025_v0 = vadd.f32 1e-10, %v1993_v19 }
 0x1f2   : > { %9493 = vst [vmem:[#allocation13_spill] sm:$0xff] %v6834_v30  ;;  %v9267_v12 = vsub.f32 1.0, %v6834_v30  ;;  %5204 = vpow2.f32 %v1935_v5  ;;  %v2028_v58 = vadd.f32 1e-10, %v1996_v52  ;;  %v3162_v30 = vld [vmem:[%s7034_s18 + $0x18] sm:$0xff]  ;;  %v3164_v42 = vld [vmem:[%s7034_s18 + $0x28] sm:$0xff] }
 0x1f3   : > { %2107 = vrot.lane.b32.xlu0 %v2023_v15, %s5386_s20  ;;  %v1995_v50 = vsub.f32 1.0, %v9268_v11 }
 0x1f4   : > { %2113 = vrot.lane.b32.xlu1 %v2026_v53, %s5386_s20  ;;  %v1998_v56 = vsub.f32 1.0, %v9267_v12 }
 0x1f5   : > { %v6838_v23 = vpop.eup %5196  ;;  %v2027_v45 = vadd.f32 1e-10, %v1995_v50 }
 0x1f6   : > { %9494 = vst [vmem:[#allocation14_spill] sm:$0xff] %v6838_v23  ;;  %v9266_v26 = vsub.f32 1.0, %v6838_v23  ;;  %v6847_v31 = vpop.eup %5198  ;;  %v2030_v51 = vadd.f32 1e-10, %v1998_v56  ;;  %v3163_v23 = vld [vmem:[%s7034_s18 + $0x20] sm:$0xff] }
 0x1f7   : > { %9495 = vst [vmem:[#allocation15_spill] sm:$0xff] %v6847_v31  ;;  %v6849_v63 = vpop.eup %5200  ;;  %v9265_v24 = vsub.f32 1.0, %v6847_v31  ;;  %2111 = vrot.lane.b32.xlu0 %v2025_v0, %s5386_s20  ;;  %v3161_v31 = vld [vmem:[%s7034_s18 + $0x10] sm:$0xff] }
 0x1f8   : > { %9496 = vst [vmem:[#allocation16_spill] sm:$0xff] %v6849_v63  ;;  %v1997_v35 = vsub.f32 1.0, %v9266_v26  ;;  %v6855_v38 = vpop.eup %5202  ;;  %v9264_v57 = vsub.f32 1.0, %v6849_v63  ;;  %2117 = vrot.lane.b32.xlu1 %v2028_v58, %s5386_s20 }
 0x1f9   : > { %9497 = vst [vmem:[#allocation17_spill] sm:$0xff] %v6855_v38  ;;  %v9263_v9 = vsub.f32 1.0, %v6855_v38  ;;  %v2000_v55 = vsub.f32 1.0, %v9265_v24 }
 0x1fa   : > { %v2029_v6 = vadd.f32 1e-10, %v1997_v35  ;;  %v1999_v20 = vsub.f32 1.0, %v9264_v57 }
 0x1fb   : > { %2115 = vrot.lane.b32.xlu0 %v2027_v45, %s5386_s20  ;;  %v2032_v37 = vadd.f32 1e-10, %v2000_v55  ;;  %v2002_v44 = vsub.f32 1.0, %v9263_v9 }
 0x1fc   : > { %v6865_v62 = vpop.eup %5204  ;;  %2121 = vrot.lane.b32.xlu1 %v2030_v51, %s5386_s20  ;;  %v2031_v5 = vadd.f32 1e-10, %v1999_v20 }
 0x1fd   : > { %9498 = vst [vmem:[#allocation18_spill] sm:$0xff] %v6865_v62  ;;  %v9262_v19 = vsub.f32 1.0, %v6865_v62  ;;  %v2034_v52 = vadd.f32 1e-10, %v2002_v44 }
 0x1ff   : > { %2119 = vrot.lane.b32.xlu0 %v2029_v6, %s5386_s20  ;;  %v2001_v15 = vsub.f32 1.0, %v9262_v19 }
 0x200   : > { %2125 = vrot.lane.b32.xlu1 %v2032_v37, %s5386_s20 }
 0x201   : > { %v2033_v53 = vadd.f32 1e-10, %v2001_v15 }
 0x203   : > { %2123 = vrot.lane.b32.xlu0 %v2031_v5, %s5386_s20 }
 0x204   : > { %2129 = vrot.lane.b32.xlu1 %v2034_v52, %s5386_s20 }
 0x207   : > { %2127 = vrot.lane.b32.xlu0 %v2033_v53, %s5386_s20 }
 0x226   : > { %v2070_v0 = vpop.permute.xlu1 %2069 }
 0x227   : > { %v6879_v50 = vsel %vm2163_vm0, 1.0, %v2070_v0 }
 0x228   : > { %2230 = vrot.lane.b32.xlu1 %v6879_v50, %s5386_s20 }
 0x22a   : > { %v2068_v58 = vpop.permute.xlu0 %2067 }
 0x22b   : > { %v6884_v56 = vsel %vm2163_vm0, 1.0, %v2068_v58 }
 0x22c   : > { %2228 = vrot.lane.b32.xlu0 %v6884_v56, %s5386_s20 }
 0x22e   : > { %v2074_v45 = vpop.permute.xlu1 %2073 }
 0x22f   : > { %v6889_v35 = vsel %vm2163_vm0, 1.0, %v2074_v45 }
 0x230   : > { %2234 = vrot.lane.b32.xlu1 %v6889_v35, %s5386_s20  ;;  %v2072_v51 = vpop.permute.xlu0 %2071 }
 0x231   : > { %v6894_v55 = vsel %vm2163_vm0, 1.0, %v2072_v51 }
 0x232   : > { %v2078_v6 = vpop.permute.xlu1 %2077  ;;  %2232 = vrot.lane.b32.xlu0 %v6894_v55, %s5386_s20 }
 0x233   : > { %v6899_v20 = vsel %vm2163_vm0, 1.0, %v2078_v6 }
 0x234   : > { %2238 = vrot.lane.b32.xlu1 %v6899_v20, %s5386_s20  ;;  %v2076_v37 = vpop.permute.xlu0 %2075 }
 0x235   : > { %v6904_v44 = vsel %vm2163_vm0, 1.0, %v2076_v37 }
 0x236   : > { %v2082_v5 = vpop.permute.xlu1 %2081  ;;  %2236 = vrot.lane.b32.xlu0 %v6904_v44, %s5386_s20 }
 0x237   : > { %v6909_v15 = vsel %vm2163_vm0, 1.0, %v2082_v5 }
 0x238   : > { %2242 = vrot.lane.b32.xlu1 %v6909_v15, %s5386_s20  ;;  %v2080_v52 = vpop.permute.xlu0 %2079 }
 0x239   : > { %v6914_v53 = vsel %vm2163_vm0, 1.0, %v2080_v52 }
 0x23a   : > { %v2086_v0 = vpop.permute.xlu1 %2085  ;;  %2240 = vrot.lane.b32.xlu0 %v6914_v53, %s5386_s20 }
 0x23b   : > { %v6919_v58 = vsel %vm2163_vm0, 1.0, %v2086_v0 }
 0x23c   : > { %2246 = vrot.lane.b32.xlu1 %v6919_v58, %s5386_s20  ;;  %v2084_v45 = vpop.permute.xlu0 %2083 }
 0x23d   : > { %v6924_v51 = vsel %vm2163_vm0, 1.0, %v2084_v45 }
 0x23e   : > { %v2090_v6 = vpop.permute.xlu1 %2089  ;;  %2244 = vrot.lane.b32.xlu0 %v6924_v51, %s5386_s20 }
 0x23f   : > { %v6929_v37 = vsel %vm2163_vm0, 1.0, %v2090_v6 }
 0x240   : > { %2250 = vrot.lane.b32.xlu1 %v6929_v37, %s5386_s20  ;;  %v2088_v5 = vpop.permute.xlu0 %2087 }
 0x241   : > { %v6934_v52 = vsel %vm2163_vm0, 1.0, %v2088_v5 }
 0x242   : > { %v2094_v0 = vpop.permute.xlu1 %2093  ;;  %2248 = vrot.lane.b32.xlu0 %v6934_v52, %s5386_s20 }
 0x243   : > { %v6939_v45 = vsel %vm2163_vm0, 1.0, %v2094_v0 }
 0x244   : > { %2254 = vrot.lane.b32.xlu1 %v6939_v45, %s5386_s20  ;;  %v2092_v19 = vpop.permute.xlu0 %2091 }
 0x245   : > { %v6944_v6 = vsel %vm2163_vm0, 1.0, %v2092_v19 }
 0x246   : > { %v2098_v9 = vpop.permute.xlu1 %2097  ;;  %2252 = vrot.lane.b32.xlu0 %v6944_v6, %s5386_s20 }
 0x247   : > { %v6949_v5 = vsel %vm2163_vm0, 1.0, %v2098_v9 }
 0x248   : > { %2258 = vrot.lane.b32.xlu1 %v6949_v5, %s5386_s20  ;;  %v2096_v57 = vpop.permute.xlu0 %2095 }
 0x249   : > { %v6954_v0 = vsel %vm2163_vm0, 1.0, %v2096_v57 }
 0x24a   : > { %2256 = vrot.lane.b32.xlu0 %v6954_v0, %s5386_s20 }
 0x254   : > { %v2102_v24 = vpop.permute.xlu1 %2101 }
 0x255   : > { %v6959_v19 = vsel %vm2163_vm0, 1.0, %v2102_v24 }
 0x256   : > { %2262 = vrot.lane.b32.xlu1 %v6959_v19, %s5386_s20 }
 0x25d   : > { %v2100_v26 = vpop.permute.xlu0 %2099 }
 0x25e   : > { %v6964_v9 = vsel %vm2163_vm0, 1.0, %v2100_v26  ;;  %v2106_v12 = vpop.permute.xlu1 %2105 }
 0x25f   : > { %2260 = vrot.lane.b32.xlu0 %v6964_v9, %s5386_s20  ;;  %v6969_v57 = vsel %vm2163_vm0, 1.0, %v2106_v12 }
 0x260   : > { %2266 = vrot.lane.b32.xlu1 %v6969_v57, %s5386_s20 }
 0x261   : > { %v2104_v11 = vpop.permute.xlu0 %2103 }
 0x262   : > { %v6974_v24 = vsel %vm2163_vm0, 1.0, %v2104_v11  ;;  %v2110_v13 = vpop.permute.xlu1 %2109 }
 0x263   : > { %2264 = vrot.lane.b32.xlu0 %v6974_v24, %s5386_s20  ;;  %v6979_v26 = vsel %vm2163_vm0, 1.0, %v2110_v13 }
 0x264   : > { %2270 = vrot.lane.b32.xlu1 %v6979_v26, %s5386_s20 }
 0x265   : > { %v2108_v49 = vpop.permute.xlu0 %2107 }
 0x266   : > { %v6984_v12 = vsel %vm2163_vm0, 1.0, %v2108_v49  ;;  %v2114_v8 = vpop.permute.xlu1 %2113 }
 0x267   : > { %2268 = vrot.lane.b32.xlu0 %v6984_v12, %s5386_s20  ;;  %v6989_v11 = vsel %vm2163_vm0, 1.0, %v2114_v8 }
 0x268   : > { %2274 = vrot.lane.b32.xlu1 %v6989_v11, %s5386_s20 }
 0x269   : > { %v2112_v13 = vpop.permute.xlu0 %2111 }
 0x26a   : > { %v6994_v47 = vsel %vm2163_vm0, 1.0, %v2112_v13  ;;  %v2118_v28 = vpop.permute.xlu1 %2117 }
 0x26b   : > { %2272 = vrot.lane.b32.xlu0 %v6994_v47, %s5386_s20  ;;  %v6999_v49 = vsel %vm2163_vm0, 1.0, %v2118_v28 }
 0x26c   : > { %2278 = vrot.lane.b32.xlu1 %v6999_v49, %s5386_s20 }
 0x26d   : > { %v2116_v7 = vpop.permute.xlu0 %2115 }
 0x26e   : > { %v7004_v8 = vsel %vm2163_vm0, 1.0, %v2116_v7  ;;  %v2122_v29 = vpop.permute.xlu1 %2121 }
 0x26f   : > { %2276 = vrot.lane.b32.xlu0 %v7004_v8, %s5386_s20  ;;  %v7009_v13 = vsel %vm2163_vm0, 1.0, %v2122_v29 }
 0x270   : > { %2282 = vrot.lane.b32.xlu1 %v7009_v13, %s5386_s20 }
 0x271   : > { %v2120_v28 = vpop.permute.xlu0 %2119 }
 0x272   : > { %v7015_v61 = vsel %vm2163_vm0, 1.0, %v2120_v28  ;;  %v2126_v40 = vpop.permute.xlu1 %2125 }
 0x273   : > { %2280 = vrot.lane.b32.xlu0 %v7015_v61, %s5386_s20  ;;  %v7020_v7 = vsel %vm2163_vm0, 1.0, %v2126_v40  ;;  %v3159_v40 = vld [vmem:[%s7034_s18] sm:$0xff] }
 0x274   : > { %2286 = vrot.lane.b32.xlu1 %v7020_v7, %s5386_s20 }
 0x275   : > { %v2124_v29 = vpop.permute.xlu0 %2123 }
 0x276   : > { %v7025_v62 = vsel %vm2163_vm0, 1.0, %v2124_v29  ;;  %v2130_v38 = vpop.permute.xlu1 %2129 }
 0x277   : > { %2284 = vrot.lane.b32.xlu0 %v7025_v62, %s5386_s20  ;;  %v7030_v28 = vsel %vm2163_vm0, 1.0, %v2130_v38  ;;  %v3160_v38 = vld [vmem:[%s7034_s18 + $0x8] sm:$0xff] }
 0x278   : > { %2290 = vrot.lane.b32.xlu1 %v7030_v28, %s5386_s20 }
 0x279   : > { %v2128_v63 = vpop.permute.xlu0 %2127 }
 0x27a   : > { %v7038_v29 = vsel %vm2163_vm0, 1.0, %v2128_v63  ;;  %v3165_v63 = vld [vmem:[%s7034_s18 + $0x30] sm:$0xff] }
 0x27b   : > { %2288 = vrot.lane.b32.xlu0 %v7038_v29, %s5386_s20 }
 0x27c   : > { %3223 = vrot.lane.b32.xlu1 %v3159_v40, %s5387_s21  ;;  %v3167_v40 = vld [vmem:[%s7034_s18 + $0x40] sm:$0xff] }
 0x27f   : > { %3225 = vrot.lane.b32.xlu0 %v3160_v38, %s5387_s21  ;;  %v3166_v38 = vld [vmem:[%s7034_s18 + $0x38] sm:$0xff] }
 0x280   : > { %3227 = vrot.lane.b32.xlu1 %v3161_v31, %s5387_s21  ;;  %v3169_v31 = vld [vmem:[%s7034_s18 + $0x50] sm:$0xff] }
 0x283   : > { %3231 = vrot.lane.b32.xlu0 %v3163_v23, %s5387_s21  ;;  %v3168_v23 = vld [vmem:[%s7034_s18 + $0x48] sm:$0xff] }
 0x284   : > { %3229 = vrot.lane.b32.xlu1 %v3162_v30, %s5387_s21  ;;  %v3171_v30 = vld [vmem:[%s7034_s18 + $0x60] sm:$0xff] }
 0x287   : > { %3235 = vrot.lane.b32.xlu0 %v3165_v63, %s5387_s21  ;;  %v3170_v63 = vld [vmem:[%s7034_s18 + $0x58] sm:$0xff] }
 0x288   : > { %3233 = vrot.lane.b32.xlu1 %v3164_v42, %s5387_s21  ;;  %v3173_v42 = vld [vmem:[%s7034_s18 + $0x70] sm:$0xff] }
 0x28b   : > { %3239 = vrot.lane.b32.xlu0 %v3167_v40, %s5387_s21  ;;  %v3175_v40 = vld [vmem:[%s7034_s18 + $0x80] sm:$0xff] }
 0x28c   : > { %3237 = vrot.lane.b32.xlu1 %v3166_v38, %s5387_s21  ;;  %v3174_v38 = vld [vmem:[%s7034_s18 + $0x78] sm:$0xff] }
 0x28f   : > { %3243 = vrot.lane.b32.xlu0 %v3169_v31, %s5387_s21  ;;  %v3177_v31 = vld [vmem:[%s7034_s18 + $0x90] sm:$0xff] }
 0x290   : > { %3241 = vrot.lane.b32.xlu1 %v3168_v23, %s5387_s21  ;;  %v3176_v23 = vld [vmem:[%s7034_s18 + $0x88] sm:$0xff] }
 0x293   : > { %3247 = vrot.lane.b32.xlu0 %v3171_v30, %s5387_s21 }
 0x294   : > { %3245 = vrot.lane.b32.xlu1 %v3170_v63, %s5387_s21 }
 0x297   : > { %3251 = vrot.lane.b32.xlu0 %v3173_v42, %s5387_s21 }
 0x298   : > { %3249 = vrot.lane.b32.xlu1 %v3172_v59, %s5387_s21 }
 0x29a   : > { %v2231_v32 = vpop.permute.xlu1 %2230 }
 0x29b   : > { %3255 = vrot.lane.b32.xlu0 %v3175_v40, %s5387_s21  ;;  %v2325_v30 = vsel %vm2163_vm0, 1.0, %v2231_v32 }
 0x29c   : > { %3253 = vrot.lane.b32.xlu1 %v3174_v38, %s5387_s21  ;;  %v7081_v63 = vmul.f32 %v2325_v30, %v6879_v50 }
 0x29e   : > { %v2229_v42 = vpop.permute.xlu0 %2228 }
 0x29f   : > { %3259 = vrot.lane.b32.xlu0 %v3177_v31, %s5387_s21  ;;  %v2324_v59 = vsel %vm2163_vm0, 1.0, %v2229_v42 }
 0x2a0   : > { %3257 = vrot.lane.b32.xlu1 %v3176_v23, %s5387_s21  ;;  %v7085_v2 = vmul.f32 %v2324_v59, %v6884_v56 }
 0x2a2   : > { %v2235_v40 = vpop.permute.xlu1 %2234 }
 0x2a3   : > { %v2327_v38 = vsel %vm2163_vm0, 1.0, %v2235_v40  ;;  %2420 = vrot.lane.b32.xlu0 %v7085_v2, %s5388_s14 }
 0x2a4   : > { %2422 = vrot.lane.b32.xlu1 %v7081_v63, %s5388_s14  ;;  %v7093_v32 = vmul.f32 %v2327_v38, %v6889_v35  ;;  %v2233_v50 = vpop.permute.xlu0 %2232 }
 0x2a5   : > { %v2326_v31 = vsel %vm2163_vm0, 1.0, %v2233_v50 }
 0x2a6   : > { %v2239_v23 = vpop.permute.xlu1 %2238  ;;  %v7099_v56 = vmul.f32 %v2326_v31, %v6894_v55 }
 0x2a7   : > { %v2329_v30 = vsel %vm2163_vm0, 1.0, %v2239_v23 }
 0x2a8   : > { %2426 = vrot.lane.b32.xlu1 %v7093_v32, %s5388_s14  ;;  %v7103_v42 = vmul.f32 %v2329_v30, %v6899_v20  ;;  %v2237_v59 = vpop.permute.xlu0 %2236  ;;  %2424 = vrot.lane.b32.xlu0 %v7099_v56, %s5388_s14 }
 0x2a9   : > { %v2328_v35 = vsel %vm2163_vm0, 1.0, %v2237_v59 }
 0x2aa   : > { %v2243_v40 = vpop.permute.xlu1 %2242  ;;  %v7111_v38 = vmul.f32 %v2328_v35, %v6904_v44 }
 0x2ab   : > { %v2331_v55 = vsel %vm2163_vm0, 1.0, %v2243_v40 }
 0x2ac   : > { %2430 = vrot.lane.b32.xlu1 %v7103_v42, %s5388_s14  ;;  %v7115_v50 = vmul.f32 %v2331_v55, %v6909_v15  ;;  %v2241_v20 = vpop.permute.xlu0 %2240  ;;  %2428 = vrot.lane.b32.xlu0 %v7111_v38, %s5388_s14 }
 0x2ad   : > { %v2330_v31 = vsel %vm2163_vm0, 1.0, %v2241_v20 }
 0x2ae   : > { %v2247_v23 = vpop.permute.xlu1 %2246  ;;  %v7123_v30 = vmul.f32 %v2330_v31, %v6914_v53 }
 0x2af   : > { %v2333_v44 = vsel %vm2163_vm0, 1.0, %v2247_v23 }
 0x2b0   : > { %2434 = vrot.lane.b32.xlu1 %v7115_v50, %s5388_s14  ;;  %v7127_v59 = vmul.f32 %v2333_v44, %v6919_v58  ;;  %v2245_v15 = vpop.permute.xlu0 %2244  ;;  %2432 = vrot.lane.b32.xlu0 %v7123_v30, %s5388_s14 }
 0x2b1   : > { %v2332_v35 = vsel %vm2163_vm0, 1.0, %v2245_v15 }
 0x2b2   : > { %v2251_v40 = vpop.permute.xlu1 %2250  ;;  %v7135_v55 = vmul.f32 %v2332_v35, %v6924_v51 }
 0x2b3   : > { %v2335_v53 = vsel %vm2163_vm0, 1.0, %v2251_v40 }
 0x2b4   : > { %2438 = vrot.lane.b32.xlu1 %v7127_v59, %s5388_s14  ;;  %v7139_v20 = vmul.f32 %v2335_v53, %v6929_v37  ;;  %v2249_v58 = vpop.permute.xlu0 %2248  ;;  %2436 = vrot.lane.b32.xlu0 %v7135_v55, %s5388_s14 }
 0x2b5   : > { %v2334_v31 = vsel %vm2163_vm0, 1.0, %v2249_v58 }
 0x2b6   : > { %v2255_v23 = vpop.permute.xlu1 %2254  ;;  %v7147_v44 = vmul.f32 %v2334_v31, %v6934_v52 }
 0x2b7   : > { %v2337_v51 = vsel %vm2163_vm0, 1.0, %v2255_v23 }
 0x2b8   : > { %2442 = vrot.lane.b32.xlu1 %v7139_v20, %s5388_s14  ;;  %v7151_v15 = vmul.f32 %v2337_v51, %v6939_v45  ;;  %v2253_v37 = vpop.permute.xlu0 %2252  ;;  %2440 = vrot.lane.b32.xlu0 %v7147_v44, %s5388_s14 }
 0x2b9   : > { %v2336_v35 = vsel %vm2163_vm0, 1.0, %v2253_v37 }
 0x2ba   : > { %v2259_v40 = vpop.permute.xlu1 %2258  ;;  %v7159_v53 = vmul.f32 %v2336_v35, %v6944_v6 }
 0x2bb   : > { %v2339_v52 = vsel %vm2163_vm0, 1.0, %v2259_v40 }
 0x2bc   : > { %2446 = vrot.lane.b32.xlu1 %v7151_v15, %s5388_s14  ;;  %v7163_v58 = vmul.f32 %v2339_v52, %v6949_v5  ;;  %v2257_v45 = vpop.permute.xlu0 %2256  ;;  %2444 = vrot.lane.b32.xlu0 %v7159_v53, %s5388_s14 }
 0x2bd   : > { %v2338_v31 = vsel %vm2163_vm0, 1.0, %v2257_v45 }
 0x2be   : > { %v7171_v23 = vmul.f32 %v2338_v31, %v6954_v0 }
 0x2c0   : > { %2450 = vrot.lane.b32.xlu1 %v7163_v58, %s5388_s14  ;;  %2448 = vrot.lane.b32.xlu0 %v7171_v23, %s5388_s14 }
 0x2c8   : > { %v2263_v6 = vpop.permute.xlu1 %2262 }
 0x2c9   : > { %v2341_v51 = vsel %vm2163_vm0, 1.0, %v2263_v6 }
 0x2ca   : > { %v7177_v5 = vmul.f32 %v2341_v51, %v6959_v19 }
 0x2cc   : > { %2454 = vrot.lane.b32.xlu1 %v7177_v5, %s5388_s14 }
 0x2d1   : > { %v2261_v37 = vpop.permute.xlu0 %2260 }
 0x2d2   : > { %v2340_v35 = vsel %vm2163_vm0, 1.0, %v2261_v37  ;;  %v2267_v40 = vpop.permute.xlu1 %2266 }
 0x2d3   : > { %v7183_v52 = vmul.f32 %v2340_v35, %v6964_v9  ;;  %v2343_v0 = vsel %vm2163_vm0, 1.0, %v2267_v40 }
 0x2d4   : > { %v7187_v45 = vmul.f32 %v2343_v0, %v6969_v57 }
 0x2d5   : > { %v2265_v31 = vpop.permute.xlu0 %2264  ;;  %2452 = vrot.lane.b32.xlu0 %v7183_v52, %s5388_s14 }
 0x2d6   : > { %v2342_v19 = vsel %vm2163_vm0, 1.0, %v2265_v31  ;;  %v2271_v6 = vpop.permute.xlu1 %2270  ;;  %2458 = vrot.lane.b32.xlu1 %v7187_v45, %s5388_s14 }
 0x2d7   : > { %v7195_v51 = vmul.f32 %v2342_v19, %v6974_v24  ;;  %v2345_v9 = vsel %vm2163_vm0, 1.0, %v2271_v6 }
 0x2d8   : > { %v7199_v37 = vmul.f32 %v2345_v9, %v6979_v26 }
 0x2d9   : > { %v2269_v57 = vpop.permute.xlu0 %2268  ;;  %2456 = vrot.lane.b32.xlu0 %v7195_v51, %s5388_s14 }
 0x2da   : > { %v2344_v35 = vsel %vm2163_vm0, 1.0, %v2269_v57  ;;  %v2275_v40 = vpop.permute.xlu1 %2274  ;;  %2462 = vrot.lane.b32.xlu1 %v7199_v37, %s5388_s14 }
 0x2db   : > { %v7207_v0 = vmul.f32 %v2344_v35, %v6984_v12  ;;  %v2347_v24 = vsel %vm2163_vm0, 1.0, %v2275_v40 }
 0x2dc   : > { %v7211_v31 = vmul.f32 %v2347_v24, %v6989_v11 }
 0x2dd   : > { %v2273_v26 = vpop.permute.xlu0 %2272  ;;  %2460 = vrot.lane.b32.xlu0 %v7207_v0, %s5388_s14 }
 0x2de   : > { %v2346_v19 = vsel %vm2163_vm0, 1.0, %v2273_v26  ;;  %v2279_v6 = vpop.permute.xlu1 %2278  ;;  %2466 = vrot.lane.b32.xlu1 %v7211_v31, %s5388_s14 }
 0x2df   : > { %v7219_v9 = vmul.f32 %v2346_v19, %v6994_v47  ;;  %v2349_v12 = vsel %vm2163_vm0, 1.0, %v2279_v6 }
 0x2e0   : > { %v7223_v57 = vmul.f32 %v2349_v12, %v6999_v49 }
 0x2e1   : > { %v2277_v11 = vpop.permute.xlu0 %2276  ;;  %2464 = vrot.lane.b32.xlu0 %v7219_v9, %s5388_s14 }
 0x2e2   : > { %v2348_v35 = vsel %vm2163_vm0, 1.0, %v2277_v11  ;;  %v2283_v40 = vpop.permute.xlu1 %2282  ;;  %2470 = vrot.lane.b32.xlu1 %v7223_v57, %s5388_s14 }
 0x2e3   : > { %v7231_v24 = vmul.f32 %v2348_v35, %v7004_v8  ;;  %v2351_v47 = vsel %vm2163_vm0, 1.0, %v2283_v40 }
 0x2e4   : > { %v7235_v26 = vmul.f32 %v2351_v47, %v7009_v13 }
 0x2e5   : > { %v2281_v49 = vpop.permute.xlu0 %2280  ;;  %2468 = vrot.lane.b32.xlu0 %v7231_v24, %s5388_s14 }
 0x2e6   : > { %v2350_v19 = vsel %vm2163_vm0, 1.0, %v2281_v49  ;;  %v2287_v6 = vpop.permute.xlu1 %2286  ;;  %2474 = vrot.lane.b32.xlu1 %v7235_v26, %s5388_s14 }
 0x2e7   : > { %v7243_v12 = vmul.f32 %v2350_v19, %v7015_v61  ;;  %v2353_v8 = vsel %vm2163_vm0, 1.0, %v2287_v6 }
 0x2e8   : > { %v7247_v11 = vmul.f32 %v2353_v8, %v7020_v7  ;;  %v3178_v8 = vld [vmem:[%s7034_s18 + $0x98] sm:$0xff] }
 0x2e9   : > { %v2285_v13 = vpop.permute.xlu0 %2284  ;;  %2472 = vrot.lane.b32.xlu0 %v7243_v12, %s5388_s14 }
 0x2ea   : > { %v2352_v35 = vsel %vm2163_vm0, 1.0, %v2285_v13  ;;  %v2291_v40 = vpop.permute.xlu1 %2290  ;;  %2478 = vrot.lane.b32.xlu1 %v7247_v11, %s5388_s14 }
 0x2eb   : > { %v7255_v61 = vmul.f32 %v2352_v35, %v7025_v62  ;;  %v2355_v47 = vsel %vm2163_vm0, 1.0, %v2291_v40  ;;  %v3179_v35 = vld [vmem:[%s7034_s18 + $0xa0] sm:$0xff]  ;;  %v3180_v40 = vld [vmem:[%s7034_s18 + $0xa8] sm:$0xff] }
 0x2ec   : > { %v7259_v7 = vmul.f32 %v2355_v47, %v7030_v28 }
 0x2ed   : > { %v2289_v49 = vpop.permute.xlu0 %2288  ;;  %2476 = vrot.lane.b32.xlu0 %v7255_v61, %s5388_s14 }
 0x2ee   : > { %v2354_v19 = vsel %vm2163_vm0, 1.0, %v2289_v49  ;;  %2482 = vrot.lane.b32.xlu1 %v7259_v7, %s5388_s14  ;;  %v7266_v6 = vpop.permute.xlu1 %3223  ;;  %v3181_v49 = vld [vmem:[%s7034_s18 + $0xb0] sm:$0xff] }
 0x2ef   : > { %9499 = vst [vmem:[#allocation19_spill] sm:$0xff] %v7266_v6  ;;  %v7269_v62 = vmul.f32 %v2354_v19, %v7038_v29  ;;  %v3182_v19 = vld [vmem:[%s7034_s18 + $0xb8] sm:$0xff] }
 0x2f1   : > { %2480 = vrot.lane.b32.xlu0 %v7269_v62, %s5388_s14  ;;  %v7274_v28 = vpop.permute.xlu0 %3225 }
 0x2f2   : > { %9500 = vst [vmem:[#allocation20_spill] sm:$0xff] %v7274_v28  ;;  %v7276_v13 = vpop.permute.xlu1 %3227  ;;  %3261 = vrot.lane.b32.xlu1 %v3178_v8, %s5387_s21  ;;  %v3183_v8 = vld [vmem:[%s7034_s18 + $0xc0] sm:$0xff] }
 0x2f3   : > { %9501 = vst [vmem:[#allocation21_spill] sm:$0xff] %v7276_v13 }
 0x2f5   : > { %v7281_v47 = vpop.permute.xlu0 %3231  ;;  %3263 = vrot.lane.b32.xlu0 %v3179_v35, %s5387_s21 }
 0x2f6   : > { %9502 = vst [vmem:[#allocation22_spill] sm:$0xff] %v7281_v47  ;;  %v7284_v29 = vpop.permute.xlu1 %3229  ;;  %3265 = vrot.lane.b32.xlu1 %v3180_v40, %s5387_s21  ;;  %v3184_v47 = vld [vmem:[%s7034_s18 + $0xc8] sm:$0xff]  ;;  %v3185_v40 = vld [vmem:[%s7034_s18 + $0xd0] sm:$0xff] }
 0x2f7   : > { %9503 = vst [vmem:[#allocation23_spill] sm:$0xff] %v7284_v29  ;;  %v3186_v29 = vld [vmem:[%s7034_s18 + $0xd8] sm:$0xff] }
 0x2f9   : > { %v7289_v28 = vpop.permute.xlu0 %3235  ;;  %3267 = vrot.lane.b32.xlu0 %v3181_v49, %s5387_s21 }
 0x2fa   : > { %9504 = vst [vmem:[#allocation24_spill] sm:$0xff] %v7289_v28  ;;  %v7292_v13 = vpop.permute.xlu1 %3233  ;;  %3269 = vrot.lane.b32.xlu1 %v3182_v19, %s5387_s21 }
 0x2fb   : > { %9505 = vst [vmem:[#allocation25_spill] sm:$0xff] %v7292_v13 }
 0x2fd   : > { %v7297_v6 = vpop.permute.xlu0 %3239  ;;  %3271 = vrot.lane.b32.xlu0 %v3183_v8, %s5387_s21 }
 0x2fe   : > { %9506 = vst [vmem:[#allocation26_spill] sm:$0xff] %v7297_v6  ;;  %v7300_v35 = vpop.permute.xlu1 %3237  ;;  %3273 = vrot.lane.b32.xlu1 %v3184_v47, %s5387_s21 }
 0x2ff   : > { %9507 = vst [vmem:[#allocation27_spill] sm:$0xff] %v7300_v35 }
 0x301   : > { %v7305_v22 = vpop.permute.xlu0 %3243  ;;  %3275 = vrot.lane.b32.xlu0 %v3185_v40, %s5387_s21 }
 0x302   : > { %9508 = vst [vmem:[#allocation28_spill] sm:$0xff] %v7305_v22  ;;  %v7308_v49 = vpop.permute.xlu1 %3241  ;;  %3277 = vrot.lane.b32.xlu1 %v3186_v29, %s5387_s21 }
 0x303   : > { %9509 = vst [vmem:[#allocation29_spill] sm:$0xff] %v7308_v49 }
 0x305   : > { %v7311_v19 = vpop.permute.xlu0 %3247 }
 0x306   : > { %9510 = vst [vmem:[#allocation30_spill] sm:$0xff] %v7311_v19  ;;  %v7313_v13 = vpop.permute.xlu1 %3245 }
 0x307   : > { %9511 = vst [vmem:[#allocation33_spill] sm:$0xff] %v7313_v13 }
 0x309   : > { %v7315_v6 = vpop.permute.xlu0 %3251 }
 0x30a   : > { %9512 = vst [vmem:[#allocation34_spill] sm:$0xff] %v7315_v6  ;;  %v7317_v8 = vpop.permute.xlu1 %3249 }
 0x30b   : > { %9513 = vst [vmem:[#allocation37_spill] sm:$0xff] %v7317_v8 }
 0x30d   : > { %v7319_v35 = vpop.permute.xlu0 %3255 }
 0x30e   : > { %9514 = vst [vmem:[#allocation38_spill] sm:$0xff] %v7319_v35  ;;  %v7321_v47 = vpop.permute.xlu1 %3253 }
 0x30f   : > { %9515 = vst [vmem:[#allocation41_spill] sm:$0xff] %v7321_v47 }
 0x311   : > { %v7323_v28 = vpop.permute.xlu0 %3259 }
 0x312   : > { %9516 = vst [vmem:[#allocation42_spill] sm:$0xff] %v7323_v28  ;;  %v7325_v22 = vpop.permute.xlu1 %3257 }
 0x313   : > { %9517 = vst [vmem:[#allocation45_spill] sm:$0xff] %v7325_v22 }
 0x315   : > { %v2421_v49 = vpop.permute.xlu0 %2420 }
 0x316   : > { %v2423_v40 = vpop.permute.xlu1 %2422  ;;  %v2517_v6 = vsel %vm2516_vm1, 1.0, %v2421_v49 }
 0x317   : > { %v2518_v29 = vsel %vm2516_vm1, 1.0, %v2423_v40  ;;  %v7333_v8 = vmul.f32 %v2517_v6, %v7085_v2 }
 0x318   : > { %v7329_v19 = vmul.f32 %v2518_v29, %v7081_v63 }
 0x319   : > { %2613 = vrot.lane.b32.xlu0 %v7333_v8, %s5389_s15 }
 0x31a   : > { %2615 = vrot.lane.b32.xlu1 %v7329_v19, %s5389_s15  ;;  %v2427_v28 = vpop.permute.xlu1 %2426  ;;  %v2425_v63 = vpop.permute.xlu0 %2424 }
 0x31b   : > { %v2520_v22 = vsel %vm2516_vm1, 1.0, %v2427_v28  ;;  %v2519_v29 = vsel %vm2516_vm1, 1.0, %v2425_v63 }
 0x31c   : > { %v7341_v40 = vmul.f32 %v2520_v22, %v7093_v32  ;;  %v7347_v6 = vmul.f32 %v2519_v29, %v7099_v56 }
 0x31e   : > { %2619 = vrot.lane.b32.xlu1 %v7341_v40, %s5389_s15  ;;  %v2431_v2 = vpop.permute.xlu1 %2430  ;;  %2617 = vrot.lane.b32.xlu0 %v7347_v6, %s5389_s15  ;;  %v2429_v22 = vpop.permute.xlu0 %2428 }
 0x31f   : > { %v2522_v49 = vsel %vm2516_vm1, 1.0, %v2431_v2  ;;  %v2521_v32 = vsel %vm2516_vm1, 1.0, %v2429_v22 }
 0x320   : > { %v7351_v47 = vmul.f32 %v2522_v49, %v7103_v42  ;;  %v7359_v63 = vmul.f32 %v2521_v32, %v7111_v38 }
 0x322   : > { %2623 = vrot.lane.b32.xlu1 %v7351_v47, %s5389_s15  ;;  %v2435_v28 = vpop.permute.xlu1 %2434  ;;  %2621 = vrot.lane.b32.xlu0 %v7359_v63, %s5389_s15  ;;  %v2433_v42 = vpop.permute.xlu0 %2432 }
 0x323   : > { %v2524_v56 = vsel %vm2516_vm1, 1.0, %v2435_v28  ;;  %v2523_v2 = vsel %vm2516_vm1, 1.0, %v2433_v42 }
 0x324   : > { %v7363_v29 = vmul.f32 %v2524_v56, %v7115_v50  ;;  %v7371_v22 = vmul.f32 %v2523_v2, %v7123_v30 }
 0x326   : > { %2627 = vrot.lane.b32.xlu1 %v7363_v29, %s5389_s15  ;;  %v2439_v49 = vpop.permute.xlu1 %2438  ;;  %2625 = vrot.lane.b32.xlu0 %v7371_v22, %s5389_s15  ;;  %v2437_v50 = vpop.permute.xlu0 %2436 }
 0x327   : > { %v2526_v38 = vsel %vm2516_vm1, 1.0, %v2439_v49  ;;  %v2525_v28 = vsel %vm2516_vm1, 1.0, %v2437_v50 }
 0x328   : > { %v7375_v32 = vmul.f32 %v2526_v38, %v7127_v59  ;;  %v7383_v42 = vmul.f32 %v2525_v28, %v7135_v55 }
 0x32a   : > { %2631 = vrot.lane.b32.xlu1 %v7375_v32, %s5389_s15  ;;  %v2443_v56 = vpop.permute.xlu1 %2442  ;;  %2629 = vrot.lane.b32.xlu0 %v7383_v42, %s5389_s15  ;;  %v2441_v59 = vpop.permute.xlu0 %2440 }
 0x32b   : > { %v2528_v30 = vsel %vm2516_vm1, 1.0, %v2443_v56  ;;  %v2527_v49 = vsel %vm2516_vm1, 1.0, %v2441_v59 }
 0x32c   : > { %v7387_v2 = vmul.f32 %v2528_v30, %v7139_v20  ;;  %v7395_v50 = vmul.f32 %v2527_v49, %v7147_v44 }
 0x32e   : > { %2635 = vrot.lane.b32.xlu1 %v7387_v2, %s5389_s15  ;;  %v2447_v38 = vpop.permute.xlu1 %2446  ;;  %2633 = vrot.lane.b32.xlu0 %v7395_v50, %s5389_s15  ;;  %v2445_v20 = vpop.permute.xlu0 %2444 }
 0x32f   : > { %v2530_v55 = vsel %vm2516_vm1, 1.0, %v2447_v38  ;;  %v2529_v56 = vsel %vm2516_vm1, 1.0, %v2445_v20 }
 0x330   : > { %v7399_v28 = vmul.f32 %v2530_v55, %v7151_v15  ;;  %v7407_v59 = vmul.f32 %v2529_v56, %v7159_v53 }
 0x332   : > { %2639 = vrot.lane.b32.xlu1 %v7399_v28, %s5389_s15  ;;  %v2451_v30 = vpop.permute.xlu1 %2450  ;;  %2637 = vrot.lane.b32.xlu0 %v7407_v59, %s5389_s15  ;;  %v2449_v15 = vpop.permute.xlu0 %2448 }
 0x333   : > { %v2532_v44 = vsel %vm2516_vm1, 1.0, %v2451_v30  ;;  %v2531_v38 = vsel %vm2516_vm1, 1.0, %v2449_v15 }
 0x334   : > { %v7411_v49 = vmul.f32 %v2532_v44, %v7163_v58  ;;  %v7419_v55 = vmul.f32 %v2531_v38, %v7171_v23 }
 0x336   : > { %2643 = vrot.lane.b32.xlu1 %v7411_v49, %s5389_s15  ;;  %2641 = vrot.lane.b32.xlu0 %v7419_v55, %s5389_s15 }
 0x33e   : > { %v2455_v53 = vpop.permute.xlu1 %2454 }
 0x33f   : > { %v2534_v20 = vsel %vm2516_vm1, 1.0, %v2455_v53 }
 0x340   : > { %v7425_v58 = vmul.f32 %v2534_v20, %v7177_v5 }
 0x342   : > { %2647 = vrot.lane.b32.xlu1 %v7425_v58, %s5389_s15 }
 0x347   : > { %v2453_v56 = vpop.permute.xlu0 %2452 }
 0x348   : > { %v2533_v30 = vsel %vm2516_vm1, 1.0, %v2453_v56  ;;  %v2459_v44 = vpop.permute.xlu1 %2458 }
 0x349   : > { %v7431_v15 = vmul.f32 %v2533_v30, %v7183_v52  ;;  %v2536_v23 = vsel %vm2516_vm1, 1.0, %v2459_v44 }
 0x34a   : > { %v7435_v38 = vmul.f32 %v2536_v23, %v7187_v45 }
 0x34b   : > { %2645 = vrot.lane.b32.xlu0 %v7431_v15, %s5389_s15  ;;  %v2457_v5 = vpop.permute.xlu0 %2456 }
 0x34c   : > { %v2535_v53 = vsel %vm2516_vm1, 1.0, %v2457_v5  ;;  %2651 = vrot.lane.b32.xlu1 %v7435_v38, %s5389_s15  ;;  %v2463_v20 = vpop.permute.xlu1 %2462 }
 0x34d   : > { %v7443_v56 = vmul.f32 %v2535_v53, %v7195_v51  ;;  %v2538_v52 = vsel %vm2516_vm1, 1.0, %v2463_v20 }
 0x34e   : > { %v7447_v30 = vmul.f32 %v2538_v52, %v7199_v37 }
 0x34f   : > { %2649 = vrot.lane.b32.xlu0 %v7443_v56, %s5389_s15  ;;  %v2461_v45 = vpop.permute.xlu0 %2460 }
 0x350   : > { %v2537_v44 = vsel %vm2516_vm1, 1.0, %v2461_v45  ;;  %2655 = vrot.lane.b32.xlu1 %v7447_v30, %s5389_s15  ;;  %v2467_v23 = vpop.permute.xlu1 %2466 }
 0x351   : > { %v7455_v5 = vmul.f32 %v2537_v44, %v7207_v0  ;;  %v2540_v51 = vsel %vm2516_vm1, 1.0, %v2467_v23 }
 0x352   : > { %v7459_v53 = vmul.f32 %v2540_v51, %v7211_v31 }
 0x353   : > { %2653 = vrot.lane.b32.xlu0 %v7455_v5, %s5389_s15  ;;  %v2465_v37 = vpop.permute.xlu0 %2464 }
 0x354   : > { %v2539_v20 = vsel %vm2516_vm1, 1.0, %v2465_v37  ;;  %2659 = vrot.lane.b32.xlu1 %v7459_v53, %s5389_s15  ;;  %v2471_v52 = vpop.permute.xlu1 %2470 }
 0x355   : > { %v7467_v45 = vmul.f32 %v2539_v20, %v7219_v9  ;;  %v2542_v0 = vsel %vm2516_vm1, 1.0, %v2471_v52 }
 0x356   : > { %v7471_v44 = vmul.f32 %v2542_v0, %v7223_v57 }
 0x357   : > { %2657 = vrot.lane.b32.xlu0 %v7467_v45, %s5389_s15  ;;  %v2469_v31 = vpop.permute.xlu0 %2468 }
 0x358   : > { %v2541_v23 = vsel %vm2516_vm1, 1.0, %v2469_v31  ;;  %2663 = vrot.lane.b32.xlu1 %v7471_v44, %s5389_s15  ;;  %v2475_v51 = vpop.permute.xlu1 %2474 }
 0x359   : > { %v7479_v37 = vmul.f32 %v2541_v23, %v7231_v24  ;;  %v2544_v9 = vsel %vm2516_vm1, 1.0, %v2475_v51 }
 0x35a   : > { %v7483_v20 = vmul.f32 %v2544_v9, %v7235_v26 }
 0x35b   : > { %2661 = vrot.lane.b32.xlu0 %v7479_v37, %s5389_s15  ;;  %v2473_v57 = vpop.permute.xlu0 %2472 }
 0x35c   : > { %v2543_v52 = vsel %vm2516_vm1, 1.0, %v2473_v57  ;;  %2667 = vrot.lane.b32.xlu1 %v7483_v20, %s5389_s15  ;;  %v2479_v0 = vpop.permute.xlu1 %2478 }
 0x35d   : > { %v7491_v31 = vmul.f32 %v2543_v52, %v7243_v12  ;;  %v2546_v24 = vsel %vm2516_vm1, 1.0, %v2479_v0 }
 0x35e   : > { %v7495_v23 = vmul.f32 %v2546_v24, %v7247_v11 }
 0x35f   : > { %2665 = vrot.lane.b32.xlu0 %v7491_v31, %s5389_s15  ;;  %v2477_v26 = vpop.permute.xlu0 %2476 }
 0x360   : > { %v2545_v51 = vsel %vm2516_vm1, 1.0, %v2477_v26  ;;  %2671 = vrot.lane.b32.xlu1 %v7495_v23, %s5389_s15  ;;  %v2483_v9 = vpop.permute.xlu1 %2482 }
 0x361   : > { %v7503_v57 = vmul.f32 %v2545_v51, %v7255_v61  ;;  %v2548_v12 = vsel %vm2516_vm1, 1.0, %v2483_v9 }
 0x362   : > { %v7507_v52 = vmul.f32 %v2548_v12, %v7259_v7 }
 0x363   : > { %2669 = vrot.lane.b32.xlu0 %v7503_v57, %s5389_s15  ;;  %v2481_v11 = vpop.permute.xlu0 %2480 }
 0x364   : > { %v2547_v0 = vsel %vm2516_vm1, 1.0, %v2481_v11  ;;  %2675 = vrot.lane.b32.xlu1 %v7507_v52, %s5389_s15  ;;  %v7519_v61 = vpop.permute.xlu1 %3261 }
 0x365   : > { %v7515_v24 = vmul.f32 %v2547_v0, %v7269_v62  ;;  %9518 = vst [vmem:[#allocation7_spill] sm:$0xff] %v7519_v61 }
 0x367   : > { %2673 = vrot.lane.b32.xlu0 %v7515_v24, %s5389_s15  ;;  %v7523_v26 = vpop.permute.xlu0 %3263 }
 0x368   : > { %v7521_v7 = vpop.permute.xlu1 %3265 }
 0x369   : > { %9519 = vst [vmem:[#allocation8_spill] sm:$0xff] %v7521_v7 }
 0x36b   : > { %v7527_v9 = vpop.permute.xlu0 %3267 }
 0x36c   : > { %v7525_v51 = vpop.permute.xlu1 %3269 }
 0x36d   : > { %9520 = vst [vmem:[#allocation31_spill] sm:$0xff] %v7525_v51 }
 0x36f   : > { %v7531_v11 = vpop.permute.xlu0 %3271 }
 0x370   : > { %v7529_v12 = vpop.permute.xlu1 %3273  ;;  %9522 = vst [vmem:[#allocation4_spill] sm:$0xff] %v7531_v11  ;;  %v9527_v11 = vsub.f32 1.0, %v6608_v36 }
 0x371   : > { %9521 = vst [vmem:[#allocation3_spill] sm:$0xff] %v7529_v12 }
 0x373   : > { %v7535_v0 = vpop.permute.xlu0 %3275 }
 0x374   : > { %v7533_v62 = vpop.permute.xlu1 %3277  ;;  %9524 = vst [vmem:[#allocation10_spill] sm:$0xff] %v7535_v0  ;;  %v9525_v0 = vsub.f32 1.0, %v6591_v3 }
 0x375   : > { %9523 = vst [vmem:[#allocation9_spill] sm:$0xff] %v7533_v62 }
 0x38b   : > { %v2614_v13 = vpop.permute.xlu0 %2613 }
 0x38c   : > { %v2616_v35 = vpop.permute.xlu1 %2615  ;;  %v2710_v12 = vsel %vm2709_vm2, 1.0, %v2614_v13 }
 0x38d   : > { %v2711_v61 = vsel %vm2709_vm2, 1.0, %v2616_v35  ;;  %v2742_v62 = vmul.f32 %v2710_v12, %v7333_v8  ;;  %v9529_v12 = vsub.f32 1.0, %v6614_v60 }
 0x38e   : > { %v2743_v7 = vmul.f32 %v2711_v61, %v7329_v19 }
 0x38f   : > { %v7553_v19 = vmul.f32 %v2742_v62, %v9527_v11 }
 0x390   : > { %v7549_v51 = vmul.f32 %v2743_v7, %v9525_v0  ;;  %v2620_v35 = vpop.permute.xlu1 %2619  ;;  %v2618_v3 = vpop.permute.xlu0 %2617 }
 0x391   : > { %9528 = vst [vmem:[#allocation32_spill] sm:$0xff] %v7553_v19  ;;  %v2713_v61 = vsel %vm2709_vm2, 1.0, %v2620_v35  ;;  %2807 = vst.msk [vmem:[%s7543_s27] sm:$0xff] %vm2806_vm3, %v7553_v19  ;;  %v2839_v36 = vsel %vm2806_vm3, %v7553_v19, 0.0  ;;  %v2712_v7 = vsel %vm2709_vm2, 1.0, %v2618_v3 }
 0x392   : > { %9526 = vst [vmem:[#allocation35_spill] sm:$0xff] %v7549_v51  ;;  %2808 = vst.msk [vmem:[%s7543_s27 + $0x8] sm:$0xff] %vm2806_vm3, %v7549_v51  ;;  %v2842_v13 = vsel %vm2806_vm3, %v7549_v51, 0.0  ;;  %v2745_v8 = vmul.f32 %v2713_v61, %v7341_v40  ;;  %2840 = vadd.xlane.f32.xlu0 %v2839_v36  ;;  %v2744_v40 = vmul.f32 %v2712_v7, %v7347_v6  ;;  %v9531_v61 = vsub.f32 1.0, %v6622_v16 }
 0x393   : > { %2843 = vadd.xlane.f32.xlu1 %v2842_v13 }
 0x394   : > { %v7570_v11 = vmul.f32 %v2745_v8, %v9529_v12  ;;  %v2624_v62 = vpop.permute.xlu1 %2623  ;;  %v7580_v13 = vmul.f32 %v2744_v40, %v9531_v61  ;;  %v2622_v3 = vpop.permute.xlu0 %2621  ;;  %v9533_v8 = vsub.f32 1.0, %v6628_v21  ;;  %v9535_v12 = vsub.f32 1.0, %v6634_v33 }
 0x395   : > { %v2715_v0 = vsel %vm2709_vm2, 1.0, %v2624_v62  ;;  %v2714_v60 = vsel %vm2709_vm2, 1.0, %v2622_v3 }
 0x396   : > { %9530 = vst [vmem:[#allocation74_spill] sm:$0xff] %v7570_v11  ;;  %2810 = vst.msk [vmem:[%s7543_s27 + $0x18] sm:$0xff] %vm2806_vm3, %v7570_v11  ;;  %v2747_v35 = vmul.f32 %v2715_v0, %v7351_v47  ;;  %v2746_v7 = vmul.f32 %v2714_v60, %v7359_v63  ;;  %v2845_v16 = vsel %vm2806_vm3, %v7580_v13, 0.0  ;;  %v9537_v63 = vsub.f32 1.0, %v6647_v10 }
 0x397   : > { %9532 = vst [vmem:[#allocation75_spill] sm:$0xff] %v7580_v13  ;;  %2809 = vst.msk [vmem:[%s7543_s27 + $0x10] sm:$0xff] %vm2806_vm3, %v7580_v13  ;;  %2846 = vadd.xlane.f32.xlu0 %v2845_v16  ;;  %v2848_v33 = vsel %vm2806_vm3, %v7570_v11, 0.0  ;;  %v9541_v16 = vsub.f32 1.0, %v6656_v27 }
 0x398   : > { %v7585_v36 = vmul.f32 %v2747_v35, %v9533_v8  ;;  %v2628_v6 = vpop.permute.xlu1 %2627  ;;  %v7600_v62 = vmul.f32 %v2746_v7, %v9535_v12  ;;  %v2626_v40 = vpop.permute.xlu0 %2625  ;;  %v9539_v8 = vsub.f32 1.0, %v6653_v34 }
 0x399   : > { %v2717_v47 = vsel %vm2709_vm2, 1.0, %v2628_v6  ;;  %v2716_v0 = vsel %vm2709_vm2, 1.0, %v2626_v40 }
 0x39a   : > { %9534 = vst [vmem:[#allocation76_spill] sm:$0xff] %v7585_v36  ;;  %2812 = vst.msk [vmem:[%s7543_s27 + $0x28] sm:$0xff] %vm2806_vm3, %v7585_v36  ;;  %v2749_v21 = vmul.f32 %v2717_v47, %v7363_v29  ;;  %v2748_v3 = vmul.f32 %v2716_v0, %v7371_v22  ;;  %v2851_v29 = vsel %vm2806_vm3, %v7600_v62, 0.0  ;;  %v2854_v34 = vsel %vm2806_vm3, %v7585_v36, 0.0 }
 0x39b   : > { %9536 = vst [vmem:[#allocation77_spill] sm:$0xff] %v7600_v62  ;;  %2811 = vst.msk [vmem:[%s7543_s27 + $0x20] sm:$0xff] %vm2806_vm3, %v7600_v62  ;;  %2852 = vadd.xlane.f32.xlu1 %v2851_v29  ;;  %2849 = vadd.xlane.f32.xlu0 %v2848_v33  ;;  %v9542_v0 = vsub.f32 1.0, %v6662_v18 }
 0x39c   : > { %v7605_v35 = vmul.f32 %v2749_v21, %v9537_v63  ;;  %v2632_v61 = vpop.permute.xlu1 %2631  ;;  %v7622_v6 = vmul.f32 %v2748_v3, %v9539_v8  ;;  %v2630_v22 = vpop.permute.xlu0 %2629  ;;  %v9544_v3 = vsub.f32 1.0, %v6676_v4  ;;  %v9545_v8 = vsub.f32 1.0, %v6684_v54 }
 0x39d   : > { %v2719_v60 = vsel %vm2709_vm2, 1.0, %v2632_v61  ;;  %v2718_v7 = vsel %vm2709_vm2, 1.0, %v2630_v22 }
 0x39e   : > { %9538 = vst [vmem:[#allocation78_spill] sm:$0xff] %v7605_v35  ;;  %2814 = vst.msk [vmem:[%s7543_s27 + $0x38] sm:$0xff] %vm2806_vm3, %v7605_v35  ;;  %v2751_v10 = vmul.f32 %v2719_v60, %v7375_v32  ;;  %v2750_v12 = vmul.f32 %v2718_v7, %v7383_v42  ;;  %v2857_v32 = vsel %vm2806_vm3, %v7622_v6, 0.0  ;;  %v2860_v18 = vsel %vm2806_vm3, %v7605_v35, 0.0 }
 0x39f   : > { %9540 = vst [vmem:[#allocation79_spill] sm:$0xff] %v7622_v6  ;;  %2813 = vst.msk [vmem:[%s7543_s27 + $0x30] sm:$0xff] %vm2806_vm3, %v7622_v6  ;;  %2858 = vadd.xlane.f32.xlu1 %v2857_v32  ;;  %2855 = vadd.xlane.f32.xlu0 %v2854_v34 }
 0x3a0   : > { %v7627_v47 = vmul.f32 %v2751_v10, %v9541_v16  ;;  %v2636_v21 = vpop.permute.xlu1 %2635  ;;  %v7644_v63 = vmul.f32 %v2750_v12, %v9542_v0  ;;  %v2634_v42 = vpop.permute.xlu0 %2633  ;;  %v9546_v16 = vsub.f32 1.0, %v6697_v41 }
 0x3a1   : > { %v2721_v40 = vsel %vm2709_vm2, 1.0, %v2636_v21  ;;  %v2720_v61 = vsel %vm2709_vm2, 1.0, %v2634_v42  ;;  %v9548_v42 = vsub.f32 1.0, %v6719_v25  ;;  %v9549_v25 = vsub.f32 1.0, %v6730_v17 }
 0x3a2   : > { %2816 = vst.msk [vmem:[%s7543_s27 + $0x48] sm:$0xff] %vm2806_vm3, %v7627_v47  ;;  %v2753_v27 = vmul.f32 %v2721_v40, %v7387_v2  ;;  %9543 = vst [vmem:[#allocation80_spill] sm:$0xff] %v7644_v63  ;;  %v2752_v60 = vmul.f32 %v2720_v61, %v7395_v50  ;;  %v2863_v2 = vsel %vm2806_vm3, %v7644_v63, 0.0  ;;  %v9547_v40 = vsub.f32 1.0, %v6713_v14 }
 0x3a3   : > { %2815 = vst.msk [vmem:[%s7543_s27 + $0x40] sm:$0xff] %vm2806_vm3, %v7644_v63  ;;  %2864 = vadd.xlane.f32.xlu1 %v2863_v2  ;;  %2861 = vadd.xlane.f32.xlu0 %v2860_v18 }
 0x3a4   : > { %v7649_v29 = vmul.f32 %v2753_v27, %v9544_v3  ;;  %v2640_v33 = vpop.permute.xlu1 %2639  ;;  %v7666_v22 = vmul.f32 %v2752_v60, %v9545_v8  ;;  %v2638_v50 = vpop.permute.xlu0 %2637 }
 0x3a5   : > { %v2723_v10 = vsel %vm2709_vm2, 1.0, %v2640_v33  ;;  %v2722_v7 = vsel %vm2709_vm2, 1.0, %v2638_v50 }
 0x3a6   : > { %2818 = vst.msk [vmem:[%s7543_s27 + $0x58] sm:$0xff] %vm2806_vm3, %v7649_v29  ;;  %v2755_v4 = vmul.f32 %v2723_v10, %v7399_v28  ;;  %2817 = vst.msk [vmem:[%s7543_s27 + $0x50] sm:$0xff] %vm2806_vm3, %v7666_v22  ;;  %v2754_v32 = vmul.f32 %v2722_v7, %v7407_v59  ;;  %v2869_v54 = vsel %vm2806_vm3, %v7666_v22, 0.0  ;;  %v2866_v28 = vsel %vm2806_vm3, %v7627_v47, 0.0 }
 0x3a7   : > { %2870 = vadd.xlane.f32.xlu1 %v2869_v54  ;;  %2867 = vadd.xlane.f32.xlu0 %v2866_v28  ;;  %v2872_v14 = vsel %vm2806_vm3, %v7649_v29, 0.0  ;;  %v9551_v54 = vsub.f32 1.0, %v6780_v39 }
 0x3a8   : > { %v7671_v21 = vmul.f32 %v2755_v4, %v9546_v16  ;;  %v2644_v12 = vpop.permute.xlu1 %2643  ;;  %v7688_v59 = vmul.f32 %v2754_v32, %v9547_v40  ;;  %v2642_v27 = vpop.permute.xlu0 %2641  ;;  %v9550_v4 = vsub.f32 1.0, %v6744_v48  ;;  %v9552_v40 = vsub.f32 1.0, %v6786_v46 }
 0x3a9   : > { %v2725_v34 = vsel %vm2709_vm2, 1.0, %v2644_v12  ;;  %v2724_v0 = vsel %vm2709_vm2, 1.0, %v2642_v27 }
 0x3aa   : > { %2820 = vst.msk [vmem:[%s7543_s27 + $0x68] sm:$0xff] %vm2806_vm3, %v7671_v21  ;;  %v2757_v41 = vmul.f32 %v2725_v34, %v7411_v49  ;;  %2819 = vst.msk [vmem:[%s7543_s27 + $0x60] sm:$0xff] %vm2806_vm3, %v7688_v59  ;;  %v2756_v3 = vmul.f32 %v2724_v0, %v7419_v55  ;;  %v2875_v33 = vsel %vm2806_vm3, %v7688_v59, 0.0  ;;  %v2878_v60 = vsel %vm2806_vm3, %v7671_v21, 0.0 }
 0x3ab   : > { %2876 = vadd.xlane.f32.xlu1 %v2875_v33  ;;  %2873 = vadd.xlane.f32.xlu0 %v2872_v14 }
 0x3ac   : > { %v7693_v61 = vmul.f32 %v2757_v41, %v9548_v42  ;;  %v7708_v49 = vmul.f32 %v2756_v3, %v9549_v25  ;;  %v9553_v3 = vsub.f32 1.0, %v6792_v43  ;;  %v9554_v25 = vsub.f32 1.0, %v6796_v1 }
 0x3ae   : > { %2822 = vst.msk [vmem:[%s7543_s27 + $0x78] sm:$0xff] %vm2806_vm3, %v7693_v61  ;;  %2821 = vst.msk [vmem:[%s7543_s27 + $0x70] sm:$0xff] %vm2806_vm3, %v7708_v49  ;;  %v2881_v55 = vsel %vm2806_vm3, %v7708_v49, 0.0  ;;  %v2884_v17 = vsel %vm2806_vm3, %v7693_v61, 0.0 }
 0x3af   : > { %2882 = vadd.xlane.f32.xlu1 %v2881_v55  ;;  %2879 = vadd.xlane.f32.xlu0 %v2878_v60 }
 0x3b3   : > { %2885 = vadd.xlane.f32.xlu0 %v2884_v17 }
 0x3b4   : > { %v2648_v2 = vpop.permute.xlu1 %2647 }
 0x3b5   : > { %v2727_v18 = vsel %vm2709_vm2, 1.0, %v2648_v2 }
 0x3b6   : > { %v2759_v10 = vmul.f32 %v2727_v18, %v7425_v58 }
 0x3b8   : > { %v7723_v8 = vmul.f32 %v2759_v10, %v9550_v4  ;;  %v9555_v10 = vld [vmem:[#allocation5_spill] sm:$0xff] }
 0x3b9   : > { %v9556_v17 = vsub.f32 1.0, %v9555_v10 }
 0x3ba   : > { %2824 = vst.msk [vmem:[%s7543_s27 + $0x88] sm:$0xff] %vm2806_vm3, %v7723_v8  ;;  %v2890_v50 = vsel %vm2806_vm3, %v7723_v8, 0.0 }
 0x3bb   : > { %2891 = vadd.xlane.f32.xlu0 %v2890_v50 }
 0x3bd   : > { %v2646_v7 = vpop.permute.xlu0 %2645 }
 0x3be   : > { %v2726_v58 = vsel %vm2709_vm2, 1.0, %v2646_v7  ;;  %v2652_v16 = vpop.permute.xlu1 %2651  ;;  %v9557_v7 = vld [vmem:[#allocation36_spill] sm:$0xff] }
 0x3bf   : > { %v2758_v12 = vmul.f32 %v2726_v58, %v7431_v15  ;;  %v2729_v32 = vsel %vm2709_vm2, 1.0, %v2652_v16  ;;  %v9558_v58 = vsub.f32 1.0, %v9557_v7 }
 0x3c0   : > { %v2761_v48 = vmul.f32 %v2729_v32, %v7435_v38 }
 0x3c1   : > { %v7736_v28 = vmul.f32 %v2758_v12, %v9551_v54  ;;  %v2650_v34 = vpop.permute.xlu0 %2649 }
 0x3c2   : > { %v2728_v41 = vsel %vm2709_vm2, 1.0, %v2650_v34  ;;  %v7741_v27 = vmul.f32 %v2761_v48, %v9552_v40  ;;  %v2656_v0 = vpop.permute.xlu1 %2655 }
 0x3c3   : > { %2823 = vst.msk [vmem:[%s7543_s27 + $0x80] sm:$0xff] %vm2806_vm3, %v7736_v28  ;;  %v2760_v15 = vmul.f32 %v2728_v41, %v7443_v56  ;;  %v2887_v38 = vsel %vm2806_vm3, %v7736_v28, 0.0  ;;  %v2731_v39 = vsel %vm2709_vm2, 1.0, %v2656_v0  ;;  %v9559_v41 = vld [vmem:[#allocation6_spill] sm:$0xff] }
 0x3c4   : > { %2826 = vst.msk [vmem:[%s7543_s27 + $0x98] sm:$0xff] %vm2806_vm3, %v7741_v27  ;;  %2888 = vadd.xlane.f32.xlu1 %v2887_v38  ;;  %v2763_v46 = vmul.f32 %v2731_v39, %v7447_v30  ;;  %v2896_v42 = vsel %vm2806_vm3, %v7741_v27, 0.0  ;;  %v9560_v40 = vsub.f32 1.0, %v9559_v41  ;;  %v9561_v38 = vld [vmem:[#allocation11_spill] sm:$0xff] }
 0x3c5   : > { %v7758_v33 = vmul.f32 %v2760_v15, %v9553_v3  ;;  %v2654_v56 = vpop.permute.xlu0 %2653  ;;  %2897 = vadd.xlane.f32.xlu0 %v2896_v42  ;;  %v9562_v39 = vsub.f32 1.0, %v9561_v38 }
 0x3c6   : > { %v2730_v14 = vsel %vm2709_vm2, 1.0, %v2654_v56  ;;  %v7763_v55 = vmul.f32 %v2763_v46, %v9554_v25  ;;  %v2660_v60 = vpop.permute.xlu1 %2659 }
 0x3c7   : > { %2825 = vst.msk [vmem:[%s7543_s27 + $0x90] sm:$0xff] %vm2806_vm3, %v7758_v33  ;;  %v2762_v30 = vmul.f32 %v2730_v14, %v7455_v5  ;;  %v2893_v43 = vsel %vm2806_vm3, %v7758_v33, 0.0  ;;  %v2733_v2 = vsel %vm2709_vm2, 1.0, %v2660_v60  ;;  %v9564_v60 = vld [vmem:[#allocation12_spill] sm:$0xff] }
 0x3c8   : > { %2828 = vst.msk [vmem:[%s7543_s27 + $0xa8] sm:$0xff] %vm2806_vm3, %v7763_v55  ;;  %2894 = vadd.xlane.f32.xlu1 %v2893_v43  ;;  %v2765_v1 = vmul.f32 %v2733_v2, %v7459_v53  ;;  %v2902_v18 = vsel %vm2806_vm3, %v7763_v55, 0.0 }
 0x3c9   : > { %v7780_v4 = vmul.f32 %v2762_v30, %v9556_v17  ;;  %v2658_v5 = vpop.permute.xlu0 %2657  ;;  %2903 = vadd.xlane.f32.xlu0 %v2902_v18  ;;  %v9565_v30 = vsub.f32 1.0, %v9564_v60 }
 0x3ca   : > { %v2732_v50 = vsel %vm2709_vm2, 1.0, %v2658_v5  ;;  %v7785_v16 = vmul.f32 %v2765_v1, %v9558_v58  ;;  %v2664_v12 = vpop.permute.xlu1 %2663  ;;  %v9567_v1 = vld [vmem:[#allocation13_spill] sm:$0xff] }
 0x3cb   : > { %2827 = vst.msk [vmem:[%s7543_s27 + $0xa0] sm:$0xff] %vm2806_vm3, %v7780_v4  ;;  %v2764_v53 = vmul.f32 %v2732_v50, %v7467_v45  ;;  %v2899_v32 = vsel %vm2806_vm3, %v7780_v4, 0.0  ;;  %v2735_v48 = vsel %vm2709_vm2, 1.0, %v2664_v12  ;;  %v9568_v18 = vsub.f32 1.0, %v9567_v1  ;;  %v9570_v12 = vld [vmem:[#allocation14_spill] sm:$0xff] }
 0x3cc   : > { %2830 = vst.msk [vmem:[%s7543_s27 + $0xb8] sm:$0xff] %vm2806_vm3, %v7785_v16  ;;  %2900 = vadd.xlane.f32.xlu1 %v2899_v32  ;;  %v2767_v54 = vmul.f32 %v2735_v48, %v7471_v44  ;;  %v2908_v34 = vsel %vm2806_vm3, %v7785_v16, 0.0  ;;  %v5270_v48 = vld [vmem:[%s5687_s8 + $0x8] sm:$0xff]  ;;  %v5272_v1 = vld [vmem:[%s5687_s8 + $0x18] sm:$0xff] }
 0x3cd   : > { %v7802_v0 = vmul.f32 %v2764_v53, %v9560_v40  ;;  %v2662_v45 = vpop.permute.xlu0 %2661  ;;  %2909 = vadd.xlane.f32.xlu0 %v2908_v34  ;;  %v9571_v53 = vsub.f32 1.0, %v9570_v12  ;;  %v9574_v40 = vld [vmem:[#allocation15_spill] sm:$0xff] }
 0x3ce   : > { %v2734_v15 = vsel %vm2709_vm2, 1.0, %v2662_v45  ;;  %v7807_v46 = vmul.f32 %v2767_v54, %v9562_v39  ;;  %v2668_v42 = vpop.permute.xlu1 %2667  ;;  %v9573_v54 = vld [vmem:[#allocation39_spill] sm:$0xff]  ;;  %v9575_v45 = vsub.f32 1.0, %v9574_v40 }
 0x3cf   : > { %2829 = vst.msk [vmem:[%s7543_s27 + $0xb0] sm:$0xff] %vm2806_vm3, %v7802_v0  ;;  %v2766_v44 = vmul.f32 %v2734_v15, %v7479_v37  ;;  %v2905_v3 = vsel %vm2806_vm3, %v7802_v0, 0.0  ;;  %v2737_v56 = vsel %vm2709_vm2, 1.0, %v2668_v42  ;;  %v1108_v34 = vadd.f32 %v5270_v48, %v9573_v54  ;;  %v5273_v48 = vld [vmem:[%s5687_s8 + $0x10] sm:$0xff]  ;;  %v9585_v54 = vld [vmem:[#allocation44_spill] sm:$0xff] }
 0x3d0   : > { %9563 = vst [vmem:[#allocation5_spill] sm:$0xff] %v7807_v46  ;;  %2832 = vst.msk [vmem:[%s7543_s27 + $0xc8] sm:$0xff] %vm2806_vm3, %v7807_v46  ;;  %2906 = vadd.xlane.f32.xlu1 %v2905_v3  ;;  %v2769_v14 = vmul.f32 %v2737_v56, %v7483_v20  ;;  %v2914_v25 = vsel %vm2806_vm3, %v7807_v46, 0.0  ;;  %v5271_v56 = vld [vmem:[%s5687_s8] sm:$0xff] }
 0x3d1   : > { %v7824_v43 = vmul.f32 %v2766_v44, %v9565_v30  ;;  %v2666_v37 = vpop.permute.xlu0 %2665  ;;  %2915 = vadd.xlane.f32.xlu0 %v2914_v25 }
 0x3d2   : > { %v2736_v2 = vsel %vm2709_vm2, 1.0, %v2666_v37  ;;  %v7829_v10 = vmul.f32 %v2769_v14, %v9568_v18  ;;  %v2672_v17 = vpop.permute.xlu1 %2671  ;;  %v9577_v14 = vld [vmem:[#allocation40_spill] sm:$0xff]  ;;  %v9581_v18 = vld [vmem:[#allocation43_spill] sm:$0xff] }
 0x3d3   : > { %9566 = vst [vmem:[#allocation36_spill] sm:$0xff] %v7824_v43  ;;  %2831 = vst.msk [vmem:[%s7543_s27 + $0xc0] sm:$0xff] %vm2806_vm3, %v7824_v43  ;;  %v2768_v20 = vmul.f32 %v2736_v2, %v7491_v31  ;;  %v2911_v5 = vsel %vm2806_vm3, %v7824_v43, 0.0  ;;  %v2739_v50 = vsel %vm2709_vm2, 1.0, %v2672_v17  ;;  %v1107_v25 = vadd.f32 %v5271_v56, %v9577_v14 }
 0x3d4   : > { %9569 = vst [vmem:[#allocation6_spill] sm:$0xff] %v7829_v10  ;;  %2834 = vst.msk [vmem:[%s7543_s27 + $0xd8] sm:$0xff] %vm2806_vm3, %v7829_v10  ;;  %2912 = vadd.xlane.f32.xlu1 %v2911_v5  ;;  %v2771_v7 = vmul.f32 %v2739_v50, %v7495_v23  ;;  %v2920_v58 = vsel %vm2806_vm3, %v7829_v10, 0.0  ;;  %v1140_v2 = vmul.f32 0.5, %v1108_v34  ;;  %v1110_v17 = vadd.f32 %v5272_v1, %v9581_v18  ;;  %v9591_v1 = vld [vmem:[#allocation48_spill] sm:$0xff] }
 0x3d5   : > { %v7846_v32 = vmul.f32 %v2768_v20, %v9571_v53  ;;  %v2670_v31 = vpop.permute.xlu0 %2669  ;;  %2921 = vadd.xlane.f32.xlu0 %v2920_v58  ;;  %v9582_v20 = vld [vmem:[#allocation17_spill] sm:$0xff]  ;;  %v1109_v34 = vadd.f32 %v5273_v48, %v9585_v54  ;;  %v5278_v48 = vld [vmem:[%s5687_s8 + $0x48] sm:$0xff]  ;;  %v9593_v54 = vld [vmem:[#allocation50_spill] sm:$0xff] }
 0x3d6   : > { %v2738_v41 = vsel %vm2709_vm2, 1.0, %v2670_v31  ;;  %v7853_v15 = vmul.f32 %v2771_v7, %v9575_v45  ;;  %v2676_v23 = vpop.permute.xlu1 %2675  ;;  %v9583_v5 = vsub.f32 1.0, %v9582_v20  ;;  %v2936_v53 = vmul.f32 %v7549_v51, %v1140_v2  ;;  %v5276_v2 = vld [vmem:[%s5687_s8 + $0x38] sm:$0xff] }
 0x3d7   : > { %9572 = vst [vmem:[#allocation11_spill] sm:$0xff] %v7846_v32  ;;  %2833 = vst.msk [vmem:[%s7543_s27 + $0xd0] sm:$0xff] %vm2806_vm3, %v7846_v32  ;;  %v2770_v38 = vmul.f32 %v2738_v41, %v7503_v57  ;;  %v2917_v39 = vsel %vm2806_vm3, %v7846_v32, 0.0  ;;  %v2741_v42 = vsel %vm2709_vm2, 1.0, %v2676_v23  ;;  %v9578_v57 = vld [vmem:[#allocation16_spill] sm:$0xff]  ;;  %v1139_v31 = vmul.f32 0.5, %v1107_v25 }
 0x3d8   : > { %9576 = vst [vmem:[#allocation12_spill] sm:$0xff] %v7853_v15  ;;  %2836 = vst.msk [vmem:[%s7543_s27 + $0xe8] sm:$0xff] %vm2806_vm3, %v7853_v15  ;;  %2918 = vadd.xlane.f32.xlu1 %v2917_v39  ;;  %v2773_v44 = vmul.f32 %v2741_v42, %v7507_v52  ;;  %v2926_v3 = vsel %vm2806_vm3, %v7853_v15, 0.0  ;;  %v9579_v60 = vsub.f32 1.0, %v9578_v57  ;;  %v9586_v41 = vld [vmem:[#allocation18_spill] sm:$0xff]  ;;  %v1142_v45 = vmul.f32 0.5, %v1110_v17 }
 0x3d9   : > { %v2674_v37 = vpop.permute.xlu0 %2673  ;;  %2927 = vadd.xlane.f32.xlu0 %v2926_v3  ;;  %v9587_v40 = vsub.f32 1.0, %v9586_v41  ;;  %v5274_v23 = vld [vmem:[%s5687_s8 + $0x28] sm:$0xff]  ;;  %v2970_v3 = vsel %vm2806_vm3, %v2936_v53, 0.0  ;;  %v1141_v14 = vmul.f32 0.5, %v1109_v34  ;;  %v5275_v25 = vld [vmem:[%s5687_s8 + $0x20] sm:$0xff]  ;;  %v1114_v18 = vadd.f32 %v5276_v2, %v9591_v1 }
 0x3da   : > { %v7872_v30 = vmul.f32 %v2770_v38, %v9579_v60  ;;  %v2740_v52 = vsel %vm2709_vm2, 1.0, %v2674_v37  ;;  %v7879_v50 = vmul.f32 %v2773_v44, %v9583_v5  ;;  %v9589_v38 = vld [vmem:[#allocation46_spill] sm:$0xff]  ;;  %v2935_v44 = vmul.f32 %v7553_v19, %v1139_v31  ;;  %v9590_v57 = vld [vmem:[#allocation47_spill] sm:$0xff] }
 0x3db   : > { %v2772_v7 = vmul.f32 %v2740_v52, %v7515_v24  ;;  %v1112_v39 = vadd.f32 %v5274_v23, %v9589_v38  ;;  %v2938_v56 = vmul.f32 %v7570_v11, %v1142_v45  ;;  %v1111_v60 = vadd.f32 %v5275_v25, %v9590_v57 }
 0x3dc   : > { %9580 = vst [vmem:[#allocation13_spill] sm:$0xff] %v7872_v30  ;;  %9584 = vst [vmem:[#allocation14_spill] sm:$0xff] %v7879_v50  ;;  %v2923_v58 = vsel %vm2806_vm3, %v7872_v30, 0.0  ;;  %v2932_v12 = vsel %vm2806_vm3, %v7879_v50, 0.0  ;;  %v2967_v17 = vsel %vm2806_vm3, %v2935_v44, 0.0  ;;  %v2937_v52 = vmul.f32 %v7580_v13, %v1141_v14  ;;  %v9595_v14 = vld [vmem:[#allocation52_spill] sm:$0xff] }
 0x3dd   : > { %2835 = vst.msk [vmem:[%s7543_s27 + $0xe0] sm:$0xff] %vm2806_vm3, %v7872_v30  ;;  %2838 = vst.msk [vmem:[%s7543_s27 + $0xf8] sm:$0xff] %vm2806_vm3, %v7879_v50  ;;  %2924 = vadd.xlane.f32.xlu1 %v2923_v58  ;;  %v7897_v24 = vmul.f32 %v2772_v7, %v9587_v40  ;;  %2933 = vadd.xlane.f32.xlu0 %v2932_v12  ;;  %v1144_v37 = vmul.f32 0.5, %v1112_v39  ;;  %v2976_v20 = vsel %vm2806_vm3, %v2938_v56, 0.0  ;;  %v1143_v7 = vmul.f32 0.5, %v1111_v60  ;;  %v5277_v58 = vld [vmem:[%s5687_s8 + $0x30] sm:$0xff] }
 0x3de   : > { %v9592_v12 = vld [vmem:[#allocation49_spill] sm:$0xff]  ;;  %v1146_v31 = vmul.f32 0.5, %v1114_v18  ;;  %v1116_v34 = vadd.f32 %v5278_v48, %v9593_v54  ;;  %v2973_v41 = vsel %vm2806_vm3, %v2937_v52, 0.0  ;;  %v5279_v39 = vld [vmem:[%s5687_s8 + $0x40] sm:$0xff]  ;;  %v5280_v56 = vld [vmem:[%s5687_s8 + $0x58] sm:$0xff] }
 0x3df   : > { %9588 = vst [vmem:[#allocation39_spill] sm:$0xff] %v7897_v24  ;;  %2837 = vst.msk [vmem:[%s7543_s27 + $0xf0] sm:$0xff] %vm2806_vm3, %v7897_v24  ;;  %v2929_v42 = vsel %vm2806_vm3, %v7897_v24, 0.0  ;;  %v2940_v5 = vmul.f32 %v7585_v36, %v1144_v37  ;;  %v1113_v53 = vadd.f32 %v5277_v58, %v9592_v12  ;;  %v2939_v40 = vmul.f32 %v7600_v62, %v1143_v7  ;;  %v5281_v18 = vld [vmem:[%s5687_s8 + $0x50] sm:$0xff]  ;;  %v9597_v7 = vld [vmem:[#allocation54_spill] sm:$0xff] }
 0x3e0   : > { %v2942_v23 = vmul.f32 %v7605_v35, %v1146_v31  ;;  %v1118_v25 = vadd.f32 %v5280_v56, %v9595_v14 }
 0x3e1   : > { %2930 = vadd.xlane.f32.xlu1 %v2929_v42  ;;  %2971 = vadd.xlane.f32.xlu0 %v2970_v3  ;;  %v2982_v45 = vsel %vm2806_vm3, %v2940_v5, 0.0  ;;  %v1145_v38 = vmul.f32 0.5, %v1113_v53  ;;  %v9594_v42 = vld [vmem:[#allocation51_spill] sm:$0xff]  ;;  %v1148_v3 = vmul.f32 0.5, %v1116_v34  ;;  %v2979_v57 = vsel %vm2806_vm3, %v2939_v40, 0.0  ;;  %v5282_v5 = vld [vmem:[%s5687_s8 + $0x68] sm:$0xff] }
 0x3e2   : > { %v1115_v44 = vadd.f32 %v5279_v39, %v9594_v42  ;;  %v2988_v37 = vsel %vm2806_vm3, %v2942_v23, 0.0  ;;  %v1120_v58 = vadd.f32 %v5282_v5, %v9597_v7  ;;  %v5283_v34 = vld [vmem:[%s5687_s8 + $0x60] sm:$0xff]  ;;  %v5284_v23 = vld [vmem:[%s5687_s8 + $0x78] sm:$0xff] }
 0x3e3   : > { %v2941_v60 = vmul.f32 %v7622_v6, %v1145_v38  ;;  %v2944_v2 = vmul.f32 %v7627_v47, %v1148_v3  ;;  %v9599_v38 = vld [vmem:[#allocation56_spill] sm:$0xff] }
 0x3e4   : > { %v1147_v1 = vmul.f32 0.5, %v1115_v44  ;;  %v1122_v39 = vadd.f32 %v5284_v23, %v9599_v38 }
 0x3e5   : > { %2968 = vadd.xlane.f32.xlu1 %v2967_v17  ;;  %2977 = vadd.xlane.f32.xlu0 %v2976_v20  ;;  %v9596_v17 = vld [vmem:[#allocation53_spill] sm:$0xff]  ;;  %v1150_v20 = vmul.f32 0.5, %v1118_v25  ;;  %v2985_v12 = vsel %vm2806_vm3, %v2941_v60, 0.0  ;;  %v2994_v31 = vsel %vm2806_vm3, %v2944_v2, 0.0  ;;  %v5286_v2 = vld [vmem:[%s5687_s8 + $0x88] sm:$0xff] }
 0x3e6   : > { %v1117_v52 = vadd.f32 %v5281_v18, %v9596_v17  ;;  %v2943_v53 = vmul.f32 %v7644_v63, %v1147_v1  ;;  %v5285_v25 = vld [vmem:[%s5687_s8 + $0x70] sm:$0xff]  ;;  %v9601_v1 = vld [vmem:[#allocation58_spill] sm:$0xff] }
 0x3e7   : > { %v2946_v48 = vmul.f32 %v7649_v29, %v1150_v20  ;;  %v1124_v18 = vadd.f32 %v5286_v2, %v9601_v1 }
 0x3e8   : > { %v1149_v54 = vmul.f32 0.5, %v1117_v52  ;;  %v2991_v42 = vsel %vm2806_vm3, %v2943_v53, 0.0 }
 0x3e9   : > { %2974 = vadd.xlane.f32.xlu1 %v2973_v41  ;;  %2983 = vadd.xlane.f32.xlu0 %v2982_v45  ;;  %v9598_v41 = vld [vmem:[#allocation55_spill] sm:$0xff]  ;;  %v1152_v45 = vmul.f32 0.5, %v1120_v58  ;;  %v3000_v3 = vsel %vm2806_vm3, %v2946_v48, 0.0  ;;  %v5288_v48 = vld [vmem:[%s5687_s8 + $0x98] sm:$0xff] }
 0x3ea   : > { %v1119_v40 = vadd.f32 %v5283_v34, %v9598_v41  ;;  %v2945_v44 = vmul.f32 %v7666_v22, %v1149_v54  ;;  %v5287_v58 = vld [vmem:[%s5687_s8 + $0x80] sm:$0xff]  ;;  %v9603_v54 = vld [vmem:[#allocation60_spill] sm:$0xff] }
 0x3eb   : > { %v2948_v56 = vmul.f32 %v7671_v21, %v1152_v45  ;;  %v1126_v34 = vadd.f32 %v5288_v48, %v9603_v54 }
 0x3ec   : > { %v1151_v14 = vmul.f32 0.5, %v1119_v40  ;;  %v2997_v17 = vsel %vm2806_vm3, %v2945_v44, 0.0 }
 0x3ed   : > { %2980 = vadd.xlane.f32.xlu1 %v2979_v57  ;;  %2989 = vadd.xlane.f32.xlu0 %v2988_v37  ;;  %v9600_v57 = vld [vmem:[#allocation57_spill] sm:$0xff]  ;;  %v1154_v37 = vmul.f32 0.5, %v1122_v39  ;;  %v3006_v20 = vsel %vm2806_vm3, %v2948_v56, 0.0  ;;  %v5290_v56 = vld [vmem:[%s5687_s8 + $0xa8] sm:$0xff] }
 0x3ee   : > { %v1121_v60 = vadd.f32 %v5285_v25, %v9600_v57  ;;  %v2947_v52 = vmul.f32 %v7688_v59, %v1151_v14  ;;  %v5289_v39 = vld [vmem:[%s5687_s8 + $0x90] sm:$0xff]  ;;  %v9605_v14 = vld [vmem:[#allocation62_spill] sm:$0xff] }
 0x3ef   : > { %v2950_v5 = vmul.f32 %v7693_v61, %v1154_v37  ;;  %v1128_v25 = vadd.f32 %v5290_v56, %v9605_v14 }
 0x3f0   : > { %v1153_v7 = vmul.f32 0.5, %v1121_v60  ;;  %v3003_v41 = vsel %vm2806_vm3, %v2947_v52, 0.0 }
 0x3f1   : > { %2986 = vadd.xlane.f32.xlu1 %v2985_v12  ;;  %2995 = vadd.xlane.f32.xlu0 %v2994_v31  ;;  %v9602_v12 = vld [vmem:[#allocation59_spill] sm:$0xff]  ;;  %v1156_v31 = vmul.f32 0.5, %v1124_v18  ;;  %v3012_v45 = vsel %vm2806_vm3, %v2950_v5, 0.0  ;;  %v5292_v5 = vld [vmem:[%s5687_s8 + $0xb8] sm:$0xff] }
 0x3f2   : > { %v1123_v53 = vadd.f32 %v5287_v58, %v9602_v12  ;;  %v2949_v40 = vmul.f32 %v7708_v49, %v1153_v7  ;;  %v5291_v18 = vld [vmem:[%s5687_s8 + $0xa0] sm:$0xff]  ;;  %v9607_v7 = vld [vmem:[#allocation64_spill] sm:$0xff] }
 0x3f3   : > { %v2952_v23 = vmul.f32 %v7723_v8, %v1156_v31  ;;  %v1130_v58 = vadd.f32 %v5292_v5, %v9607_v7 }
 0x3f4   : > { %v1155_v38 = vmul.f32 0.5, %v1123_v53  ;;  %v3009_v57 = vsel %vm2806_vm3, %v2949_v40, 0.0 }
 0x3f5   : > { %2992 = vadd.xlane.f32.xlu1 %v2991_v42  ;;  %3001 = vadd.xlane.f32.xlu0 %v3000_v3  ;;  %v9604_v42 = vld [vmem:[#allocation61_spill] sm:$0xff]  ;;  %v1158_v3 = vmul.f32 0.5, %v1126_v34  ;;  %v3018_v37 = vsel %vm2806_vm3, %v2952_v23, 0.0  ;;  %v5294_v23 = vld [vmem:[%s5687_s8 + $0xc8] sm:$0xff] }
 0x3f6   : > { %v1125_v44 = vadd.f32 %v5289_v39, %v9604_v42  ;;  %v2951_v60 = vmul.f32 %v7736_v28, %v1155_v38  ;;  %v5293_v34 = vld [vmem:[%s5687_s8 + $0xb0] sm:$0xff]  ;;  %v9609_v38 = vld [vmem:[#allocation66_spill] sm:$0xff] }
 0x3f7   : > { %v2954_v2 = vmul.f32 %v7741_v27, %v1158_v3  ;;  %v1132_v39 = vadd.f32 %v5294_v23, %v9609_v38 }
 0x3f8   : > { %v1157_v1 = vmul.f32 0.5, %v1125_v44  ;;  %v3015_v12 = vsel %vm2806_vm3, %v2951_v60, 0.0 }
 0x3f9   : > { %2998 = vadd.xlane.f32.xlu1 %v2997_v17  ;;  %3007 = vadd.xlane.f32.xlu0 %v3006_v20  ;;  %v9606_v17 = vld [vmem:[#allocation63_spill] sm:$0xff]  ;;  %v1160_v20 = vmul.f32 0.5, %v1128_v25  ;;  %v3024_v31 = vsel %vm2806_vm3, %v2954_v2, 0.0  ;;  %v5296_v2 = vld [vmem:[%s5687_s8 + $0xd8] sm:$0xff] }
 0x3fa   : > { %v1127_v52 = vadd.f32 %v5291_v18, %v9606_v17  ;;  %v2953_v53 = vmul.f32 %v7758_v33, %v1157_v1  ;;  %v5295_v25 = vld [vmem:[%s5687_s8 + $0xc0] sm:$0xff]  ;;  %v9611_v1 = vld [vmem:[#allocation68_spill] sm:$0xff] }
 0x3fb   : > { %v2956_v48 = vmul.f32 %v7763_v55, %v1160_v20  ;;  %v1134_v18 = vadd.f32 %v5296_v2, %v9611_v1 }
 0x3fc   : > { %v1159_v54 = vmul.f32 0.5, %v1127_v52  ;;  %v3021_v42 = vsel %vm2806_vm3, %v2953_v53, 0.0 }
 0x3fd   : > { %3004 = vadd.xlane.f32.xlu1 %v3003_v41  ;;  %3013 = vadd.xlane.f32.xlu0 %v3012_v45  ;;  %v9608_v41 = vld [vmem:[#allocation65_spill] sm:$0xff]  ;;  %v1162_v45 = vmul.f32 0.5, %v1130_v58  ;;  %v3030_v3 = vsel %vm2806_vm3, %v2956_v48, 0.0  ;;  %v5298_v48 = vld [vmem:[%s5687_s8 + $0xe8] sm:$0xff] }
 0x3fe   : > { %v1129_v40 = vadd.f32 %v5293_v34, %v9608_v41  ;;  %v2955_v44 = vmul.f32 %v7780_v4, %v1159_v54  ;;  %v5297_v58 = vld [vmem:[%s5687_s8 + $0xd0] sm:$0xff]  ;;  %v9613_v54 = vld [vmem:[#allocation70_spill] sm:$0xff] }
 0x3ff   : > { %v2958_v56 = vmul.f32 %v7785_v16, %v1162_v45  ;;  %v1136_v34 = vadd.f32 %v5298_v48, %v9613_v54 }
 0x400   : > { %v1161_v14 = vmul.f32 0.5, %v1129_v40  ;;  %v3027_v17 = vsel %vm2806_vm3, %v2955_v44, 0.0 }
 0x401   : > { %3010 = vadd.xlane.f32.xlu1 %v3009_v57  ;;  %3019 = vadd.xlane.f32.xlu0 %v3018_v37  ;;  %v9610_v57 = vld [vmem:[#allocation67_spill] sm:$0xff]  ;;  %v1164_v37 = vmul.f32 0.5, %v1132_v39  ;;  %v3036_v20 = vsel %vm2806_vm3, %v2958_v56, 0.0  ;;  %v5300_v56 = vld [vmem:[%s5687_s8 + $0xf8] sm:$0xff] }
 0x402   : > { %v1131_v60 = vadd.f32 %v5295_v25, %v9610_v57  ;;  %v2957_v52 = vmul.f32 %v7802_v0, %v1161_v14  ;;  %v5299_v39 = vld [vmem:[%s5687_s8 + $0xe0] sm:$0xff]  ;;  %v9615_v14 = vld [vmem:[#allocation72_spill] sm:$0xff] }
 0x403   : > { %v2960_v5 = vmul.f32 %v7807_v46, %v1164_v37  ;;  %v1138_v25 = vadd.f32 %v5300_v56, %v9615_v14  ;;  %v8051_v14 = vld [vmem:[%s7034_s18 + $0xf0] sm:$0xff] }
 0x404   : > { %v1163_v7 = vmul.f32 0.5, %v1131_v60  ;;  %v3033_v41 = vsel %vm2806_vm3, %v2957_v52, 0.0  ;;  %9620 = vst [vmem:[#allocation43_spill] sm:$0xff] %v8051_v14 }
 0x405   : > { %3016 = vadd.xlane.f32.xlu1 %v3015_v12  ;;  %3025 = vadd.xlane.f32.xlu0 %v3024_v31  ;;  %v9612_v12 = vld [vmem:[#allocation69_spill] sm:$0xff]  ;;  %v1166_v31 = vmul.f32 0.5, %v1134_v18  ;;  %v3042_v45 = vsel %vm2806_vm3, %v2960_v5, 0.0 }
 0x406   : > { %v1133_v53 = vadd.f32 %v5297_v58, %v9612_v12  ;;  %v2959_v40 = vmul.f32 %v7824_v43, %v1163_v7  ;;  %v5301_v18 = vld [vmem:[%s5687_s8 + $0xf0] sm:$0xff] }
 0x407   : > { %v2962_v23 = vmul.f32 %v7829_v10, %v1166_v31  ;;  %v9626_v10 = vld [vmem:[#allocation23_spill] sm:$0xff] }
 0x408   : > { %v1165_v38 = vmul.f32 0.5, %v1133_v53  ;;  %v3039_v57 = vsel %vm2806_vm3, %v2959_v40, 0.0 }
 0x409   : > { %3022 = vadd.xlane.f32.xlu1 %v3021_v42  ;;  %3031 = vadd.xlane.f32.xlu0 %v3030_v3  ;;  %v9614_v42 = vld [vmem:[#allocation71_spill] sm:$0xff]  ;;  %v1168_v3 = vmul.f32 0.5, %v1136_v34  ;;  %v3048_v37 = vsel %vm2806_vm3, %v2962_v23, 0.0 }
 0x40a   : > { %v1135_v44 = vadd.f32 %v5299_v39, %v9614_v42  ;;  %v2961_v60 = vmul.f32 %v7846_v32, %v1165_v38  ;;  %v8034_v39 = vld [vmem:[%s7034_s18 + $0xe8] sm:$0xff]  ;;  %v8037_v42 = vld [vmem:[%s7034_s18 + $0xe0] sm:$0xff] }
 0x40b   : > { %v2964_v2 = vmul.f32 %v7853_v15, %v1168_v3  ;;  %9617 = vst [vmem:[#allocation15_spill] sm:$0xff] %v8034_v39  ;;  %9618 = vst [vmem:[#allocation40_spill] sm:$0xff] %v8037_v42  ;;  %v8044_v3 = vld [vmem:[%s7034_s18 + $0xf8] sm:$0xff] }
 0x40c   : > { %v1167_v1 = vmul.f32 0.5, %v1135_v44  ;;  %v3045_v5 = vsel %vm2806_vm3, %v2961_v60, 0.0  ;;  %9619 = vst [vmem:[#allocation16_spill] sm:$0xff] %v8044_v3 }
 0x40d   : > { %3028 = vadd.xlane.f32.xlu1 %v3027_v17  ;;  %3037 = vadd.xlane.f32.xlu0 %v3036_v20  ;;  %v9616_v17 = vld [vmem:[#allocation73_spill] sm:$0xff]  ;;  %v1170_v20 = vmul.f32 0.5, %v1138_v25  ;;  %v3054_v58 = vsel %vm2806_vm3, %v2964_v2, 0.0 }
 0x40e   : > { %v1137_v52 = vadd.f32 %v5301_v18, %v9616_v17  ;;  %v2963_v7 = vmul.f32 %v7872_v30, %v1167_v1  ;;  %v5305_v30 = vld [vmem:[%s7034_s18 + $0x20] sm:$0xff] }
 0x40f   : > { %v2966_v12 = vmul.f32 %v7879_v50, %v1170_v20  ;;  %v9621_v20 = vld [vmem:[#allocation19_spill] sm:$0xff] }
 0x410   : > { %v1169_v53 = vmul.f32 0.5, %v1137_v52  ;;  %v3051_v31 = vsel %vm2806_vm3, %v2963_v7, 0.0  ;;  %v5302_v52 = vld [vmem:[%s7034_s18] sm:$0xff] }
 0x411   : > { %3034 = vadd.xlane.f32.xlu1 %v3033_v41  ;;  %3043 = vadd.xlane.f32.xlu0 %v3042_v45  ;;  %v3060_v54 = vsel %vm2806_vm3, %v2966_v12, 0.0  ;;  %v5303_v12 = vld [vmem:[%s7034_s18 + $0x8] sm:$0xff] }
 0x412   : > { %v2965_v48 = vmul.f32 %v7897_v24, %v1169_v53  ;;  %v9622_v53 = vld [vmem:[#allocation20_spill] sm:$0xff] }
 0x414   : > { %v3057_v34 = vsel %vm2806_vm3, %v2965_v48, 0.0 }
 0x415   : > { %3040 = vadd.xlane.f32.xlu1 %v3039_v57  ;;  %3049 = vadd.xlane.f32.xlu0 %v3048_v37 }
 0x419   : > { %3046 = vadd.xlane.f32.xlu1 %v3045_v5  ;;  %3055 = vadd.xlane.f32.xlu0 %v3054_v58  ;;  %v3319_v5 = vadd.f32 %v5302_v52, %v9621_v20 }
 0x41b   : > { %v3351_v48 = vmul.f32 0.5, %v3319_v5 }
 0x41d   : > { %3052 = vadd.xlane.f32.xlu1 %v3051_v31  ;;  %3061 = vadd.xlane.f32.xlu0 %v3060_v54  ;;  %v3320_v31 = vadd.f32 %v5303_v12, %v9622_v53  ;;  %v5304_v54 = vld [vmem:[%s7034_s18 + $0x10] sm:$0xff]  ;;  %v3383_v15 = vmul.f32 %v3351_v48, %v7553_v19  ;;  %v9627_v19 = vld [vmem:[#allocation24_spill] sm:$0xff] }
 0x41e   : > { %v5307_v48 = vld [vmem:[%s7034_s18 + $0x30] sm:$0xff] }
 0x41f   : > { %v8023_v41 = vpop.xlane.xlu0 %2840 }
 0x420   : > { %v8027_v45 = vpop.xlane.xlu1 %2843 }
 0x421   : > { %3058 = vadd.xlane.f32.xlu1 %v3057_v34  ;;  %v9623_v34 = vld [vmem:[#allocation21_spill] sm:$0xff]  ;;  %5206 = vrcp.f32 %v8027_v45 }
 0x422   : > { %v3321_v50 = vadd.f32 %v5304_v54, %v9623_v34  ;;  %v3415_v54 = vsel %vm2806_vm3, %v3383_v15, 0.0  ;;  %5208 = vrcp.f32 %v8023_v41 }
 0x424   : > { %v8025_v40 = vpop.xlane.xlu0 %2846 }
 0x428   : > { %v8029_v23 = vpop.xlane.xlu0 %2849  ;;  %v8031_v38 = vpop.xlane.xlu1 %2852 }
 0x429   : > { %5210 = vrcp.f32 %v8029_v23 }
 0x42a   : > { %5212 = vrcp.f32 %v8025_v40 }
 0x42c   : > { %v8039_v44 = vpop.xlane.xlu0 %2855  ;;  %v8048_v56 = vpop.xlane.xlu1 %2858 }
 0x42d   : > { %5214 = vrcp.f32 %v8039_v44 }
 0x42e   : > { %5216 = vrcp.f32 %v8031_v38 }
 0x430   : > { %v8053_v25 = vpop.xlane.xlu0 %2861  ;;  %v8061_v60 = vpop.xlane.xlu1 %2864 }
 0x431   : > { %5218 = vrcp.f32 %v8053_v25 }
 0x432   : > { %3281 = vrot.lane.b32.xlu1 %v8034_v39, %s5387_s21  ;;  %v3353_v39 = vmul.f32 0.5, %v3321_v50  ;;  %5220 = vrcp.f32 %v8048_v56 }
 0x433   : > { %3279 = vrot.lane.b32.xlu0 %v8037_v42, %s5387_s21  ;;  %v5306_v42 = vld [vmem:[%s7034_s18 + $0x18] sm:$0xff] }
 0x434   : > { %v8059_v57 = vpop.xlane.xlu0 %2867  ;;  %v8065_v2 = vpop.xlane.xlu1 %2870  ;;  %v3322_v12 = vadd.f32 %v5306_v42, %v9626_v10  ;;  %v3385_v34 = vmul.f32 %v3353_v39, %v7580_v13  ;;  %v9628_v10 = vld [vmem:[#allocation25_spill] sm:$0xff] }
 0x435   : > { %5222 = vrcp.f32 %v8059_v57  ;;  %v5323_v57 = vld [vmem:[%s7034_s18 + $0xb0] sm:$0xff] }
 0x436   : > { %3285 = vrot.lane.b32.xlu1 %v8044_v3, %s5387_s21  ;;  %v3352_v3 = vmul.f32 0.5, %v3320_v31  ;;  %v3354_v50 = vmul.f32 0.5, %v3322_v12  ;;  %v3421_v39 = vsel %vm2806_vm3, %v3385_v34, 0.0  ;;  %5224 = vrcp.f32 %v8061_v60 }
 0x437   : > { %3283 = vrot.lane.b32.xlu0 %v8051_v14, %s5387_s21  ;;  %v9625_v14 = vld [vmem:[#allocation22_spill] sm:$0xff] }
 0x438   : > { %v8063_v37 = vpop.xlane.xlu0 %2873  ;;  %v8069_v18 = vpop.xlane.xlu1 %2876  ;;  %v3323_v52 = vadd.f32 %v5305_v30, %v9625_v14  ;;  %v3384_v5 = vmul.f32 %v3352_v3, %v7549_v51  ;;  %v5308_v14 = vld [vmem:[%s7034_s18 + $0x28] sm:$0xff] }
 0x439   : > { %v3324_v42 = vadd.f32 %v5308_v14, %v9628_v10  ;;  %v9630_v10 = vld [vmem:[#allocation27_spill] sm:$0xff]  ;;  %5226 = vrcp.f32 %v8063_v37 }
 0x43a   : > { %v3355_v31 = vmul.f32 0.5, %v3323_v52  ;;  %v3418_v3 = vsel %vm2806_vm3, %v3384_v5, 0.0  ;;  %v3386_v52 = vmul.f32 %v3354_v50, %v7570_v11  ;;  %v5310_v5 = vld [vmem:[%s7034_s18 + $0x38] sm:$0xff]  ;;  %v5325_v37 = vld [vmem:[%s7034_s18 + $0xc0] sm:$0xff]  ;;  %5228 = vrcp.f32 %v8065_v2 }
 0x43b   : > { %v3356_v14 = vmul.f32 0.5, %v3324_v42 }
 0x43c   : > { %v8067_v1 = vpop.xlane.xlu0 %2879  ;;  %v8075_v7 = vpop.xlane.xlu1 %2882  ;;  %v3387_v51 = vmul.f32 %v3355_v31, %v7600_v62  ;;  %v3326_v31 = vadd.f32 %v5310_v5, %v9630_v10  ;;  %v9632_v10 = vld [vmem:[#allocation29_spill] sm:$0xff] }
 0x43d   : > { %v3388_v50 = vmul.f32 %v3356_v14, %v7585_v36  ;;  %5230 = vrcp.f32 %v8067_v1  ;;  %v5327_v1 = vld [vmem:[%s7034_s18 + $0xd0] sm:$0xff] }
 0x43e   : > { %v3358_v5 = vmul.f32 0.5, %v3326_v31  ;;  %5232 = vrcp.f32 %v8069_v18 }
 0x440   : > { %v8071_v17 = vpop.xlane.xlu0 %2885  ;;  %v3390_v14 = vmul.f32 %v3358_v5, %v7605_v35 }
 0x441   : > { %5234 = vrcp.f32 %v8071_v17 }
 0x442   : > { %v3436_v5 = vsel %vm2806_vm3, %v3390_v14, 0.0  ;;  %5236 = vrcp.f32 %v8075_v7 }
 0x448   : > { %v8077_v58 = vpop.xlane.xlu0 %2891 }
 0x451   : > { %v8083_v24 = vpop.xlane.xlu1 %2888 }
 0x452   : > { %9624 = vst [vmem:[#allocation17_spill] sm:$0xff] %v8083_v24  ;;  %v8088_v20 = vpop.xlane.xlu0 %2897  ;;  %v3325_v24 = vadd.f32 %v5307_v48, %v9627_v19  ;;  %v5309_v48 = vld [vmem:[%s7034_s18 + $0x40] sm:$0xff] }
 0x454   : > { %v3357_v19 = vmul.f32 0.5, %v3325_v24  ;;  %v3424_v24 = vsel %vm2806_vm3, %v3386_v52, 0.0 }
 0x455   : > { %v8093_v53 = vpop.xlane.xlu1 %2894 }
 0x456   : > { %v8099_v30 = vpop.xlane.xlu0 %2903  ;;  %3416 = vadd.xlane.f32.xlu0 %v3415_v54  ;;  %v9629_v54 = vld [vmem:[#allocation26_spill] sm:$0xff]  ;;  %v3389_v62 = vmul.f32 %v3357_v19, %v7622_v6 }
 0x457   : > { %v3327_v13 = vadd.f32 %v5309_v48, %v9629_v54  ;;  %v5311_v54 = vld [vmem:[%s7034_s18 + $0x50] sm:$0xff] }
 0x459   : > { %v8105_v15 = vpop.xlane.xlu1 %2900  ;;  %v3359_v48 = vmul.f32 0.5, %v3327_v13  ;;  %v3430_v13 = vsel %vm2806_vm3, %v3388_v50, 0.0 }
 0x45a   : > { %3419 = vadd.xlane.f32.xlu1 %v3418_v3  ;;  %v8111_v12 = vpop.xlane.xlu0 %2909  ;;  %3422 = vadd.xlane.f32.xlu0 %v3421_v39  ;;  %v3427_v3 = vsel %vm2806_vm3, %v3387_v51, 0.0  ;;  %v9631_v39 = vld [vmem:[#allocation28_spill] sm:$0xff] }
 0x45b   : > { %v3329_v11 = vadd.f32 %v5311_v54, %v9631_v39  ;;  %v5312_v51 = vld [vmem:[%s7034_s18 + $0x48] sm:$0xff]  ;;  %v3391_v6 = vmul.f32 %v3359_v48, %v7644_v63  ;;  %v5313_v39 = vld [vmem:[%s7034_s18 + $0x60] sm:$0xff] }
 0x45c   : > { %v3328_v19 = vadd.f32 %v5312_v51, %v9632_v10  ;;  %v9634_v10 = vld [vmem:[#allocation33_spill] sm:$0xff] }
 0x45d   : > { %v8117_v34 = vpop.xlane.xlu1 %2906  ;;  %v3361_v54 = vmul.f32 0.5, %v3329_v11 }
 0x45e   : > { %3428 = vadd.xlane.f32.xlu1 %v3427_v3  ;;  %v8123_v42 = vpop.xlane.xlu0 %2915  ;;  %3425 = vadd.xlane.f32.xlu0 %v3424_v24  ;;  %v3433_v3 = vsel %vm2806_vm3, %v3389_v62, 0.0  ;;  %v9633_v24 = vld [vmem:[#allocation30_spill] sm:$0xff]  ;;  %v3360_v51 = vmul.f32 0.5, %v3328_v19 }
 0x45f   : > { %v3331_v36 = vadd.f32 %v5313_v39, %v9633_v24  ;;  %v5314_v62 = vld [vmem:[%s7034_s18 + $0x58] sm:$0xff]  ;;  %v3393_v50 = vmul.f32 %v3361_v54, %v7666_v22 }
 0x460   : > { %v3330_v48 = vadd.f32 %v5314_v62, %v9634_v10  ;;  %v3392_v39 = vmul.f32 %v3360_v51, %v7627_v47  ;;  %v9635_v19 = vld [vmem:[#allocation34_spill] sm:$0xff]  ;;  %v5316_v62 = vld [vmem:[%s7034_s18 + $0x68] sm:$0xff] }
 0x461   : > { %v8129_v52 = vpop.xlane.xlu1 %2912  ;;  %v3363_v24 = vmul.f32 0.5, %v3331_v36  ;;  %v3445_v14 = vsel %vm2806_vm3, %v3393_v50, 0.0  ;;  %v9638_v50 = vld [vmem:[#allocation41_spill] sm:$0xff] }
 0x462   : > { %3434 = vadd.xlane.f32.xlu1 %v3433_v3  ;;  %v8135_v31 = vpop.xlane.xlu0 %2921  ;;  %3431 = vadd.xlane.f32.xlu0 %v3430_v13  ;;  %v3439_v3 = vsel %vm2806_vm3, %v3391_v6, 0.0  ;;  %v5315_v13 = vld [vmem:[%s7034_s18 + $0x70] sm:$0xff]  ;;  %v3362_v45 = vmul.f32 0.5, %v3330_v48  ;;  %v3442_v10 = vsel %vm2806_vm3, %v3392_v39, 0.0 }
 0x463   : > { %v3333_v35 = vadd.f32 %v5315_v13, %v9635_v19  ;;  %v9636_v6 = vld [vmem:[#allocation37_spill] sm:$0xff]  ;;  %v3395_v36 = vmul.f32 %v3363_v24, %v7688_v59  ;;  %v9637_v13 = vld [vmem:[#allocation38_spill] sm:$0xff] }
 0x464   : > { %v3332_v54 = vadd.f32 %v5316_v62, %v9636_v6  ;;  %v5318_v62 = vld [vmem:[%s7034_s18 + $0x78] sm:$0xff] }
 0x465   : > { %v8142_v11 = vpop.xlane.xlu1 %2918  ;;  %v3365_v48 = vmul.f32 0.5, %v3333_v35  ;;  %v3334_v6 = vadd.f32 %v5318_v62, %v9638_v50  ;;  %v3451_v39 = vsel %vm2806_vm3, %v3395_v36, 0.0  ;;  %v5320_v50 = vld [vmem:[%s7034_s18 + $0x88] sm:$0xff]  ;;  %v9640_v36 = vld [vmem:[#allocation45_spill] sm:$0xff] }
 0x466   : > { %3440 = vadd.xlane.f32.xlu1 %v3439_v3  ;;  %v8148_v63 = vpop.xlane.xlu0 %2927  ;;  %3437 = vadd.xlane.f32.xlu0 %v3436_v5  ;;  %v3394_v3 = vmul.f32 %v3362_v45, %v7649_v29  ;;  %v5317_v5 = vld [vmem:[%s7034_s18 + $0x80] sm:$0xff]  ;;  %v3364_v23 = vmul.f32 0.5, %v3332_v54 }
 0x467   : > { %v3335_v19 = vadd.f32 %v5317_v5, %v9637_v13  ;;  %v3397_v35 = vmul.f32 %v3365_v48, %v7708_v49  ;;  %v5319_v5 = vld [vmem:[%s7034_s18 + $0x90] sm:$0xff]  ;;  %v9639_v13 = vld [vmem:[#allocation42_spill] sm:$0xff]  ;;  %v3366_v44 = vmul.f32 0.5, %v3334_v6  ;;  %v3336_v48 = vadd.f32 %v5320_v50, %v9640_v36  ;;  %v9641_v36 = vld [vmem:[#allocation7_spill] sm:$0xff] }
 0x468   : > { %v3448_v45 = vsel %vm2806_vm3, %v3394_v3, 0.0  ;;  %v3396_v54 = vmul.f32 %v3364_v23, %v7671_v21  ;;  %v3337_v62 = vadd.f32 %v5319_v5, %v9639_v13  ;;  %v5322_v50 = vld [vmem:[%s7034_s18 + $0x98] sm:$0xff] }
 0x469   : > { %v3457_v3 = vsel %vm2806_vm3, %v3397_v35, 0.0  ;;  %v3398_v25 = vmul.f32 %v3366_v44, %v7693_v61 }
 0x46a   : > { %3446 = vadd.xlane.f32.xlu1 %v3445_v14  ;;  %v8156_v51 = vpop.xlane.xlu1 %2924  ;;  %3443 = vadd.xlane.f32.xlu0 %v3442_v10  ;;  %v8162_v41 = vpop.xlane.xlu0 %2933  ;;  %v3367_v10 = vmul.f32 0.5, %v3335_v19  ;;  %v3454_v38 = vsel %vm2806_vm3, %v3396_v54, 0.0 }
 0x46b   : > { %v5207_v14 = vpop.eup %5206  ;;  %5238 = vrcp.f32 %v8077_v58 }
 0x46c   : > { %v3399_v19 = vmul.f32 %v3367_v10, %v7736_v28  ;;  %v5209_v23 = vpop.eup %5208  ;;  %v3368_v10 = vmul.f32 0.5, %v3336_v48  ;;  %v3460_v48 = vsel %vm2806_vm3, %v3398_v25, 0.0 }
 0x46d   : > { %v5211_v35 = vpop.eup %5210 }
 0x46e   : > { %3452 = vadd.xlane.f32.xlu1 %v3451_v39  ;;  %v8170_v24 = vpop.xlane.xlu1 %2930  ;;  %3449 = vadd.xlane.f32.xlu0 %v3448_v45  ;;  %v2972_v40 = vpop.xlane.xlu0 %2971  ;;  %v3369_v45 = vmul.f32 0.5, %v3337_v62  ;;  %v3463_v54 = vsel %vm2806_vm3, %v3399_v19, 0.0  ;;  %v3400_v56 = vmul.f32 %v3368_v10, %v7723_v8 }
 0x46f   : > { %v3066_v39 = vmul.f32 %v5207_v14, %v2972_v40  ;;  %v5321_v14 = vld [vmem:[%s7034_s18 + $0xa0] sm:$0xff]  ;;  %v5213_v62 = vpop.eup %5212 }
 0x470   : > { %v3339_v5 = vadd.f32 %v5321_v14, %v7523_v26  ;;  %v3401_v26 = vmul.f32 %v3369_v45, %v7758_v33  ;;  %v5324_v14 = vld [vmem:[%s7034_s18 + $0xa8] sm:$0xff] }
 0x471   : > { %3128 = vst.msk [vmem:[%s8185_s7 + $0x8] sm:$0xff] %vm2163_vm0, %v3066_v39 }
 0x472   : > { %3458 = vadd.xlane.f32.xlu1 %v3457_v3  ;;  %v2969_v6 = vpop.xlane.xlu1 %2968  ;;  %3455 = vadd.xlane.f32.xlu0 %v3454_v38  ;;  %v2978_v40 = vpop.xlane.xlu0 %2977  ;;  %v3338_v3 = vadd.f32 %v5322_v50, %v9641_v36  ;;  %v3341_v38 = vadd.f32 %v5323_v57, %v7527_v9  ;;  %v3469_v25 = vsel %vm2806_vm3, %v3401_v26, 0.0  ;;  %v3466_v36 = vsel %vm2806_vm3, %v3400_v56, 0.0 }
 0x473   : > { %v3064_v13 = vmul.f32 %v5209_v23, %v2969_v6  ;;  %v3070_v39 = vmul.f32 %v5211_v35, %v2978_v40  ;;  %v5215_v23 = vpop.eup %5214  ;;  %v3371_v6 = vmul.f32 0.5, %v3339_v5 }
 0x474   : > { %v3370_v45 = vmul.f32 0.5, %v3338_v3  ;;  %v5217_v5 = vpop.eup %5216 }
 0x475   : > { %3127 = vst.msk [vmem:[%s8185_s7] sm:$0xff] %vm2163_vm0, %v3064_v13  ;;  %3130 = vst.msk [vmem:[%s8185_s7 + $0x18] sm:$0xff] %vm2163_vm0, %v3070_v39  ;;  %v9642_v13 = vld [vmem:[#allocation8_spill] sm:$0xff]  ;;  %v3403_v9 = vmul.f32 %v3371_v6, %v7780_v4  ;;  %v5219_v3 = vpop.eup %5218  ;;  %v3373_v39 = vmul.f32 0.5, %v3341_v38  ;;  %v9644_v6 = vld [vmem:[#allocation31_spill] sm:$0xff] }
 0x476   : > { %3464 = vadd.xlane.f32.xlu1 %v3463_v54  ;;  %v2975_v44 = vpop.xlane.xlu1 %2974  ;;  %3461 = vadd.xlane.f32.xlu0 %v3460_v48  ;;  %v2984_v35 = vpop.xlane.xlu0 %2983  ;;  %v3340_v40 = vadd.f32 %v5324_v14, %v9642_v13  ;;  %v3402_v60 = vmul.f32 %v3370_v45, %v7741_v27  ;;  %v9643_v54 = vld [vmem:[#allocation4_spill] sm:$0xff] }
 0x477   : > { %v3068_v19 = vmul.f32 %v5213_v62, %v2975_v44  ;;  %v3074_v50 = vmul.f32 %v5215_v23, %v2984_v35  ;;  %v3343_v62 = vadd.f32 %v5325_v37, %v9643_v54  ;;  %v5326_v23 = vld [vmem:[%s7034_s18 + $0xb8] sm:$0xff]  ;;  %v3475_v56 = vsel %vm2806_vm3, %v3403_v9, 0.0  ;;  %v5221_v35 = vpop.eup %5220 }
 0x478   : > { %v3372_v48 = vmul.f32 0.5, %v3340_v40  ;;  %v3342_v57 = vadd.f32 %v5326_v23, %v9644_v6  ;;  %v3405_v38 = vmul.f32 %v3373_v39, %v7802_v0  ;;  %v3472_v14 = vsel %vm2806_vm3, %v3402_v60, 0.0  ;;  %v5223_v13 = vpop.eup %5222 }
 0x479   : > { %3129 = vst.msk [vmem:[%s8185_s7 + $0x10] sm:$0xff] %vm2163_vm0, %v3068_v19  ;;  %3132 = vst.msk [vmem:[%s8185_s7 + $0x28] sm:$0xff] %vm2163_vm0, %v3074_v50  ;;  %v3375_v40 = vmul.f32 0.5, %v3343_v62  ;;  %v9645_v50 = vld [vmem:[#allocation10_spill] sm:$0xff]  ;;  %v5225_v62 = vpop.eup %5224 }
 0x47a   : > { %3470 = vadd.xlane.f32.xlu1 %v3469_v25  ;;  %v2981_v10 = vpop.xlane.xlu1 %2980  ;;  %3467 = vadd.xlane.f32.xlu0 %v3466_v36  ;;  %v2990_v44 = vpop.xlane.xlu0 %2989  ;;  %v3404_v2 = vmul.f32 %v3372_v48, %v7763_v55  ;;  %v3345_v25 = vadd.f32 %v5327_v1, %v9645_v50  ;;  %v5328_v36 = vld [vmem:[%s7034_s18 + $0xc8] sm:$0xff]  ;;  %v3481_v60 = vsel %vm2806_vm3, %v3405_v38, 0.0 }
 0x47b   : > { %v3072_v26 = vmul.f32 %v5217_v5, %v2981_v10  ;;  %v3078_v19 = vmul.f32 %v5219_v3, %v2990_v44  ;;  %v3374_v10 = vmul.f32 0.5, %v3342_v57  ;;  %v9646_v3 = vld [vmem:[#allocation3_spill] sm:$0xff]  ;;  %v3407_v54 = vmul.f32 %v3375_v40, %v7824_v43  ;;  %v5227_v48 = vpop.eup %5226 }
 0x47c   : > { %v3344_v39 = vadd.f32 %v5328_v36, %v9646_v3  ;;  %v3478_v44 = vsel %vm2806_vm3, %v3404_v2, 0.0  ;;  %v3377_v23 = vmul.f32 0.5, %v3345_v25  ;;  %v5229_v2 = vpop.eup %5228 }
 0x47d   : > { %3131 = vst.msk [vmem:[%s8185_s7 + $0x20] sm:$0xff] %vm2163_vm0, %v3072_v26  ;;  %3134 = vst.msk [vmem:[%s8185_s7 + $0x38] sm:$0xff] %vm2163_vm0, %v3078_v19  ;;  %v3406_v18 = vmul.f32 %v3374_v10, %v7785_v16  ;;  %v5329_v19 = vld [vmem:[%s7034_s18 + $0xd8] sm:$0xff]  ;;  %v5231_v1 = vpop.eup %5230 }
 0x47e   : > { %3476 = vadd.xlane.f32.xlu1 %v3475_v56  ;;  %v2987_v45 = vpop.xlane.xlu1 %2986  ;;  %3473 = vadd.xlane.f32.xlu0 %v3472_v14  ;;  %v2996_v5 = vpop.xlane.xlu0 %2995  ;;  %v3376_v57 = vmul.f32 0.5, %v3344_v39  ;;  %v9647_v56 = vld [vmem:[#allocation9_spill] sm:$0xff]  ;;  %v3409_v14 = vmul.f32 %v3377_v23, %v7846_v32 }
 0x47f   : > { %v3076_v9 = vmul.f32 %v5221_v35, %v2987_v45  ;;  %v3082_v37 = vmul.f32 %v5223_v13, %v2996_v5  ;;  %v3346_v38 = vadd.f32 %v5329_v19, %v9647_v56  ;;  %v3487_v45 = vsel %vm2806_vm3, %v3407_v54, 0.0  ;;  %v5233_v36 = vpop.eup %5232 }
 0x480   : > { %v3484_v40 = vsel %vm2806_vm3, %v3406_v18, 0.0  ;;  %v3408_v7 = vmul.f32 %v3376_v57, %v7807_v46  ;;  %v3493_v10 = vsel %vm2806_vm3, %v3409_v14, 0.0  ;;  %v5235_v54 = vpop.eup %5234 }
 0x481   : > { %3133 = vst.msk [vmem:[%s8185_s7 + $0x30] sm:$0xff] %vm2163_vm0, %v3076_v9  ;;  %3136 = vst.msk [vmem:[%s8185_s7 + $0x48] sm:$0xff] %vm2163_vm0, %v3082_v37  ;;  %v3378_v25 = vmul.f32 0.5, %v3346_v38  ;;  %v9648_v9 = vld [vmem:[#allocation17_spill] sm:$0xff]  ;;  %v9649_v37 = vld [vmem:[#allocation6_spill] sm:$0xff] }
 0x482   : > { %3482 = vadd.xlane.f32.xlu1 %v3481_v60  ;;  %v2993_v26 = vpop.xlane.xlu1 %2992  ;;  %3479 = vadd.xlane.f32.xlu0 %v3478_v44  ;;  %v3002_v6 = vpop.xlane.xlu0 %3001  ;;  %5240 = vrcp.f32 %v9648_v9  ;;  %v3490_v39 = vsel %vm2806_vm3, %v3408_v7, 0.0 }
 0x483   : > { %v3080_v17 = vmul.f32 %v5225_v62, %v2993_v26  ;;  %v3086_v35 = vmul.f32 %v5227_v48, %v3002_v6  ;;  %5242 = vrcp.f32 %v8088_v20  ;;  %v3410_v60 = vmul.f32 %v3378_v25, %v9649_v37  ;;  %v5237_v44 = vpop.eup %5236 }
 0x484   : > { %5244 = vrcp.f32 %v8093_v53  ;;  %v5239_v23 = vpop.eup %5238 }
 0x485   : > { %3135 = vst.msk [vmem:[%s8185_s7 + $0x40] sm:$0xff] %vm2163_vm0, %v3080_v17  ;;  %3138 = vst.msk [vmem:[%s8185_s7 + $0x58] sm:$0xff] %vm2163_vm0, %v3086_v35  ;;  %5246 = vrcp.f32 %v8099_v30  ;;  %v3496_v48 = vsel %vm2806_vm3, %v3410_v60, 0.0 }
 0x486   : > { %3488 = vadd.xlane.f32.xlu1 %v3487_v45  ;;  %v2999_v13 = vpop.xlane.xlu1 %2998  ;;  %3485 = vadd.xlane.f32.xlu0 %v3484_v40  ;;  %v3008_v58 = vpop.xlane.xlu0 %3007  ;;  %5248 = vrcp.f32 %v8105_v15 }
 0x487   : > { %v3084_v50 = vmul.f32 %v5229_v2, %v2999_v13  ;;  %v3090_v5 = vmul.f32 %v5231_v1, %v3008_v58  ;;  %5250 = vrcp.f32 %v8111_v12 }
 0x488   : > { %5252 = vrcp.f32 %v8117_v34 }
 0x489   : > { %3137 = vst.msk [vmem:[%s8185_s7 + $0x50] sm:$0xff] %vm2163_vm0, %v3084_v50  ;;  %3140 = vst.msk [vmem:[%s8185_s7 + $0x68] sm:$0xff] %vm2163_vm0, %v3090_v5  ;;  %5254 = vrcp.f32 %v8123_v42 }
 0x48a   : > { %3494 = vadd.xlane.f32.xlu1 %v3493_v10  ;;  %v3005_v3 = vpop.xlane.xlu1 %3004  ;;  %3491 = vadd.xlane.f32.xlu0 %v3490_v39  ;;  %v3014_v26 = vpop.xlane.xlu0 %3013  ;;  %5256 = vrcp.f32 %v8129_v52 }
 0x48b   : > { %v3088_v62 = vmul.f32 %v5233_v36, %v3005_v3  ;;  %v3094_v20 = vmul.f32 %v5235_v54, %v3014_v26  ;;  %5258 = vrcp.f32 %v8135_v31 }
 0x48c   : > { %v5241_v30 = vpop.eup %5240  ;;  %5260 = vrcp.f32 %v8142_v11 }
 0x48d   : > { %3139 = vst.msk [vmem:[%s8185_s7 + $0x60] sm:$0xff] %vm2163_vm0, %v3088_v62  ;;  %3142 = vst.msk [vmem:[%s8185_s7 + $0x78] sm:$0xff] %vm2163_vm0, %v3094_v20  ;;  %v5243_v19 = vpop.eup %5242  ;;  %5262 = vrcp.f32 %v8148_v63 }
 0x48e   : > { %v3011_v18 = vpop.xlane.xlu1 %3010  ;;  %3497 = vadd.xlane.f32.xlu0 %v3496_v48  ;;  %v3020_v6 = vpop.xlane.xlu0 %3019  ;;  %5264 = vrcp.f32 %v8156_v51 }
 0x48f   : > { %v3092_v17 = vmul.f32 %v5237_v44, %v3011_v18  ;;  %v3098_v53 = vmul.f32 %v5239_v23, %v3020_v6  ;;  %v5245_v15 = vpop.eup %5244  ;;  %5266 = vrcp.f32 %v8162_v41 }
 0x490   : > { %v5247_v45 = vpop.eup %5246  ;;  %5268 = vrcp.f32 %v8170_v24 }
 0x491   : > { %3141 = vst.msk [vmem:[%s8185_s7 + $0x70] sm:$0xff] %vm2163_vm0, %v3092_v17  ;;  %3144 = vst.msk [vmem:[%s8185_s7 + $0x88] sm:$0xff] %vm2163_vm0, %v3098_v53  ;;  %v5249_v34 = vpop.eup %5248 }
 0x492   : > { %v3017_v57 = vpop.xlane.xlu1 %3016  ;;  %v3026_v38 = vpop.xlane.xlu0 %3025 }
 0x493   : > { %v3096_v56 = vmul.f32 %v5241_v30, %v3017_v57  ;;  %v3102_v35 = vmul.f32 %v5243_v19, %v3026_v38  ;;  %v5251_v40 = vpop.eup %5250  ;;  %v9650_v57 = vld [vmem:[#allocation40_spill] sm:$0xff] }
 0x494   : > { %v5253_v52 = vpop.eup %5252 }
 0x495   : > { %3143 = vst.msk [vmem:[%s8185_s7 + $0x80] sm:$0xff] %vm2163_vm0, %v3096_v56  ;;  %3146 = vst.msk [vmem:[%s8185_s7 + $0x98] sm:$0xff] %vm2163_vm0, %v3102_v35  ;;  %v5255_v58 = vpop.eup %5254  ;;  %v9651_v35 = vld [vmem:[#allocation15_spill] sm:$0xff] }
 0x496   : > { %v3023_v12 = vpop.xlane.xlu1 %3022  ;;  %v3032_v2 = vpop.xlane.xlu0 %3031 }
 0x497   : > { %v3100_v14 = vmul.f32 %v5245_v15, %v3023_v12  ;;  %v3106_v13 = vmul.f32 %v5247_v45, %v3032_v2  ;;  %v5257_v11 = vpop.eup %5256  ;;  %v9652_v45 = vld [vmem:[#allocation43_spill] sm:$0xff]  ;;  %v9653_v2 = vld [vmem:[#allocation13_spill] sm:$0xff] }
 0x498   : > { %v5259_v10 = vpop.eup %5258 }
 0x499   : > { %3145 = vst.msk [vmem:[%s8185_s7 + $0x90] sm:$0xff] %vm2163_vm0, %v3100_v14  ;;  %3148 = vst.msk [vmem:[%s8185_s7 + $0xa8] sm:$0xff] %vm2163_vm0, %v3106_v13  ;;  %v5261_v51 = vpop.eup %5260 }
 0x49a   : > { %v3029_v42 = vpop.xlane.xlu1 %3028  ;;  %v3038_v1 = vpop.xlane.xlu0 %3037 }
 0x49b   : > { %v3104_v7 = vmul.f32 %v5249_v34, %v3029_v42  ;;  %v3110_v50 = vmul.f32 %v5251_v40, %v3038_v1  ;;  %v5263_v41 = vpop.eup %5262  ;;  %v9654_v1 = vld [vmem:[#allocation16_spill] sm:$0xff] }
 0x49c   : > { %v5265_v20 = vpop.eup %5264 }
 0x49d   : > { %3147 = vst.msk [vmem:[%s8185_s7 + $0xa0] sm:$0xff] %vm2163_vm0, %v3104_v7  ;;  %3150 = vst.msk [vmem:[%s8185_s7 + $0xb8] sm:$0xff] %vm2163_vm0, %v3110_v50  ;;  %v5267_v24 = vpop.eup %5266 }
 0x49e   : > { %v3035_v31 = vpop.xlane.xlu1 %3034  ;;  %v3044_v9 = vpop.xlane.xlu0 %3043 }
 0x49f   : > { %v3108_v25 = vmul.f32 %v5253_v52, %v3035_v31  ;;  %v3114_v5 = vmul.f32 %v5255_v58, %v3044_v9  ;;  %v5269_v17 = vpop.eup %5268  ;;  %v9655_v52 = vld [vmem:[#allocation12_spill] sm:$0xff]  ;;  %v9656_v58 = vld [vmem:[#allocation39_spill] sm:$0xff] }
 0x4a1   : > { %3149 = vst.msk [vmem:[%s8185_s7 + $0xb0] sm:$0xff] %vm2163_vm0, %v3108_v25  ;;  %3152 = vst.msk [vmem:[%s8185_s7 + $0xc8] sm:$0xff] %vm2163_vm0, %v3114_v5 }
 0x4a2   : > { %v3041_v63 = vpop.xlane.xlu1 %3040  ;;  %v3050_v3 = vpop.xlane.xlu0 %3049 }
 0x4a3   : > { %v3112_v36 = vmul.f32 %v5257_v11, %v3041_v63  ;;  %v3118_v39 = vmul.f32 %v5259_v10, %v3050_v3  ;;  %v9657_v63 = vld [vmem:[#allocation14_spill] sm:$0xff]  ;;  %v8334_v3 = vld [vmem:[%s7034_s18 + $0x100] sm:$0xff] }
 0x4a5   : > { %3151 = vst.msk [vmem:[%s8185_s7 + $0xc0] sm:$0xff] %vm2163_vm0, %v3112_v36  ;;  %3154 = vst.msk [vmem:[%s8185_s7 + $0xd8] sm:$0xff] %vm2163_vm0, %v3118_v39  ;;  %v8339_v39 = vld [vmem:[%s7034_s18 + $0x110] sm:$0xff] }
 0x4a6   : > { %v3047_v60 = vpop.xlane.xlu1 %3046  ;;  %v3056_v62 = vpop.xlane.xlu0 %3055 }
 0x4a7   : > { %v3116_v54 = vmul.f32 %v5261_v51, %v3047_v60  ;;  %v3122_v26 = vmul.f32 %v5263_v41, %v3056_v62  ;;  %v8344_v51 = vld [vmem:[%s7034_s18 + $0x108] sm:$0xff]  ;;  %v8347_v60 = vld [vmem:[%s7034_s18 + $0x118] sm:$0xff]  ;;  %v8354_v41 = vld [vmem:[%s7034_s18 + $0x120] sm:$0xff] }
 0x4a8   : > { %v8364_v62 = vld [vmem:[%s7034_s18 + $0x130] sm:$0xff] }
 0x4a9   : > { %3153 = vst.msk [vmem:[%s8185_s7 + $0xd0] sm:$0xff] %vm2163_vm0, %v3116_v54  ;;  %3156 = vst.msk [vmem:[%s8185_s7 + $0xe8] sm:$0xff] %vm2163_vm0, %v3122_v26  ;;  %v8357_v54 = vld [vmem:[%s7034_s18 + $0x128] sm:$0xff]  ;;  %v8367_v26 = vld [vmem:[%s7034_s18 + $0x138] sm:$0xff] }
 0x4aa   : > { %v3053_v44 = vpop.xlane.xlu1 %3052  ;;  %v3062_v48 = vpop.xlane.xlu0 %3061 }
 0x4ab   : > { %v3120_v18 = vmul.f32 %v5265_v20, %v3053_v44  ;;  %v3126_v23 = vmul.f32 %v5267_v24, %v3062_v48  ;;  %v8374_v20 = vld [vmem:[%s7034_s18 + $0x140] sm:$0xff]  ;;  %v8377_v44 = vld [vmem:[%s7034_s18 + $0x148] sm:$0xff]  ;;  %v8384_v24 = vld [vmem:[%s7034_s18 + $0x150] sm:$0xff] }
 0x4ac   : > { %v8394_v48 = vld [vmem:[%s7034_s18 + $0x160] sm:$0xff] }
 0x4ad   : > { %3155 = vst.msk [vmem:[%s8185_s7 + $0xe0] sm:$0xff] %vm2163_vm0, %v3120_v18  ;;  %3158 = vst.msk [vmem:[%s8185_s7 + $0xf8] sm:$0xff] %vm2163_vm0, %v3126_v23  ;;  %v8387_v18 = vld [vmem:[%s7034_s18 + $0x158] sm:$0xff]  ;;  %v8397_v23 = vld [vmem:[%s7034_s18 + $0x168] sm:$0xff] }
 0x4ae   : > { %v3059_v6 = vpop.xlane.xlu1 %3058  ;;  %v3280_v30 = vpop.permute.xlu0 %3279 }
 0x4af   : > { %v3124_v53 = vmul.f32 %v5269_v17, %v3059_v6  ;;  %v3347_v19 = vadd.f32 %v3280_v30, %v9650_v57  ;;  %v8404_v17 = vld [vmem:[%s7034_s18 + $0x170] sm:$0xff]  ;;  %v8407_v6 = vld [vmem:[%s7034_s18 + $0x178] sm:$0xff]  ;;  %v8417_v30 = vld [vmem:[%s7034_s18 + $0x188] sm:$0xff] }
 0x4b1   : > { %3157 = vst.msk [vmem:[%s8185_s7 + $0xf0] sm:$0xff] %vm2163_vm0, %v3124_v53  ;;  %v3379_v38 = vmul.f32 0.5, %v3347_v19  ;;  %v8414_v53 = vld [vmem:[%s7034_s18 + $0x180] sm:$0xff]  ;;  %v8426_v19 = vld [vmem:[%s7034_s18 + $0x190] sm:$0xff] }
 0x4b2   : > { %v3282_v56 = vpop.permute.xlu1 %3281  ;;  %v3284_v12 = vpop.permute.xlu0 %3283 }
 0x4b3   : > { %v3348_v15 = vadd.f32 %v3282_v56, %v9651_v35  ;;  %v3349_v14 = vadd.f32 %v3284_v12, %v9652_v45  ;;  %v3411_v13 = vmul.f32 %v3379_v38, %v9653_v2  ;;  %v8429_v56 = vld [vmem:[%s7034_s18 + $0x198] sm:$0xff]  ;;  %v8438_v35 = vld [vmem:[%s7034_s18 + $0x1a0] sm:$0xff]  ;;  %v8450_v45 = vld [vmem:[%s7034_s18 + $0x1b0] sm:$0xff] }
 0x4b5   : > { %v3380_v34 = vmul.f32 0.5, %v3348_v15  ;;  %v3381_v40 = vmul.f32 0.5, %v3349_v14  ;;  %v3499_v7 = vsel %vm2806_vm3, %v3411_v13, 0.0  ;;  %v8441_v15 = vld [vmem:[%s7034_s18 + $0x1a8] sm:$0xff]  ;;  %v8453_v14 = vld [vmem:[%s7034_s18 + $0x1b8] sm:$0xff] }
 0x4b6   : > { %v3286_v42 = vpop.permute.xlu1 %3285  ;;  %3500 = vadd.xlane.f32.xlu1 %v3499_v7 }
 0x4b7   : > { %v3350_v50 = vadd.f32 %v3286_v42, %v9654_v1  ;;  %v3412_v31 = vmul.f32 %v3380_v34, %v9655_v52  ;;  %v3413_v25 = vmul.f32 %v3381_v40, %v9656_v58  ;;  %v8462_v34 = vld [vmem:[%s7034_s18 + $0x1c0] sm:$0xff]  ;;  %v8465_v42 = vld [vmem:[%s7034_s18 + $0x1c8] sm:$0xff]  ;;  %v8476_v1 = vld [vmem:[%s7034_s18 + $0x1d0] sm:$0xff] }
 0x4b8   : > { %v9692_v58 = vld [vmem:[#allocation32_spill] sm:$0xff] }
 0x4b9   : > { %v3382_v9 = vmul.f32 0.5, %v3350_v50  ;;  %v3502_v5 = vsel %vm2806_vm3, %v3412_v31, 0.0  ;;  %v3505_v11 = vsel %vm2806_vm3, %v3413_v25, 0.0  ;;  %v8479_v50 = vld [vmem:[%s7034_s18 + $0x1d8] sm:$0xff]  ;;  %v8488_v25 = vld [vmem:[%s7034_s18 + $0x1e0] sm:$0xff] }
 0x4ba   : > { %3503 = vadd.xlane.f32.xlu0 %v3502_v5  ;;  %3506 = vadd.xlane.f32.xlu1 %v3505_v11  ;;  %v8500_v11 = vld [vmem:[%s7034_s18 + $0x1f0] sm:$0xff] }
 0x4bb   : > { %v3414_v10 = vmul.f32 %v3382_v9, %v9657_v63  ;;  %v8491_v9 = vld [vmem:[%s7034_s18 + $0x1e8] sm:$0xff] }
 0x4bc   : > { %9665 = vst [vmem:[#allocation51_spill] sm:$0xff] %v8491_v9 }
 0x4bd   : > { %v3508_v36 = vsel %vm2806_vm3, %v3414_v10, 0.0  ;;  %v8503_v10 = vld [vmem:[%s7034_s18 + $0x1f8] sm:$0xff] }
 0x4be   : > { %3509 = vadd.xlane.f32.xlu0 %v3508_v36  ;;  %9667 = vst [vmem:[#allocation53_spill] sm:$0xff] %v8503_v10 }
 0x4cb   : > { %3640 = vrot.lane.b32.xlu1 %v8334_v3, %s5387_s21 }
 0x4cf   : > { %3644 = vrot.lane.b32.xlu1 %v8339_v39, %s5387_s21 }
 0x4d3   : > { %3646 = vrot.lane.b32.xlu1 %v8347_v60, %s5387_s21 }
 0x4d4   : > { %3642 = vrot.lane.b32.xlu0 %v8344_v51, %s5387_s21 }
 0x4d7   : > { %3650 = vrot.lane.b32.xlu1 %v8357_v54, %s5387_s21 }
 0x4d8   : > { %3648 = vrot.lane.b32.xlu0 %v8354_v41, %s5387_s21 }
 0x4db   : > { %3654 = vrot.lane.b32.xlu1 %v8367_v26, %s5387_s21 }
 0x4dc   : > { %3652 = vrot.lane.b32.xlu0 %v8364_v62, %s5387_s21 }
 0x4df   : > { %3658 = vrot.lane.b32.xlu1 %v8377_v44, %s5387_s21 }
 0x4e0   : > { %3656 = vrot.lane.b32.xlu0 %v8374_v20, %s5387_s21 }
 0x4e3   : > { %3662 = vrot.lane.b32.xlu1 %v8387_v18, %s5387_s21  ;;  %v8419_v57 = vpop.xlane.xlu0 %3416 }
 0x4e4   : > { %3660 = vrot.lane.b32.xlu0 %v8384_v24, %s5387_s21  ;;  %9658 = vst [vmem:[#allocation44_spill] sm:$0xff] %v8419_v57 }
 0x4e7   : > { %3666 = vrot.lane.b32.xlu1 %v8397_v23, %s5387_s21  ;;  %v8435_v38 = vpop.xlane.xlu0 %3422  ;;  %v8443_v12 = vpop.xlane.xlu1 %3419 }
 0x4e8   : > { %3664 = vrot.lane.b32.xlu0 %v8394_v48, %s5387_s21  ;;  %9659 = vst [vmem:[#allocation18_spill] sm:$0xff] %v8435_v38  ;;  %9660 = vst [vmem:[#allocation46_spill] sm:$0xff] %v8443_v12 }
 0x4eb   : > { %3670 = vrot.lane.b32.xlu1 %v8407_v6, %s5387_s21  ;;  %v8455_v13 = vpop.xlane.xlu0 %3425  ;;  %v8467_v40 = vpop.xlane.xlu1 %3428 }
 0x4ec   : > { %3668 = vrot.lane.b32.xlu0 %v8404_v17, %s5387_s21  ;;  %9661 = vst [vmem:[#allocation47_spill] sm:$0xff] %v8455_v13  ;;  %9662 = vst [vmem:[#allocation48_spill] sm:$0xff] %v8467_v40 }
 0x4ef   : > { %3674 = vrot.lane.b32.xlu1 %v8417_v30, %s5387_s21  ;;  %v8473_v7 = vpop.xlane.xlu0 %3431  ;;  %v8481_v31 = vpop.xlane.xlu1 %3434 }
 0x4f0   : > { %3672 = vrot.lane.b32.xlu0 %v8414_v53, %s5387_s21  ;;  %9663 = vst [vmem:[#allocation49_spill] sm:$0xff] %v8473_v7  ;;  %9664 = vst [vmem:[#allocation50_spill] sm:$0xff] %v8481_v31 }
 0x4f3   : > { %3678 = vrot.lane.b32.xlu1 %v8429_v56, %s5387_s21  ;;  %v8493_v5 = vpop.xlane.xlu0 %3437  ;;  %v8505_v36 = vpop.xlane.xlu1 %3440 }
 0x4f4   : > { %3676 = vrot.lane.b32.xlu0 %v8426_v19, %s5387_s21  ;;  %9666 = vst [vmem:[#allocation52_spill] sm:$0xff] %v8493_v5  ;;  %9668 = vst [vmem:[#allocation54_spill] sm:$0xff] %v8505_v36 }
 0x4f7   : > { %3682 = vrot.lane.b32.xlu1 %v8441_v15, %s5387_s21  ;;  %v8511_v7 = vpop.xlane.xlu0 %3443  ;;  %v8513_v5 = vpop.xlane.xlu1 %3446 }
 0x4f8   : > { %3680 = vrot.lane.b32.xlu0 %v8438_v35, %s5387_s21  ;;  %9669 = vst [vmem:[#allocation55_spill] sm:$0xff] %v8511_v7  ;;  %9670 = vst [vmem:[#allocation56_spill] sm:$0xff] %v8513_v5 }
 0x4fb   : > { %3686 = vrot.lane.b32.xlu1 %v8453_v14, %s5387_s21  ;;  %v8515_v31 = vpop.xlane.xlu0 %3449  ;;  %v8517_v13 = vpop.xlane.xlu1 %3452 }
 0x4fc   : > { %3684 = vrot.lane.b32.xlu0 %v8450_v45, %s5387_s21  ;;  %9671 = vst [vmem:[#allocation57_spill] sm:$0xff] %v8515_v31  ;;  %9672 = vst [vmem:[#allocation58_spill] sm:$0xff] %v8517_v13 }
 0x4ff   : > { %3690 = vrot.lane.b32.xlu1 %v8465_v42, %s5387_s21  ;;  %v8519_v40 = vpop.xlane.xlu0 %3455  ;;  %v8521_v38 = vpop.xlane.xlu1 %3458 }
 0x500   : > { %3688 = vrot.lane.b32.xlu0 %v8462_v34, %s5387_s21  ;;  %9673 = vst [vmem:[#allocation59_spill] sm:$0xff] %v8519_v40  ;;  %9674 = vst [vmem:[#allocation60_spill] sm:$0xff] %v8521_v38 }
 0x503   : > { %3694 = vrot.lane.b32.xlu1 %v8479_v50, %s5387_s21  ;;  %v8523_v12 = vpop.xlane.xlu0 %3461  ;;  %v8525_v36 = vpop.xlane.xlu1 %3464 }
 0x504   : > { %3692 = vrot.lane.b32.xlu0 %v8476_v1, %s5387_s21  ;;  %9675 = vst [vmem:[#allocation61_spill] sm:$0xff] %v8523_v12  ;;  %9676 = vst [vmem:[#allocation62_spill] sm:$0xff] %v8525_v36 }
 0x507   : > { %3698 = vrot.lane.b32.xlu1 %v8491_v9, %s5387_s21  ;;  %v8527_v57 = vpop.xlane.xlu0 %3467  ;;  %v8529_v63 = vpop.xlane.xlu1 %3470 }
 0x508   : > { %3696 = vrot.lane.b32.xlu0 %v8488_v25, %s5387_s21  ;;  %9677 = vst [vmem:[#allocation63_spill] sm:$0xff] %v8527_v57  ;;  %9678 = vst [vmem:[#allocation64_spill] sm:$0xff] %v8529_v63 }
 0x50b   : > { %3702 = vrot.lane.b32.xlu1 %v8503_v10, %s5387_s21  ;;  %v8531_v10 = vpop.xlane.xlu0 %3473  ;;  %v8533_v7 = vpop.xlane.xlu1 %3476 }
 0x50c   : > { %3700 = vrot.lane.b32.xlu0 %v8500_v11, %s5387_s21  ;;  %9679 = vst [vmem:[#allocation65_spill] sm:$0xff] %v8531_v10  ;;  %9680 = vst [vmem:[#allocation66_spill] sm:$0xff] %v8533_v7 }
 0x50f   : > { %v8535_v5 = vpop.xlane.xlu0 %3479  ;;  %v8537_v31 = vpop.xlane.xlu1 %3482 }
 0x510   : > { %9681 = vst [vmem:[#allocation67_spill] sm:$0xff] %v8535_v5  ;;  %9682 = vst [vmem:[#allocation68_spill] sm:$0xff] %v8537_v31 }
 0x513   : > { %v8539_v13 = vpop.xlane.xlu0 %3485  ;;  %v8541_v40 = vpop.xlane.xlu1 %3488 }
 0x514   : > { %9683 = vst [vmem:[#allocation69_spill] sm:$0xff] %v8539_v13  ;;  %9684 = vst [vmem:[#allocation70_spill] sm:$0xff] %v8541_v40 }
 0x517   : > { %v8543_v38 = vpop.xlane.xlu0 %3491  ;;  %v8545_v12 = vpop.xlane.xlu1 %3494 }
 0x518   : > { %9685 = vst [vmem:[#allocation71_spill] sm:$0xff] %v8543_v38  ;;  %9686 = vst [vmem:[#allocation72_spill] sm:$0xff] %v8545_v12 }
 0x51b   : > { %v8547_v36 = vpop.xlane.xlu0 %3497 }
 0x51c   : > { %9687 = vst [vmem:[#allocation73_spill] sm:$0xff] %v8547_v36 }
 0x543   : > { %v8549_v57 = vpop.xlane.xlu1 %3500 }
 0x544   : > { %9688 = vst [vmem:[#allocation19_spill] sm:$0xff] %v8549_v57 }
 0x547   : > { %v8551_v63 = vpop.xlane.xlu0 %3503  ;;  %v8553_v10 = vpop.xlane.xlu1 %3506 }
 0x548   : > { %9689 = vst [vmem:[#allocation20_spill] sm:$0xff] %v8551_v63  ;;  %9690 = vst [vmem:[#allocation21_spill] sm:$0xff] %v8553_v10 }
 0x54b   : > { %v8555_v7 = vpop.xlane.xlu0 %3509  ;;  %v3641_v5 = vpop.permute.xlu1 %3640 }
 0x54c   : > { %9691 = vst [vmem:[#allocation22_spill] sm:$0xff] %v8555_v7  ;;  %v3736_v31 = vadd.f32 %v8334_v3, %v3641_v5  ;;  %v9693_v7 = vld [vmem:[#allocation35_spill] sm:$0xff] }
 0x54d   : > { %v9694_v5 = vld [vmem:[#allocation75_spill] sm:$0xff] }
 0x54e   : > { %v3768_v52 = vmul.f32 0.5, %v3736_v31 }
 0x54f   : > { %v3643_v13 = vpop.permute.xlu0 %3642  ;;  %v3645_v38 = vpop.permute.xlu1 %3644 }
 0x550   : > { %v3737_v40 = vadd.f32 %v8344_v51, %v3643_v13  ;;  %v3738_v12 = vadd.f32 %v8339_v39, %v3645_v38  ;;  %v3800_v36 = vmul.f32 %v3768_v52, %v9692_v58 }
 0x552   : > { %v3769_v37 = vmul.f32 0.5, %v3737_v40  ;;  %v3770_v9 = vmul.f32 0.5, %v3738_v12  ;;  %v3832_v63 = vsel %vm2806_vm3, %v3800_v36, 0.0  ;;  %v9695_v36 = vld [vmem:[#allocation77_spill] sm:$0xff] }
 0x553   : > { %v3649_v57 = vpop.permute.xlu0 %3648  ;;  %3833 = vadd.xlane.f32.xlu0 %v3832_v63  ;;  %v3647_v3 = vpop.permute.xlu1 %3646 }
 0x554   : > { %v3740_v10 = vadd.f32 %v8354_v41, %v3649_v57  ;;  %v3801_v2 = vmul.f32 %v3769_v37, %v9693_v7  ;;  %v3739_v31 = vadd.f32 %v8347_v60, %v3647_v3  ;;  %v3802_v51 = vmul.f32 %v3770_v9, %v9694_v5  ;;  %v9696_v57 = vld [vmem:[#allocation74_spill] sm:$0xff] }
 0x556   : > { %v3772_v13 = vmul.f32 0.5, %v3740_v10  ;;  %v3835_v39 = vsel %vm2806_vm3, %v3801_v2, 0.0  ;;  %v3771_v38 = vmul.f32 0.5, %v3739_v31  ;;  %v3838_v12 = vsel %vm2806_vm3, %v3802_v51, 0.0 }
 0x557   : > { %3836 = vadd.xlane.f32.xlu1 %v3835_v39  ;;  %v3653_v52 = vpop.permute.xlu0 %3652  ;;  %3839 = vadd.xlane.f32.xlu0 %v3838_v12  ;;  %v3651_v37 = vpop.permute.xlu1 %3650  ;;  %v9697_v39 = vld [vmem:[#allocation79_spill] sm:$0xff]  ;;  %v9698_v12 = vld [vmem:[#allocation76_spill] sm:$0xff] }
 0x558   : > { %v3742_v40 = vadd.f32 %v8364_v62, %v3653_v52  ;;  %v3804_v41 = vmul.f32 %v3772_v13, %v9695_v36  ;;  %v3741_v63 = vadd.f32 %v8357_v54, %v3651_v37  ;;  %v3803_v60 = vmul.f32 %v3771_v38, %v9696_v57 }
 0x55a   : > { %v3774_v3 = vmul.f32 0.5, %v3742_v40  ;;  %v3844_v9 = vsel %vm2806_vm3, %v3804_v41, 0.0  ;;  %v3773_v10 = vmul.f32 0.5, %v3741_v63  ;;  %v3841_v31 = vsel %vm2806_vm3, %v3803_v60, 0.0 }
 0x55b   : > { %3845 = vadd.xlane.f32.xlu1 %v3844_v9  ;;  %v3657_v2 = vpop.permute.xlu0 %3656  ;;  %3842 = vadd.xlane.f32.xlu0 %v3841_v31  ;;  %v3655_v13 = vpop.permute.xlu1 %3654  ;;  %v9699_v9 = vld [vmem:[#allocation80_spill] sm:$0xff]  ;;  %v9700_v31 = vld [vmem:[#allocation78_spill] sm:$0xff] }
 0x55c   : > { %v3744_v51 = vadd.f32 %v8374_v20, %v3657_v2  ;;  %v3806_v62 = vmul.f32 %v3774_v3, %v9697_v39  ;;  %v3743_v52 = vadd.f32 %v8367_v26, %v3655_v13  ;;  %v3805_v54 = vmul.f32 %v3773_v10, %v9698_v12 }
 0x55e   : > { %v3776_v37 = vmul.f32 0.5, %v3744_v51  ;;  %v3850_v38 = vsel %vm2806_vm3, %v3806_v62, 0.0  ;;  %v3775_v41 = vmul.f32 0.5, %v3743_v52  ;;  %v3847_v63 = vsel %vm2806_vm3, %v3805_v54, 0.0 }
 0x55f   : > { %3851 = vadd.xlane.f32.xlu1 %v3850_v38  ;;  %v3661_v40 = vpop.permute.xlu0 %3660  ;;  %3848 = vadd.xlane.f32.xlu0 %v3847_v63  ;;  %v3659_v3 = vpop.permute.xlu1 %3658 }
 0x560   : > { %v3746_v60 = vadd.f32 %v8384_v24, %v3661_v40  ;;  %v3808_v20 = vmul.f32 %v3776_v37, %v9699_v9  ;;  %v3745_v2 = vadd.f32 %v8377_v44, %v3659_v3  ;;  %v3807_v26 = vmul.f32 %v3775_v41, %v9700_v31 }
 0x562   : > { %v3778_v13 = vmul.f32 0.5, %v3746_v60  ;;  %v3856_v10 = vsel %vm2806_vm3, %v3808_v20, 0.0  ;;  %v3777_v62 = vmul.f32 0.5, %v3745_v2  ;;  %v3853_v52 = vsel %vm2806_vm3, %v3807_v26, 0.0 }
 0x563   : > { %3857 = vadd.xlane.f32.xlu1 %v3856_v10  ;;  %v3665_v51 = vpop.permute.xlu0 %3664  ;;  %3854 = vadd.xlane.f32.xlu0 %v3853_v52  ;;  %v3663_v37 = vpop.permute.xlu1 %3662 }
 0x564   : > { %v3748_v54 = vadd.f32 %v8394_v48, %v3665_v51  ;;  %v3810_v24 = vmul.f32 %v3778_v13, %v7666_v22  ;;  %v3747_v38 = vadd.f32 %v8387_v18, %v3663_v37  ;;  %v3809_v44 = vmul.f32 %v3777_v62, %v7627_v47 }
 0x566   : > { %v3780_v40 = vmul.f32 0.5, %v3748_v54  ;;  %v3862_v41 = vsel %vm2806_vm3, %v3810_v24, 0.0  ;;  %v3779_v60 = vmul.f32 0.5, %v3747_v38  ;;  %v3859_v20 = vsel %vm2806_vm3, %v3809_v44, 0.0 }
 0x567   : > { %3863 = vadd.xlane.f32.xlu1 %v3862_v41  ;;  %v3669_v63 = vpop.permute.xlu0 %3668  ;;  %3860 = vadd.xlane.f32.xlu0 %v3859_v20  ;;  %v3667_v2 = vpop.permute.xlu1 %3666 }
 0x568   : > { %v3750_v3 = vadd.f32 %v8404_v17, %v3669_v63  ;;  %v3812_v48 = vmul.f32 %v3780_v40, %v7688_v59  ;;  %v3749_v26 = vadd.f32 %v8397_v23, %v3667_v2  ;;  %v3811_v18 = vmul.f32 %v3779_v60, %v7649_v29 }
 0x56a   : > { %v3782_v13 = vmul.f32 0.5, %v3750_v3  ;;  %v3868_v10 = vsel %vm2806_vm3, %v3812_v48, 0.0  ;;  %v3781_v62 = vmul.f32 0.5, %v3749_v26  ;;  %v3865_v52 = vsel %vm2806_vm3, %v3811_v18, 0.0 }
 0x56b   : > { %3869 = vadd.xlane.f32.xlu1 %v3868_v10  ;;  %v3673_v51 = vpop.permute.xlu0 %3672  ;;  %3866 = vadd.xlane.f32.xlu0 %v3865_v52  ;;  %v3671_v24 = vpop.permute.xlu1 %3670 }
 0x56c   : > { %v3752_v54 = vadd.f32 %v8414_v53, %v3673_v51  ;;  %v3814_v17 = vmul.f32 %v3782_v13, %v7708_v49  ;;  %v3751_v37 = vadd.f32 %v8407_v6, %v3671_v24  ;;  %v3813_v23 = vmul.f32 %v3781_v62, %v7671_v21 }
 0x56e   : > { %v3784_v38 = vmul.f32 0.5, %v3752_v54  ;;  %v3874_v44 = vsel %vm2806_vm3, %v3814_v17, 0.0  ;;  %v3783_v41 = vmul.f32 0.5, %v3751_v37  ;;  %v3871_v63 = vsel %vm2806_vm3, %v3813_v23, 0.0 }
 0x56f   : > { %3875 = vadd.xlane.f32.xlu1 %v3874_v44  ;;  %v3677_v40 = vpop.permute.xlu0 %3676  ;;  %3872 = vadd.xlane.f32.xlu0 %v3871_v63  ;;  %v3675_v20 = vpop.permute.xlu1 %3674 }
 0x570   : > { %v3754_v60 = vadd.f32 %v8426_v19, %v3677_v40  ;;  %v3816_v53 = vmul.f32 %v3784_v38, %v7736_v28  ;;  %v3753_v3 = vadd.f32 %v8417_v30, %v3675_v20  ;;  %v3815_v6 = vmul.f32 %v3783_v41, %v7693_v61 }
 0x572   : > { %v3786_v48 = vmul.f32 0.5, %v3754_v60  ;;  %v3880_v2 = vsel %vm2806_vm3, %v3816_v53, 0.0  ;;  %v3785_v18 = vmul.f32 0.5, %v3753_v3  ;;  %v3877_v13 = vsel %vm2806_vm3, %v3815_v6, 0.0 }
 0x573   : > { %3881 = vadd.xlane.f32.xlu1 %v3880_v2  ;;  %v3681_v26 = vpop.permute.xlu0 %3680  ;;  %3878 = vadd.xlane.f32.xlu0 %v3877_v13  ;;  %v3679_v51 = vpop.permute.xlu1 %3678 }
 0x574   : > { %v3756_v10 = vadd.f32 %v8438_v35, %v3681_v26  ;;  %v3818_v19 = vmul.f32 %v3786_v48, %v7758_v33  ;;  %v3755_v62 = vadd.f32 %v8429_v56, %v3679_v51  ;;  %v3817_v30 = vmul.f32 %v3785_v18, %v7723_v8 }
 0x576   : > { %v3788_v52 = vmul.f32 0.5, %v3756_v10  ;;  %v3886_v54 = vsel %vm2806_vm3, %v3818_v19, 0.0  ;;  %v3787_v24 = vmul.f32 0.5, %v3755_v62  ;;  %v3883_v37 = vsel %vm2806_vm3, %v3817_v30, 0.0 }
 0x577   : > { %3887 = vadd.xlane.f32.xlu1 %v3886_v54  ;;  %v3685_v17 = vpop.permute.xlu0 %3684  ;;  %3884 = vadd.xlane.f32.xlu0 %v3883_v37  ;;  %v3683_v38 = vpop.permute.xlu1 %3682 }
 0x578   : > { %v3758_v23 = vadd.f32 %v8450_v45, %v3685_v17  ;;  %v3820_v35 = vmul.f32 %v3788_v52, %v7780_v4  ;;  %v3757_v44 = vadd.f32 %v8441_v15, %v3683_v38  ;;  %v3819_v56 = vmul.f32 %v3787_v24, %v7741_v27 }
 0x57a   : > { %v3790_v40 = vmul.f32 0.5, %v3758_v23  ;;  %v3892_v41 = vsel %vm2806_vm3, %v3820_v35, 0.0  ;;  %v3789_v60 = vmul.f32 0.5, %v3757_v44  ;;  %v3889_v53 = vsel %vm2806_vm3, %v3819_v56, 0.0 }
 0x57b   : > { %3893 = vadd.xlane.f32.xlu1 %v3892_v41  ;;  %v3689_v63 = vpop.permute.xlu0 %3688  ;;  %3890 = vadd.xlane.f32.xlu0 %v3889_v53  ;;  %v3687_v3 = vpop.permute.xlu1 %3686  ;;  %v9702_v53 = vld [vmem:[#allocation51_spill] sm:$0xff] }
 0x57c   : > { %v3760_v20 = vadd.f32 %v8462_v34, %v3689_v63  ;;  %v3822_v45 = vmul.f32 %v3790_v40, %v7802_v0  ;;  %v3759_v6 = vadd.f32 %v8453_v14, %v3687_v3  ;;  %v3821_v15 = vmul.f32 %v3789_v60, %v7763_v55  ;;  %v9701_v63 = vld [vmem:[#allocation13_spill] sm:$0xff] }
 0x57e   : > { %v3792_v48 = vmul.f32 0.5, %v3760_v20  ;;  %v3898_v2 = vsel %vm2806_vm3, %v3822_v45, 0.0  ;;  %v3791_v18 = vmul.f32 0.5, %v3759_v6  ;;  %v3895_v13 = vsel %vm2806_vm3, %v3821_v15, 0.0  ;;  %v9703_v45 = vld [vmem:[#allocation6_spill] sm:$0xff] }
 0x57f   : > { %3899 = vadd.xlane.f32.xlu1 %v3898_v2  ;;  %v3693_v26 = vpop.permute.xlu0 %3692  ;;  %3896 = vadd.xlane.f32.xlu0 %v3895_v13  ;;  %v3691_v19 = vpop.permute.xlu1 %3690  ;;  %v9704_v2 = vld [vmem:[#allocation39_spill] sm:$0xff] }
 0x580   : > { %v3762_v10 = vadd.f32 %v8476_v1, %v3693_v26  ;;  %v3824_v34 = vmul.f32 %v3792_v48, %v7824_v43  ;;  %v3761_v51 = vadd.f32 %v8465_v42, %v3691_v19  ;;  %v3823_v14 = vmul.f32 %v3791_v18, %v7785_v16  ;;  %v9705_v18 = vld [vmem:[#allocation12_spill] sm:$0xff] }
 0x582   : > { %v3794_v62 = vmul.f32 0.5, %v3762_v10  ;;  %v3904_v30 = vsel %vm2806_vm3, %v3824_v34, 0.0  ;;  %v3793_v54 = vmul.f32 0.5, %v3761_v51  ;;  %v3901_v17 = vsel %vm2806_vm3, %v3823_v14, 0.0  ;;  %v9706_v10 = vld [vmem:[#allocation53_spill] sm:$0xff] }
 0x583   : > { %3905 = vadd.xlane.f32.xlu1 %v3904_v30  ;;  %v3697_v52 = vpop.permute.xlu0 %3696  ;;  %3902 = vadd.xlane.f32.xlu0 %v3901_v17  ;;  %v3695_v37 = vpop.permute.xlu1 %3694  ;;  %v8659_v17 = vld [vmem:[%s7034_s18 + $0x210] sm:$0xff] }
 0x584   : > { %v3764_v24 = vadd.f32 %v8488_v25, %v3697_v52  ;;  %v3826_v1 = vmul.f32 %v3794_v62, %v7846_v32  ;;  %v3763_v23 = vadd.f32 %v8479_v50, %v3695_v37  ;;  %v3825_v42 = vmul.f32 %v3793_v54, %v7807_v46  ;;  %v9707_v62 = vld [vmem:[#allocation14_spill] sm:$0xff]  ;;  %v8654_v54 = vld [vmem:[%s7034_s18 + $0x200] sm:$0xff]  ;;  %v8672_v37 = vld [vmem:[%s7034_s18 + $0x228] sm:$0xff] }
 0x586   : > { %v3796_v35 = vmul.f32 0.5, %v3764_v24  ;;  %v3910_v38 = vsel %vm2806_vm3, %v3826_v1, 0.0  ;;  %v3795_v56 = vmul.f32 0.5, %v3763_v23  ;;  %v3907_v40 = vsel %vm2806_vm3, %v3825_v42, 0.0  ;;  %v8664_v24 = vld [vmem:[%s7034_s18 + $0x218] sm:$0xff]  ;;  %v8667_v1 = vld [vmem:[%s7034_s18 + $0x208] sm:$0xff] }
 0x587   : > { %3911 = vadd.xlane.f32.xlu1 %v3910_v38  ;;  %v3701_v44 = vpop.permute.xlu0 %3700  ;;  %3908 = vadd.xlane.f32.xlu0 %v3907_v40  ;;  %v3699_v60 = vpop.permute.xlu1 %3698  ;;  %v8677_v23 = vld [vmem:[%s7034_s18 + $0x220] sm:$0xff]  ;;  %v8682_v42 = vld [vmem:[%s7034_s18 + $0x238] sm:$0xff]  ;;  %v8692_v38 = vld [vmem:[%s7034_s18 + $0x248] sm:$0xff] }
 0x588   : > { %v3766_v41 = vadd.f32 %v8500_v11, %v3701_v44  ;;  %v3828_v25 = vmul.f32 %v3796_v35, %v9701_v63  ;;  %v3765_v20 = vadd.f32 %v9702_v53, %v3699_v60  ;;  %v3827_v50 = vmul.f32 %v3795_v56, %v9703_v45  ;;  %v8687_v35 = vld [vmem:[%s7034_s18 + $0x230] sm:$0xff]  ;;  %v8697_v44 = vld [vmem:[%s7034_s18 + $0x240] sm:$0xff]  ;;  %v8702_v56 = vld [vmem:[%s7034_s18 + $0x258] sm:$0xff] }
 0x589   : > { %v8707_v40 = vld [vmem:[%s7034_s18 + $0x250] sm:$0xff]  ;;  %v8722_v60 = vld [vmem:[%s7034_s18 + $0x278] sm:$0xff] }
 0x58a   : > { %v3798_v3 = vmul.f32 0.5, %v3766_v41  ;;  %v3916_v6 = vsel %vm2806_vm3, %v3828_v25, 0.0  ;;  %v3797_v15 = vmul.f32 0.5, %v3765_v20  ;;  %v3913_v48 = vsel %vm2806_vm3, %v3827_v50, 0.0  ;;  %v8712_v41 = vld [vmem:[%s7034_s18 + $0x268] sm:$0xff]  ;;  %v8717_v25 = vld [vmem:[%s7034_s18 + $0x260] sm:$0xff] }
 0x58b   : > { %3917 = vadd.xlane.f32.xlu1 %v3916_v6  ;;  %3914 = vadd.xlane.f32.xlu0 %v3913_v48  ;;  %v3703_v11 = vpop.permute.xlu1 %3702  ;;  %v8727_v53 = vld [vmem:[%s7034_s18 + $0x270] sm:$0xff]  ;;  %v8732_v20 = vld [vmem:[%s7034_s18 + $0x288] sm:$0xff]  ;;  %v8737_v50 = vld [vmem:[%s7034_s18 + $0x280] sm:$0xff] }
 0x58c   : > { %v3830_v26 = vmul.f32 %v3798_v3, %v9704_v2  ;;  %v3829_v13 = vmul.f32 %v3797_v15, %v9705_v18  ;;  %v3767_v34 = vadd.f32 %v9706_v10, %v3703_v11  ;;  %v8742_v3 = vld [vmem:[%s7034_s18 + $0x298] sm:$0xff]  ;;  %v8747_v6 = vld [vmem:[%s7034_s18 + $0x290] sm:$0xff]  ;;  %v8752_v15 = vld [vmem:[%s7034_s18 + $0x2a8] sm:$0xff] }
 0x58d   : > { %v8757_v48 = vld [vmem:[%s7034_s18 + $0x2a0] sm:$0xff]  ;;  %v8767_v11 = vld [vmem:[%s7034_s18 + $0x2b0] sm:$0xff] }
 0x58e   : > { %v3922_v19 = vsel %vm2806_vm3, %v3830_v26, 0.0  ;;  %v3799_v51 = vmul.f32 0.5, %v3767_v34  ;;  %v3919_v14 = vsel %vm2806_vm3, %v3829_v13, 0.0  ;;  %v8762_v26 = vld [vmem:[%s7034_s18 + $0x2b8] sm:$0xff]  ;;  %v8772_v13 = vld [vmem:[%s7034_s18 + $0x2c8] sm:$0xff]  ;;  %v8777_v10 = vld [vmem:[%s7034_s18 + $0x2c0] sm:$0xff] }
 0x58f   : > { %3923 = vadd.xlane.f32.xlu1 %v3922_v19  ;;  %3920 = vadd.xlane.f32.xlu0 %v3919_v14  ;;  %v8782_v34 = vld [vmem:[%s7034_s18 + $0x2d8] sm:$0xff]  ;;  %v8787_v19 = vld [vmem:[%s7034_s18 + $0x2d0] sm:$0xff]  ;;  %v8797_v14 = vld [vmem:[%s7034_s18 + $0x2e0] sm:$0xff] }
 0x590   : > { %v3831_v30 = vmul.f32 %v3799_v51, %v9707_v62  ;;  %9708 = vst [vmem:[#allocation23_spill] sm:$0xff] %v8782_v34  ;;  %9709 = vst [vmem:[#allocation24_spill] sm:$0xff] %v8787_v19  ;;  %v8792_v51 = vld [vmem:[%s7034_s18 + $0x2e8] sm:$0xff] }
 0x591   : > { %9710 = vst [vmem:[#allocation25_spill] sm:$0xff] %v8792_v51  ;;  %9711 = vst [vmem:[#allocation26_spill] sm:$0xff] %v8797_v14 }
 0x592   : > { %v3925_v52 = vsel %vm2806_vm3, %v3831_v30, 0.0  ;;  %v8802_v30 = vld [vmem:[%s7034_s18 + $0x2f8] sm:$0xff] }
 0x593   : > { %3926 = vadd.xlane.f32.xlu0 %v3925_v52  ;;  %9712 = vst [vmem:[#allocation27_spill] sm:$0xff] %v8802_v30  ;;  %v8807_v52 = vld [vmem:[%s7034_s18 + $0x2f0] sm:$0xff] }
 0x594   : > { %9713 = vst [vmem:[#allocation28_spill] sm:$0xff] %v8807_v52 }
 0x5a0   : > { %4057 = vrot.lane.b32.xlu1 %v8654_v54, %s5387_s21 }
 0x5a4   : > { %4061 = vrot.lane.b32.xlu1 %v8659_v17, %s5387_s21 }
 0x5a8   : > { %4063 = vrot.lane.b32.xlu1 %v8664_v24, %s5387_s21 }
 0x5a9   : > { %4059 = vrot.lane.b32.xlu0 %v8667_v1, %s5387_s21 }
 0x5ac   : > { %4067 = vrot.lane.b32.xlu1 %v8672_v37, %s5387_s21 }
 0x5ad   : > { %4065 = vrot.lane.b32.xlu0 %v8677_v23, %s5387_s21 }
 0x5b0   : > { %4071 = vrot.lane.b32.xlu1 %v8682_v42, %s5387_s21 }
 0x5b1   : > { %4069 = vrot.lane.b32.xlu0 %v8687_v35, %s5387_s21 }
 0x5b4   : > { %4075 = vrot.lane.b32.xlu1 %v8692_v38, %s5387_s21 }
 0x5b5   : > { %4073 = vrot.lane.b32.xlu0 %v8697_v44, %s5387_s21 }
 0x5b8   : > { %4079 = vrot.lane.b32.xlu1 %v8702_v56, %s5387_s21 }
 0x5b9   : > { %4077 = vrot.lane.b32.xlu0 %v8707_v40, %s5387_s21 }
 0x5bc   : > { %4083 = vrot.lane.b32.xlu1 %v8712_v41, %s5387_s21 }
 0x5bd   : > { %4081 = vrot.lane.b32.xlu0 %v8717_v25, %s5387_s21 }
 0x5c0   : > { %4087 = vrot.lane.b32.xlu1 %v8722_v60, %s5387_s21 }
 0x5c1   : > { %4085 = vrot.lane.b32.xlu0 %v8727_v53, %s5387_s21 }
 0x5c4   : > { %4091 = vrot.lane.b32.xlu1 %v8732_v20, %s5387_s21 }
 0x5c5   : > { %4089 = vrot.lane.b32.xlu0 %v8737_v50, %s5387_s21 }
 0x5c8   : > { %4095 = vrot.lane.b32.xlu1 %v8742_v3, %s5387_s21 }
 0x5c9   : > { %4093 = vrot.lane.b32.xlu0 %v8747_v6, %s5387_s21 }
 0x5cc   : > { %4099 = vrot.lane.b32.xlu1 %v8752_v15, %s5387_s21 }
 0x5cd   : > { %4097 = vrot.lane.b32.xlu0 %v8757_v48, %s5387_s21 }
 0x5d0   : > { %4103 = vrot.lane.b32.xlu1 %v8762_v26, %s5387_s21 }
 0x5d1   : > { %4101 = vrot.lane.b32.xlu0 %v8767_v11, %s5387_s21 }
 0x5d4   : > { %4107 = vrot.lane.b32.xlu1 %v8772_v13, %s5387_s21 }
 0x5d5   : > { %4105 = vrot.lane.b32.xlu0 %v8777_v10, %s5387_s21 }
 0x5d8   : > { %4111 = vrot.lane.b32.xlu1 %v8782_v34, %s5387_s21 }
 0x5d9   : > { %4109 = vrot.lane.b32.xlu0 %v8787_v19, %s5387_s21 }
 0x5dc   : > { %4115 = vrot.lane.b32.xlu1 %v8792_v51, %s5387_s21 }
 0x5dd   : > { %4113 = vrot.lane.b32.xlu0 %v8797_v14, %s5387_s21 }
 0x5e0   : > { %4119 = vrot.lane.b32.xlu1 %v8802_v30, %s5387_s21  ;;  %v8811_v62 = vpop.xlane.xlu0 %3833 }
 0x5e1   : > { %9714 = vst [vmem:[#allocation29_spill] sm:$0xff] %v8811_v62  ;;  %4117 = vrot.lane.b32.xlu0 %v8807_v52, %s5387_s21  ;;  %s8984_s21 = scalar_lea.vmem %s9195_s3, %s5681_s29 }
 0x5e4   : > { %v8815_v2 = vpop.xlane.xlu1 %3836  ;;  %v8817_v18 = vpop.xlane.xlu0 %3839 }
 0x5e5   : > { %9715 = vst [vmem:[#allocation30_spill] sm:$0xff] %v8815_v2  ;;  %9716 = vst [vmem:[#allocation33_spill] sm:$0xff] %v8817_v18 }
 0x5e8   : > { %v8819_v63 = vpop.xlane.xlu1 %3845  ;;  %v8821_v51 = vpop.xlane.xlu0 %3842 }
 0x5e9   : > { %9717 = vst [vmem:[#allocation34_spill] sm:$0xff] %v8819_v63  ;;  %9718 = vst [vmem:[#allocation37_spill] sm:$0xff] %v8821_v51 }
 0x5ec   : > { %v8823_v45 = vpop.xlane.xlu1 %3851  ;;  %v8825_v14 = vpop.xlane.xlu0 %3848 }
 0x5ed   : > { %9719 = vst [vmem:[#allocation38_spill] sm:$0xff] %v8823_v45  ;;  %9720 = vst [vmem:[#allocation41_spill] sm:$0xff] %v8825_v14 }
 0x5f0   : > { %v8827_v32 = vpop.xlane.xlu1 %3857  ;;  %v8829_v30 = vpop.xlane.xlu0 %3854 }
 0x5f1   : > { %9721 = vst [vmem:[#allocation42_spill] sm:$0xff] %v8827_v32  ;;  %9722 = vst [vmem:[#allocation45_spill] sm:$0xff] %v8829_v30 }
 0x5f4   : > { %v8831_v62 = vpop.xlane.xlu1 %3863  ;;  %v8833_v34 = vpop.xlane.xlu0 %3860 }
 0x5f5   : > { %9723 = vst [vmem:[#allocation7_spill] sm:$0xff] %v8831_v62  ;;  %9724 = vst [vmem:[#allocation8_spill] sm:$0xff] %v8833_v34 }
 0x5f8   : > { %v8835_v52 = vpop.xlane.xlu1 %3869  ;;  %v8837_v2 = vpop.xlane.xlu0 %3866 }
 0x5f9   : > { %9725 = vst [vmem:[#allocation4_spill] sm:$0xff] %v8835_v52  ;;  %9726 = vst [vmem:[#allocation31_spill] sm:$0xff] %v8837_v2 }
 0x5fc   : > { %v8839_v18 = vpop.xlane.xlu1 %3875  ;;  %v8841_v63 = vpop.xlane.xlu0 %3872 }
 0x5fd   : > { %9727 = vst [vmem:[#allocation10_spill] sm:$0xff] %v8839_v18  ;;  %9728 = vst [vmem:[#allocation3_spill] sm:$0xff] %v8841_v63 }
 0x600   : > { %v8843_v51 = vpop.xlane.xlu1 %3881  ;;  %v8845_v45 = vpop.xlane.xlu0 %3878 }
 0x601   : > { %9729 = vst [vmem:[#allocation9_spill] sm:$0xff] %v8843_v51  ;;  %9730 = vst [vmem:[#allocation17_spill] sm:$0xff] %v8845_v45 }
 0x604   : > { %v8847_v14 = vpop.xlane.xlu1 %3887  ;;  %v8849_v32 = vpop.xlane.xlu0 %3884 }
 0x605   : > { %9731 = vst [vmem:[#allocation40_spill] sm:$0xff] %v8847_v14  ;;  %9732 = vst [vmem:[#allocation15_spill] sm:$0xff] %v8849_v32 }
 0x608   : > { %v8851_v30 = vpop.xlane.xlu1 %3893  ;;  %v8853_v62 = vpop.xlane.xlu0 %3890 }
 0x609   : > { %9733 = vst [vmem:[#allocation43_spill] sm:$0xff] %v8851_v30  ;;  %9734 = vst [vmem:[#allocation16_spill] sm:$0xff] %v8853_v62 }
 0x60c   : > { %v8855_v34 = vpop.xlane.xlu1 %3899  ;;  %v8857_v52 = vpop.xlane.xlu0 %3896 }
 0x60d   : > { %9735 = vst [vmem:[#allocation32_spill] sm:$0xff] %v8855_v34  ;;  %9736 = vst [vmem:[#allocation35_spill] sm:$0xff] %v8857_v52 }
 0x610   : > { %v8859_v2 = vpop.xlane.xlu1 %3905  ;;  %v8861_v18 = vpop.xlane.xlu0 %3902 }
 0x611   : > { %9737 = vst [vmem:[#allocation75_spill] sm:$0xff] %v8859_v2  ;;  %9738 = vst [vmem:[#allocation77_spill] sm:$0xff] %v8861_v18 }
 0x614   : > { %v8863_v63 = vpop.xlane.xlu1 %3911  ;;  %v8865_v51 = vpop.xlane.xlu0 %3908 }
 0x615   : > { %9739 = vst [vmem:[#allocation74_spill] sm:$0xff] %v8863_v63  ;;  %9740 = vst [vmem:[#allocation79_spill] sm:$0xff] %v8865_v51 }
 0x618   : > { %v8867_v45 = vpop.xlane.xlu1 %3917  ;;  %v8869_v14 = vpop.xlane.xlu0 %3914 }
 0x619   : > { %9741 = vst [vmem:[#allocation76_spill] sm:$0xff] %v8867_v45  ;;  %9742 = vst [vmem:[#allocation80_spill] sm:$0xff] %v8869_v14 }
 0x61c   : > { %v8871_v32 = vpop.xlane.xlu1 %3923  ;;  %v8873_v30 = vpop.xlane.xlu0 %3920 }
 0x61d   : > { %9743 = vst [vmem:[#allocation78_spill] sm:$0xff] %v8871_v32  ;;  %9744 = vst [vmem:[#allocation51_spill] sm:$0xff] %v8873_v30 }
 0x620   : > { %v4058_v62 = vpop.permute.xlu1 %4057  ;;  %v8876_v52 = vpop.xlane.xlu0 %3926 }
 0x621   : > { %v4153_v34 = vadd.f32 %v8654_v54, %v4058_v62 }
 0x623   : > { %v4185_v2 = vmul.f32 0.5, %v4153_v34 }
 0x624   : > { %v4062_v46 = vpop.permute.xlu1 %4061  ;;  %v4060_v51 = vpop.permute.xlu0 %4059 }
 0x625   : > { %v4217_v18 = vmul.f32 %v4185_v2, %v9692_v58  ;;  %v4155_v63 = vadd.f32 %v8659_v17, %v4062_v46  ;;  %v4154_v45 = vadd.f32 %v8667_v1, %v4060_v51 }
 0x627   : > { %v4187_v19 = vmul.f32 0.5, %v4155_v63  ;;  %v4249_v14 = vsel %vm2806_vm3, %v4217_v18, 0.0  ;;  %v4186_v30 = vmul.f32 0.5, %v4154_v45 }
 0x628   : > { %4250 = vadd.xlane.f32.xlu0 %v4249_v14  ;;  %v4064_v32 = vpop.permute.xlu1 %4063  ;;  %v4066_v54 = vpop.permute.xlu0 %4065 }
 0x629   : > { %v4219_v43 = vmul.f32 %v4187_v19, %v9694_v5  ;;  %v4156_v62 = vadd.f32 %v8664_v24, %v4064_v32  ;;  %v4218_v34 = vmul.f32 %v4186_v30, %v9693_v7  ;;  %v4157_v58 = vadd.f32 %v8677_v23, %v4066_v54 }
 0x62b   : > { %v4188_v2 = vmul.f32 0.5, %v4156_v62  ;;  %v4255_v46 = vsel %vm2806_vm3, %v4219_v43, 0.0  ;;  %v4189_v63 = vmul.f32 0.5, %v4157_v58  ;;  %v4252_v18 = vsel %vm2806_vm3, %v4218_v34, 0.0 }
 0x62c   : > { %4256 = vadd.xlane.f32.xlu0 %v4255_v46  ;;  %v4068_v17 = vpop.permute.xlu1 %4067  ;;  %4253 = vadd.xlane.f32.xlu1 %v4252_v18  ;;  %v4070_v5 = vpop.permute.xlu0 %4069 }
 0x62d   : > { %v4220_v1 = vmul.f32 %v4188_v2, %v9696_v57  ;;  %v4158_v45 = vadd.f32 %v8672_v37, %v4068_v17  ;;  %v4221_v32 = vmul.f32 %v4189_v63, %v9695_v36  ;;  %v4159_v7 = vadd.f32 %v8687_v35, %v4070_v5 }
 0x62f   : > { %v4190_v24 = vmul.f32 0.5, %v4158_v45  ;;  %v4258_v23 = vsel %vm2806_vm3, %v4220_v1, 0.0  ;;  %v4191_v19 = vmul.f32 0.5, %v4159_v7  ;;  %v4261_v51 = vsel %vm2806_vm3, %v4221_v32, 0.0 }
 0x630   : > { %4259 = vadd.xlane.f32.xlu0 %v4258_v23  ;;  %v4072_v43 = vpop.permute.xlu1 %4071  ;;  %4262 = vadd.xlane.f32.xlu1 %v4261_v51  ;;  %v4074_v37 = vpop.permute.xlu0 %4073 }
 0x631   : > { %v4222_v14 = vmul.f32 %v4190_v24, %v9698_v12  ;;  %v4160_v57 = vadd.f32 %v8682_v42, %v4072_v43  ;;  %v4223_v30 = vmul.f32 %v4191_v19, %v9697_v39  ;;  %v4161_v36 = vadd.f32 %v8697_v44, %v4074_v37 }
 0x633   : > { %v4192_v62 = vmul.f32 0.5, %v4160_v57  ;;  %v4264_v35 = vsel %vm2806_vm3, %v4222_v14, 0.0  ;;  %v4193_v34 = vmul.f32 0.5, %v4161_v36  ;;  %v4267_v58 = vsel %vm2806_vm3, %v4223_v30, 0.0 }
 0x634   : > { %4265 = vadd.xlane.f32.xlu0 %v4264_v35  ;;  %v4076_v54 = vpop.permute.xlu1 %4075  ;;  %4268 = vadd.xlane.f32.xlu1 %v4267_v58  ;;  %v4078_v42 = vpop.permute.xlu0 %4077 }
 0x635   : > { %v4224_v2 = vmul.f32 %v4192_v62, %v9700_v31  ;;  %v4162_v12 = vadd.f32 %v8692_v38, %v4076_v54  ;;  %v4225_v46 = vmul.f32 %v4193_v34, %v9699_v9  ;;  %v4163_v39 = vadd.f32 %v8707_v40, %v4078_v42 }
 0x637   : > { %v4194_v17 = vmul.f32 0.5, %v4162_v12  ;;  %v4270_v44 = vsel %vm2806_vm3, %v4224_v2, 0.0  ;;  %v4195_v18 = vmul.f32 0.5, %v4163_v39  ;;  %v4273_v1 = vsel %vm2806_vm3, %v4225_v46, 0.0 }
 0x638   : > { %4271 = vadd.xlane.f32.xlu0 %v4270_v44  ;;  %v4080_v63 = vpop.permute.xlu1 %4079  ;;  %4274 = vadd.xlane.f32.xlu1 %v4273_v1  ;;  %v4082_v38 = vpop.permute.xlu0 %4081 }
 0x639   : > { %v4226_v45 = vmul.f32 %v4194_v17, %v7627_v47  ;;  %v4164_v31 = vadd.f32 %v8702_v56, %v4080_v63  ;;  %v4227_v5 = vmul.f32 %v4195_v18, %v7666_v22  ;;  %v4165_v9 = vadd.f32 %v8717_v25, %v4082_v38 }
 0x63b   : > { %v4196_v32 = vmul.f32 0.5, %v4164_v31  ;;  %v4276_v40 = vsel %vm2806_vm3, %v4226_v45, 0.0  ;;  %v4197_v24 = vmul.f32 0.5, %v4165_v9  ;;  %v4279_v23 = vsel %vm2806_vm3, %v4227_v5, 0.0 }
 0x63c   : > { %4277 = vadd.xlane.f32.xlu0 %v4276_v40  ;;  %v4084_v7 = vpop.permute.xlu1 %4083  ;;  %4280 = vadd.xlane.f32.xlu1 %v4279_v23  ;;  %v4086_v56 = vpop.permute.xlu0 %4085 }
 0x63d   : > { %v4228_v43 = vmul.f32 %v4196_v32, %v7649_v29  ;;  %v4166_v47 = vadd.f32 %v8712_v41, %v4084_v7  ;;  %v4229_v19 = vmul.f32 %v4197_v24, %v7688_v59  ;;  %v4167_v22 = vadd.f32 %v8727_v53, %v4086_v56 }
 0x63f   : > { %v4198_v51 = vmul.f32 0.5, %v4166_v47  ;;  %v4282_v25 = vsel %vm2806_vm3, %v4228_v43, 0.0  ;;  %v4199_v57 = vmul.f32 0.5, %v4167_v22  ;;  %v4285_v37 = vsel %vm2806_vm3, %v4229_v19, 0.0  ;;  %v9745_v22 = vld [vmem:[#allocation36_spill] sm:$0xff] }
 0x640   : > { %4283 = vadd.xlane.f32.xlu0 %v4282_v25  ;;  %v4088_v14 = vpop.permute.xlu1 %4087  ;;  %4286 = vadd.xlane.f32.xlu1 %v4285_v37  ;;  %v4090_v41 = vpop.permute.xlu0 %4089  ;;  %v9746_v25 = vld [vmem:[#allocation24_spill] sm:$0xff] }
 0x641   : > { %v4230_v30 = vmul.f32 %v4198_v51, %v7671_v21  ;;  %v4168_v29 = vadd.f32 %v8722_v60, %v4088_v14  ;;  %v4231_v36 = vmul.f32 %v4199_v57, %v7708_v49  ;;  %v4169_v59 = vadd.f32 %v8737_v50, %v4090_v41 }
 0x643   : > { %v4200_v62 = vmul.f32 0.5, %v4168_v29  ;;  %v4288_v53 = vsel %vm2806_vm3, %v4230_v30, 0.0  ;;  %v4201_v54 = vmul.f32 0.5, %v4169_v59  ;;  %v4291_v34 = vsel %vm2806_vm3, %v4231_v36, 0.0  ;;  %v9747_v29 = vld [vmem:[#allocation5_spill] sm:$0xff]  ;;  %v9748_v36 = vld [vmem:[#allocation23_spill] sm:$0xff] }
 0x644   : > { %4289 = vadd.xlane.f32.xlu0 %v4288_v53  ;;  %v4092_v35 = vpop.permute.xlu1 %4091  ;;  %4292 = vadd.xlane.f32.xlu1 %v4291_v34  ;;  %v4094_v60 = vpop.permute.xlu0 %4093  ;;  %v9749_v59 = vld [vmem:[#allocation11_spill] sm:$0xff]  ;;  %v9750_v53 = vld [vmem:[#allocation26_spill] sm:$0xff] }
 0x645   : > { %v4232_v58 = vmul.f32 %v4200_v62, %v7693_v61  ;;  %v4170_v21 = vadd.f32 %v8732_v20, %v4092_v35  ;;  %v4233_v2 = vmul.f32 %v4201_v54, %v7736_v28  ;;  %v4171_v49 = vadd.f32 %v8747_v6, %v4094_v60 }
 0x647   : > { %v4202_v12 = vmul.f32 0.5, %v4170_v21  ;;  %v4294_v50 = vsel %vm2806_vm3, %v4232_v58, 0.0  ;;  %v4203_v46 = vmul.f32 0.5, %v4171_v49  ;;  %v4297_v39 = vsel %vm2806_vm3, %v4233_v2, 0.0  ;;  %v9751_v2 = vld [vmem:[#allocation6_spill] sm:$0xff] }
 0x648   : > { %4295 = vadd.xlane.f32.xlu0 %v4294_v50  ;;  %v4096_v42 = vpop.permute.xlu1 %4095  ;;  %4298 = vadd.xlane.f32.xlu1 %v4297_v39  ;;  %v4098_v20 = vpop.permute.xlu0 %4097 }
 0x649   : > { %v4234_v17 = vmul.f32 %v4202_v12, %v7723_v8  ;;  %v4172_v61 = vadd.f32 %v8742_v3, %v4096_v42  ;;  %v4235_v44 = vmul.f32 %v4203_v46, %v7758_v33  ;;  %v4173_v28 = vadd.f32 %v8757_v48, %v4098_v20  ;;  %v9752_v12 = vld [vmem:[#allocation25_spill] sm:$0xff] }
 0x64a   : > { %v9753_v46 = vld [vmem:[#allocation13_spill] sm:$0xff] }
 0x64b   : > { %v4204_v63 = vmul.f32 0.5, %v4172_v61  ;;  %v4300_v6 = vsel %vm2806_vm3, %v4234_v17, 0.0  ;;  %v4205_v1 = vmul.f32 0.5, %v4173_v28  ;;  %v4303_v45 = vsel %vm2806_vm3, %v4235_v44, 0.0  ;;  %v9754_v17 = vld [vmem:[#allocation28_spill] sm:$0xff] }
 0x64c   : > { %4301 = vadd.xlane.f32.xlu0 %v4300_v6  ;;  %v4100_v18 = vpop.permute.xlu1 %4099  ;;  %4304 = vadd.xlane.f32.xlu1 %v4303_v45  ;;  %v4102_v3 = vpop.permute.xlu0 %4101  ;;  %v9756_v45 = vld [vmem:[#allocation27_spill] sm:$0xff] }
 0x64d   : > { %v4236_v31 = vmul.f32 %v4204_v63, %v7741_v27  ;;  %v4174_v8 = vadd.f32 %v8752_v15, %v4100_v18  ;;  %v4237_v38 = vmul.f32 %v4205_v1, %v7780_v4  ;;  %v4175_v33 = vadd.f32 %v8767_v11, %v4102_v3  ;;  %v9755_v18 = vld [vmem:[#allocation12_spill] sm:$0xff] }
 0x64f   : > { %v4206_v5 = vmul.f32 0.5, %v4174_v8  ;;  %v4306_v48 = vsel %vm2806_vm3, %v4236_v31, 0.0  ;;  %v4207_v32 = vmul.f32 0.5, %v4175_v33  ;;  %v4309_v40 = vsel %vm2806_vm3, %v4237_v38, 0.0  ;;  %v9757_v8 = vld [vmem:[#allocation39_spill] sm:$0xff] }
 0x650   : > { %4307 = vadd.xlane.f32.xlu0 %v4306_v48  ;;  %v4104_v9 = vpop.permute.xlu1 %4103  ;;  %4310 = vadd.xlane.f32.xlu1 %v4309_v40  ;;  %v4106_v15 = vpop.permute.xlu0 %4105  ;;  %v9758_v48 = vld [vmem:[#allocation14_spill] sm:$0xff]  ;;  %v9759_v40 = vld [vmem:[#allocation29_spill] sm:$0xff] }
 0x651   : > { %v4238_v7 = vmul.f32 %v4206_v5, %v7763_v55  ;;  %v4176_v27 = vadd.f32 %v8762_v26, %v4104_v9  ;;  %v4239_v24 = vmul.f32 %v4207_v32, %v7802_v0  ;;  %v4177_v4 = vadd.f32 %v8777_v10, %v4106_v15 }
 0x653   : > { %v4208_v23 = vmul.f32 0.5, %v4176_v27  ;;  %v4312_v11 = vsel %vm2806_vm3, %v4238_v7, 0.0  ;;  %v4209_v47 = vmul.f32 0.5, %v4177_v4  ;;  %v4315_v56 = vsel %vm2806_vm3, %v4239_v24, 0.0  ;;  %v9760_v27 = vld [vmem:[#allocation44_spill] sm:$0xff]  ;;  %v9761_v24 = vld [vmem:[#allocation30_spill] sm:$0xff] }
 0x654   : > { %4313 = vadd.xlane.f32.xlu0 %v4312_v11  ;;  %v4108_v43 = vpop.permute.xlu1 %4107  ;;  %4316 = vadd.xlane.f32.xlu1 %v4315_v56  ;;  %v4110_v26 = vpop.permute.xlu0 %4109  ;;  %v3928_v7 = vmul.f32 2.0, %v9759_v40  ;;  %v3511_v15 = vmul.f32 2.0, %v9760_v27  ;;  %v3929_v4 = vmul.f32 2.0, %v9761_v24  ;;  %v9762_v11 = vld [vmem:[#allocation33_spill] sm:$0xff]  ;;  %v9763_v56 = vld [vmem:[#allocation46_spill] sm:$0xff] }
 0x655   : > { %v4240_v19 = vmul.f32 %v4208_v23, %v7785_v16  ;;  %v4178_v55 = vadd.f32 %v8772_v13, %v4108_v43  ;;  %v4241_v51 = vmul.f32 %v4209_v47, %v9745_v22  ;;  %v4179_v0 = vadd.f32 %v9746_v25, %v4110_v26  ;;  %v9764_v22 = vld [vmem:[#allocation18_spill] sm:$0xff]  ;;  %v9765_v25 = vld [vmem:[#allocation48_spill] sm:$0xff]  ;;  %v9775_v27 = vld [vmem:[#allocation45_spill] sm:$0xff] }
 0x656   : > { %v4853_v23 = vadd.f32 -1.0, %v3928_v7  ;;  %v3930_v43 = vmul.f32 2.0, %v9762_v11  ;;  %v4789_v26 = vadd.f32 -1.0, %v3511_v15  ;;  %v3935_v15 = vmul.f32 2.0, %v9775_v27 }
 0x657   : > { %v4210_v14 = vmul.f32 0.5, %v4178_v55  ;;  %v4318_v10 = vsel %vm2806_vm3, %v4240_v19, 0.0  ;;  %v4211_v37 = vmul.f32 0.5, %v4179_v0  ;;  %v4321_v30 = vsel %vm2806_vm3, %v4241_v51, 0.0 }
 0x658   : > { %4319 = vadd.xlane.f32.xlu0 %v4318_v10  ;;  %v4112_v57 = vpop.permute.xlu1 %4111  ;;  %4322 = vadd.xlane.f32.xlu1 %v4321_v30  ;;  %v4114_v13 = vpop.permute.xlu0 %4113  ;;  %v3512_v19 = vmul.f32 2.0, %v9763_v56  ;;  %v3513_v51 = vmul.f32 2.0, %v9764_v22  ;;  %v3515_v0 = vmul.f32 2.0, %v9765_v25  ;;  %v9766_v30 = vld [vmem:[#allocation37_spill] sm:$0xff] }
 0x659   : > { %v4242_v41 = vmul.f32 %v4210_v14, %v9747_v29  ;;  %v4180_v16 = vadd.f32 %v9748_v36, %v4112_v57  ;;  %v4243_v62 = vmul.f32 %v4211_v37, %v9749_v59  ;;  %v4181_v35 = vadd.f32 %v9750_v53, %v4114_v13 }
 0x65a   : > { %v4854_v14 = vadd.f32 -1.0, %v3929_v4  ;;  %v4409_v57 = vsel %vm2163_vm0, %v4789_v26, %v4853_v23  ;;  %v4855_v37 = vadd.f32 -1.0, %v3930_v43  ;;  %v3931_v29 = vmul.f32 2.0, %v9766_v30 }
 0x65b   : > { %v4212_v54 = vmul.f32 0.5, %v4180_v16  ;;  %v4324_v34 = vsel %vm2806_vm3, %v4242_v41, 0.0  ;;  %v4213_v21 = vmul.f32 0.5, %v4181_v35  ;;  %v4327_v60 = vsel %vm2806_vm3, %v4243_v62, 0.0  ;;  %v9767_v16 = vld [vmem:[#allocation34_spill] sm:$0xff] }
 0x65c   : > { %4325 = vadd.xlane.f32.xlu0 %v4324_v34  ;;  %v4116_v58 = vpop.permute.xlu1 %4115  ;;  %4328 = vadd.xlane.f32.xlu1 %v4327_v60  ;;  %v4118_v42 = vpop.permute.xlu0 %4117  ;;  %v4790_v36 = vadd.f32 -1.0, %v3512_v19  ;;  %v3932_v13 = vmul.f32 2.0, %v9767_v16  ;;  %v4791_v35 = vadd.f32 -1.0, %v3513_v51  ;;  %v9769_v60 = vld [vmem:[#allocation50_spill] sm:$0xff]  ;;  %v4860_v30 = vadd.f32 -1.0, %v3935_v15 }
 0x65d   : > { %v4244_v49 = vmul.f32 %v4212_v54, %v9751_v2  ;;  %v4182_v50 = vadd.f32 %v9752_v12, %v4116_v58  ;;  %v4245_v39 = vmul.f32 %v4213_v21, %v9753_v46  ;;  %v4183_v61 = vadd.f32 %v9754_v17, %v4118_v42  ;;  %v9768_v54 = vld [vmem:[#allocation47_spill] sm:$0xff]  ;;  %v9770_v46 = vld [vmem:[#allocation41_spill] sm:$0xff] }
 0x65e   : > { %v3514_v34 = vmul.f32 2.0, %v9768_v54  ;;  %v4793_v21 = vadd.f32 -1.0, %v3515_v0  ;;  %v3517_v2 = vmul.f32 2.0, %v9769_v60  ;;  %v4856_v42 = vadd.f32 -1.0, %v3931_v29  ;;  %v9777_v0 = vld [vmem:[#allocation56_spill] sm:$0xff] }
 0x65f   : > { %v4214_v20 = vmul.f32 0.5, %v4182_v50  ;;  %v4330_v44 = vsel %vm2806_vm3, %v4244_v49, 0.0  ;;  %v4215_v63 = vmul.f32 0.5, %v4183_v61  ;;  %v4333_v6 = vsel %vm2806_vm3, %v4245_v39, 0.0  ;;  %v9778_v29 = vld [vmem:[#allocation8_spill] sm:$0xff] }
 0x660   : > { %4331 = vadd.xlane.f32.xlu0 %v4330_v44  ;;  %v4120_v28 = vpop.permute.xlu1 %4119  ;;  %4334 = vadd.xlane.f32.xlu1 %v4333_v6  ;;  %v4410_v49 = vsel %vm2163_vm0, %v4790_v36, %v4854_v14  ;;  %v4411_v50 = vsel %vm2163_vm0, %v4791_v35, %v4855_v37  ;;  %v3933_v39 = vmul.f32 2.0, %v9770_v46  ;;  %v9771_v44 = vld [vmem:[#allocation38_spill] sm:$0xff]  ;;  %v3521_v14 = vmul.f32 2.0, %v9777_v0 }
 0x661   : > { %v4246_v1 = vmul.f32 %v4214_v20, %v9755_v18  ;;  %v4184_v31 = vadd.f32 %v9756_v45, %v4120_v28  ;;  %v4247_v3 = vmul.f32 %v4215_v63, %v9757_v8  ;;  %v4857_v20 = vadd.f32 -1.0, %v3932_v13  ;;  %v9772_v45 = vld [vmem:[#allocation49_spill] sm:$0xff] }
 0x662   : > { %v3934_v28 = vmul.f32 2.0, %v9771_v44  ;;  %v4858_v7 = vadd.f32 -1.0, %v3933_v39 }
 0x663   : > { %v4216_v38 = vmul.f32 0.5, %v4184_v31  ;;  %v4336_v33 = vsel %vm2806_vm3, %v4246_v1, 0.0  ;;  %v4339_v5 = vsel %vm2806_vm3, %v4247_v3, 0.0  ;;  %v4792_v1 = vadd.f32 -1.0, %v3514_v34 }
 0x664   : > { %4337 = vadd.xlane.f32.xlu0 %v4336_v33  ;;  %4340 = vadd.xlane.f32.xlu1 %v4339_v5  ;;  %v3516_v31 = vmul.f32 2.0, %v9772_v45  ;;  %v9773_v33 = vld [vmem:[#allocation54_spill] sm:$0xff]  ;;  %v4413_v23 = vsel %vm2163_vm0, %v4793_v21, %v4857_v20  ;;  %v4859_v11 = vadd.f32 -1.0, %v3934_v28 }
 0x665   : > { %v4248_v9 = vmul.f32 %v4216_v38, %v9758_v48  ;;  %v4795_v38 = vadd.f32 -1.0, %v3517_v2  ;;  %v3519_v5 = vmul.f32 2.0, %v9773_v33  ;;  %v9774_v48 = vld [vmem:[#allocation42_spill] sm:$0xff]  ;;  %v4412_v40 = vsel %vm2163_vm0, %v4792_v1, %v4856_v42 }
 0x666   : > { %v4794_v19 = vadd.f32 -1.0, %v3516_v31 }
 0x667   : > { %v4342_v32 = vsel %vm2806_vm3, %v4248_v9, 0.0  ;;  %v3936_v9 = vmul.f32 2.0, %v9774_v48  ;;  %v4797_v25 = vadd.f32 -1.0, %v3519_v5  ;;  %v4415_v13 = vsel %vm2163_vm0, %v4795_v38, %v4859_v11 }
 0x668   : > { %4343 = vadd.xlane.f32.xlu0 %v4342_v32  ;;  %v4414_v37 = vsel %vm2163_vm0, %v4794_v19, %v4858_v7 }
 0x6b5   : > { %v4251_v47 = vpop.xlane.xlu0 %4250 }
 0x6b6   : > { %v4345_v55 = vmul.f32 2.0, %v4251_v47 }
 0x6b8   : > { %v4917_v10 = vadd.f32 -1.0, %v4345_v55  ;;  %v9776_v55 = vld [vmem:[#allocation52_spill] sm:$0xff] }
 0x6b9   : > { %v4257_v41 = vpop.xlane.xlu0 %4256  ;;  %v4254_v53 = vpop.xlane.xlu1 %4253  ;;  %v3518_v26 = vmul.f32 2.0, %v9776_v55 }
 0x6ba   : > { %v4441_v59 = vsel %vm2516_vm1, %v4409_v57, %v4917_v10  ;;  %v4347_v62 = vmul.f32 2.0, %v4257_v41  ;;  %v4346_v58 = vmul.f32 2.0, %v4254_v53  ;;  %v4861_v10 = vadd.f32 -1.0, %v3936_v9  ;;  %v9785_v9 = vld [vmem:[#allocation60_spill] sm:$0xff] }
 0x6bb   : > { %4474 = vst.msk [vmem:[%s8984_s21] sm:$0xff] %vm4473_vm4, %v4441_v59  ;;  %v3937_v41 = vmul.f32 2.0, %v9778_v29  ;;  %v9779_v59 = vld [vmem:[#allocation7_spill] sm:$0xff]  ;;  %v4796_v34 = vadd.f32 -1.0, %v3518_v26 }
 0x6bc   : > { %v4919_v12 = vadd.f32 -1.0, %v4347_v62  ;;  %v4918_v61 = vadd.f32 -1.0, %v4346_v58  ;;  %v3938_v62 = vmul.f32 2.0, %v9779_v59  ;;  %v9780_v58 = vld [vmem:[#allocation55_spill] sm:$0xff]  ;;  %v4417_v42 = vsel %vm2163_vm0, %v4797_v25, %v4861_v10 }
 0x6bd   : > { %v4260_v17 = vpop.xlane.xlu0 %4259  ;;  %v4263_v18 = vpop.xlane.xlu1 %4262  ;;  %v3520_v21 = vmul.f32 2.0, %v9780_v58  ;;  %v4416_v39 = vsel %vm2163_vm0, %v4796_v34, %v4860_v30 }
 0x6be   : > { %v4443_v63 = vsel %vm2516_vm1, %v4411_v50, %v4919_v12  ;;  %v4348_v6 = vmul.f32 2.0, %v4260_v17  ;;  %v4442_v8 = vsel %vm2516_vm1, %v4410_v49, %v4918_v61  ;;  %v4349_v3 = vmul.f32 2.0, %v4263_v18  ;;  %v9781_v12 = vld [vmem:[#allocation58_spill] sm:$0xff]  ;;  %v9782_v61 = vld [vmem:[#allocation31_spill] sm:$0xff] }
 0x6bf   : > { %4476 = vst.msk [vmem:[%s8984_s21 + $0x10] sm:$0xff] %vm4473_vm4, %v4443_v63  ;;  %4475 = vst.msk [vmem:[%s8984_s21 + $0x8] sm:$0xff] %vm4473_vm4, %v4442_v8  ;;  %v4799_v49 = vadd.f32 -1.0, %v3521_v14  ;;  %v3523_v50 = vmul.f32 2.0, %v9781_v12  ;;  %v4862_v17 = vadd.f32 -1.0, %v3937_v41  ;;  %v3939_v20 = vmul.f32 2.0, %v9782_v61 }
 0x6c0   : > { %v4920_v32 = vadd.f32 -1.0, %v4348_v6  ;;  %v4921_v4 = vadd.f32 -1.0, %v4349_v3  ;;  %v4863_v63 = vadd.f32 -1.0, %v3938_v62  ;;  %v9783_v6 = vld [vmem:[#allocation4_spill] sm:$0xff]  ;;  %v4798_v8 = vadd.f32 -1.0, %v3520_v21  ;;  %v9784_v3 = vld [vmem:[#allocation57_spill] sm:$0xff] }
 0x6c1   : > { %v4266_v24 = vpop.xlane.xlu0 %4265  ;;  %v4269_v56 = vpop.xlane.xlu1 %4268  ;;  %v3940_v18 = vmul.f32 2.0, %v9783_v6  ;;  %v3522_v38 = vmul.f32 2.0, %v9784_v3  ;;  %v4801_v48 = vadd.f32 -1.0, %v3523_v50 }
 0x6c2   : > { %v4444_v43 = vsel %vm2516_vm1, %v4412_v40, %v4920_v32  ;;  %v4350_v47 = vmul.f32 2.0, %v4266_v24  ;;  %v4445_v22 = vsel %vm2516_vm1, %v4413_v23, %v4921_v4  ;;  %v4351_v51 = vmul.f32 2.0, %v4269_v56  ;;  %v9786_v40 = vld [vmem:[#allocation10_spill] sm:$0xff]  ;;  %v9787_v4 = vld [vmem:[#allocation3_spill] sm:$0xff] }
 0x6c3   : > { %4477 = vst.msk [vmem:[%s8984_s21 + $0x18] sm:$0xff] %vm4473_vm4, %v4444_v43  ;;  %4478 = vst.msk [vmem:[%s8984_s21 + $0x20] sm:$0xff] %vm4473_vm4, %v4445_v22  ;;  %v3525_v32 = vmul.f32 2.0, %v9785_v9  ;;  %v3942_v7 = vmul.f32 2.0, %v9786_v40  ;;  %v4418_v15 = vsel %vm2163_vm0, %v4798_v8, %v4862_v17  ;;  %v4864_v24 = vadd.f32 -1.0, %v3939_v20 }
 0x6c4   : > { %v4922_v57 = vadd.f32 -1.0, %v4350_v47  ;;  %v4923_v16 = vadd.f32 -1.0, %v4351_v51  ;;  %v3941_v23 = vmul.f32 2.0, %v9787_v4  ;;  %v4419_v47 = vsel %vm2163_vm0, %v4799_v49, %v4863_v63  ;;  %v9788_v51 = vld [vmem:[#allocation59_spill] sm:$0xff] }
 0x6c5   : > { %v4272_v36 = vpop.xlane.xlu0 %4271  ;;  %v4275_v54 = vpop.xlane.xlu1 %4274  ;;  %v4865_v56 = vadd.f32 -1.0, %v3940_v18  ;;  %v4800_v22 = vadd.f32 -1.0, %v3522_v38  ;;  %v3524_v25 = vmul.f32 2.0, %v9788_v51  ;;  %v4803_v10 = vadd.f32 -1.0, %v3525_v32 }
 0x6c6   : > { %v4446_v53 = vsel %vm2516_vm1, %v4414_v37, %v4922_v57  ;;  %v4352_v35 = vmul.f32 2.0, %v4272_v36  ;;  %v4447_v60 = vsel %vm2516_vm1, %v4415_v13, %v4923_v16  ;;  %v4353_v2 = vmul.f32 2.0, %v4275_v54  ;;  %v9789_v57 = vld [vmem:[#allocation62_spill] sm:$0xff]  ;;  %v9790_v16 = vld [vmem:[#allocation17_spill] sm:$0xff] }
 0x6c7   : > { %4479 = vst.msk [vmem:[%s8984_s21 + $0x28] sm:$0xff] %vm4473_vm4, %v4446_v53  ;;  %4480 = vst.msk [vmem:[%s8984_s21 + $0x30] sm:$0xff] %vm4473_vm4, %v4447_v60  ;;  %v3527_v37 = vmul.f32 2.0, %v9789_v57  ;;  %v4867_v30 = vadd.f32 -1.0, %v3942_v7  ;;  %v4420_v41 = vsel %vm2163_vm0, %v4800_v22, %v4864_v24  ;;  %v4866_v36 = vadd.f32 -1.0, %v3941_v23  ;;  %v9797_v7 = vld [vmem:[#allocation66_spill] sm:$0xff] }
 0x6c8   : > { %v4924_v46 = vadd.f32 -1.0, %v4352_v35  ;;  %v4925_v28 = vadd.f32 -1.0, %v4353_v2  ;;  %v3943_v13 = vmul.f32 2.0, %v9790_v16  ;;  %v4421_v53 = vsel %vm2163_vm0, %v4801_v48, %v4865_v56  ;;  %v9791_v35 = vld [vmem:[#allocation9_spill] sm:$0xff] }
 0x6c9   : > { %v4278_v44 = vpop.xlane.xlu0 %4277  ;;  %v4281_v31 = vpop.xlane.xlu1 %4280  ;;  %v3944_v54 = vmul.f32 2.0, %v9791_v35  ;;  %v4802_v60 = vadd.f32 -1.0, %v3524_v25  ;;  %v9792_v2 = vld [vmem:[#allocation61_spill] sm:$0xff]  ;;  %v4423_v17 = vsel %vm2163_vm0, %v4803_v10, %v4867_v30 }
 0x6ca   : > { %v4448_v1 = vsel %vm2516_vm1, %v4416_v39, %v4924_v46  ;;  %v4354_v45 = vmul.f32 2.0, %v4278_v44  ;;  %v4449_v33 = vsel %vm2516_vm1, %v4417_v42, %v4925_v28  ;;  %v4355_v5 = vmul.f32 2.0, %v4281_v31  ;;  %v9793_v46 = vld [vmem:[#allocation64_spill] sm:$0xff]  ;;  %v9794_v28 = vld [vmem:[#allocation15_spill] sm:$0xff] }
 0x6cb   : > { %4481 = vst.msk [vmem:[%s8984_s21 + $0x38] sm:$0xff] %vm4473_vm4, %v4448_v1  ;;  %4482 = vst.msk [vmem:[%s8984_s21 + $0x40] sm:$0xff] %vm4473_vm4, %v4449_v33  ;;  %v3526_v49 = vmul.f32 2.0, %v9792_v2  ;;  %v4805_v42 = vadd.f32 -1.0, %v3527_v37  ;;  %v3529_v39 = vmul.f32 2.0, %v9793_v46  ;;  %v4422_v20 = vsel %vm2163_vm0, %v4802_v60, %v4866_v36 }
 0x6cc   : > { %v4926_v27 = vadd.f32 -1.0, %v4354_v45  ;;  %v4927_v43 = vadd.f32 -1.0, %v4355_v5  ;;  %v4868_v44 = vadd.f32 -1.0, %v3943_v13  ;;  %v3945_v63 = vmul.f32 2.0, %v9794_v28  ;;  %v9795_v45 = vld [vmem:[#allocation40_spill] sm:$0xff]  ;;  %v9796_v5 = vld [vmem:[#allocation63_spill] sm:$0xff] }
 0x6cd   : > { %v4284_v11 = vpop.xlane.xlu0 %4283  ;;  %v4287_v26 = vpop.xlane.xlu1 %4286  ;;  %v4869_v1 = vadd.f32 -1.0, %v3944_v54  ;;  %v3946_v31 = vmul.f32 2.0, %v9795_v45  ;;  %v4804_v33 = vadd.f32 -1.0, %v3526_v49  ;;  %v3528_v48 = vmul.f32 2.0, %v9796_v5 }
 0x6ce   : > { %v4450_v19 = vsel %vm2516_vm1, %v4418_v15, %v4926_v27  ;;  %v4356_v55 = vmul.f32 2.0, %v4284_v11  ;;  %v4451_v0 = vsel %vm2516_vm1, %v4419_v47, %v4927_v43  ;;  %v4357_v14 = vmul.f32 2.0, %v4287_v26  ;;  %v9798_v15 = vld [vmem:[#allocation43_spill] sm:$0xff]  ;;  %v9799_v43 = vld [vmem:[#allocation16_spill] sm:$0xff] }
 0x6cf   : > { %4483 = vst.msk [vmem:[%s8984_s21 + $0x48] sm:$0xff] %vm4473_vm4, %v4450_v19  ;;  %4484 = vst.msk [vmem:[%s8984_s21 + $0x50] sm:$0xff] %vm4473_vm4, %v4451_v0  ;;  %v4807_v40 = vadd.f32 -1.0, %v3529_v39  ;;  %v3531_v27 = vmul.f32 2.0, %v9797_v7  ;;  %v3948_v24 = vmul.f32 2.0, %v9798_v15  ;;  %v4424_v23 = vsel %vm2163_vm0, %v4804_v33, %v4868_v44  ;;  %v9808_v7 = vld [vmem:[#allocation70_spill] sm:$0xff] }
 0x6d0   : > { %v4928_v29 = vadd.f32 -1.0, %v4356_v55  ;;  %v4929_v62 = vadd.f32 -1.0, %v4357_v14  ;;  %v4870_v11 = vadd.f32 -1.0, %v3945_v63  ;;  %v3947_v47 = vmul.f32 2.0, %v9799_v43  ;;  %v9800_v14 = vld [vmem:[#allocation65_spill] sm:$0xff]  ;;  %v9809_v15 = vld [vmem:[#allocation72_spill] sm:$0xff] }
 0x6d1   : > { %v4290_v59 = vpop.xlane.xlu0 %4289  ;;  %v4293_v21 = vpop.xlane.xlu1 %4292  ;;  %v4425_v55 = vsel %vm2163_vm0, %v4805_v42, %v4869_v1  ;;  %v4871_v26 = vadd.f32 -1.0, %v3946_v31  ;;  %v4806_v0 = vadd.f32 -1.0, %v3528_v48  ;;  %v3530_v10 = vmul.f32 2.0, %v9800_v14  ;;  %v9805_v63 = vld [vmem:[#allocation77_spill] sm:$0xff]  ;;  %v9806_v31 = vld [vmem:[#allocation75_spill] sm:$0xff] }
 0x6d2   : > { %v4452_v34 = vsel %vm2516_vm1, %v4420_v41, %v4928_v29  ;;  %v4358_v58 = vmul.f32 2.0, %v4290_v59  ;;  %v4453_v12 = vsel %vm2516_vm1, %v4421_v53, %v4929_v62  ;;  %v4359_v50 = vmul.f32 2.0, %v4293_v21  ;;  %v9801_v29 = vld [vmem:[#allocation68_spill] sm:$0xff]  ;;  %v9802_v62 = vld [vmem:[#allocation35_spill] sm:$0xff]  ;;  %v9807_v48 = vld [vmem:[#allocation69_spill] sm:$0xff] }
 0x6d3   : > { %4485 = vst.msk [vmem:[%s8984_s21 + $0x58] sm:$0xff] %vm4473_vm4, %v4452_v34  ;;  %4486 = vst.msk [vmem:[%s8984_s21 + $0x60] sm:$0xff] %vm4473_vm4, %v4453_v12  ;;  %v4809_v30 = vadd.f32 -1.0, %v3531_v27  ;;  %v3533_v41 = vmul.f32 2.0, %v9801_v29  ;;  %v4873_v36 = vadd.f32 -1.0, %v3948_v24  ;;  %v4426_v13 = vsel %vm2163_vm0, %v4806_v0, %v4870_v11 }
 0x6d4   : > { %v4930_v61 = vadd.f32 -1.0, %v4358_v58  ;;  %v4931_v18 = vadd.f32 -1.0, %v4359_v50  ;;  %v4872_v59 = vadd.f32 -1.0, %v3947_v47  ;;  %v3949_v53 = vmul.f32 2.0, %v9802_v62  ;;  %v9803_v58 = vld [vmem:[#allocation32_spill] sm:$0xff]  ;;  %v9804_v50 = vld [vmem:[#allocation67_spill] sm:$0xff] }
 0x6d5   : > { %v4296_v6 = vpop.xlane.xlu0 %4295  ;;  %v4299_v38 = vpop.xlane.xlu1 %4298  ;;  %v4427_v34 = vsel %vm2163_vm0, %v4807_v40, %v4871_v26  ;;  %v3950_v21 = vmul.f32 2.0, %v9803_v58  ;;  %v4808_v12 = vadd.f32 -1.0, %v3530_v10  ;;  %v3532_v42 = vmul.f32 2.0, %v9804_v50 }
 0x6d6   : > { %v4454_v8 = vsel %vm2516_vm1, %v4422_v20, %v4930_v61  ;;  %v4360_v3 = vmul.f32 2.0, %v4296_v6  ;;  %v4455_v9 = vsel %vm2516_vm1, %v4423_v17, %v4931_v18  ;;  %v4361_v32 = vmul.f32 2.0, %v4299_v38 }
 0x6d7   : > { %4487 = vst.msk [vmem:[%s8984_s21 + $0x68] sm:$0xff] %vm4473_vm4, %v4454_v8  ;;  %4488 = vst.msk [vmem:[%s8984_s21 + $0x70] sm:$0xff] %vm4473_vm4, %v4455_v9  ;;  %v4811_v17 = vadd.f32 -1.0, %v3533_v41  ;;  %v4429_v61 = vsel %vm2163_vm0, %v4809_v30, %v4873_v36  ;;  %v4428_v44 = vsel %vm2163_vm0, %v4808_v12, %v4872_v59  ;;  %v4874_v28 = vadd.f32 -1.0, %v3949_v53  ;;  %v9813_v53 = vld [vmem:[#allocation80_spill] sm:$0xff] }
 0x6d8   : > { %v4932_v4 = vadd.f32 -1.0, %v4360_v3  ;;  %v4933_v19 = vadd.f32 -1.0, %v4361_v32  ;;  %v3951_v6 = vmul.f32 2.0, %v9805_v63  ;;  %v4875_v45 = vadd.f32 -1.0, %v3950_v21  ;;  %v9814_v21 = vld [vmem:[#allocation76_spill] sm:$0xff] }
 0x6d9   : > { %v4302_v56 = vpop.xlane.xlu0 %4301  ;;  %v4305_v25 = vpop.xlane.xlu1 %4304  ;;  %v3952_v8 = vmul.f32 2.0, %v9806_v31  ;;  %v4810_v5 = vadd.f32 -1.0, %v3532_v42  ;;  %v3534_v9 = vmul.f32 2.0, %v9807_v48  ;;  %v3535_v27 = vmul.f32 2.0, %v9808_v7  ;;  %v9815_v42 = vld [vmem:[#allocation73_spill] sm:$0xff] }
 0x6da   : > { %v4456_v22 = vsel %vm2516_vm1, %v4424_v23, %v4932_v4  ;;  %v4362_v51 = vmul.f32 2.0, %v4302_v56  ;;  %v4457_v57 = vsel %vm2516_vm1, %v4425_v55, %v4933_v19  ;;  %v4363_v37 = vmul.f32 2.0, %v4305_v25  ;;  %v9810_v4 = vld [vmem:[#allocation74_spill] sm:$0xff]  ;;  %v9811_v56 = vld [vmem:[#allocation79_spill] sm:$0xff] }
 0x6db   : > { %4489 = vst.msk [vmem:[%s8984_s21 + $0x78] sm:$0xff] %vm4473_vm4, %v4456_v22  ;;  %4490 = vst.msk [vmem:[%s8984_s21 + $0x80] sm:$0xff] %vm4473_vm4, %v4457_v57  ;;  %v3537_v24 = vmul.f32 2.0, %v9809_v15  ;;  %v3954_v23 = vmul.f32 2.0, %v9810_v4  ;;  %v4430_v43 = vsel %vm2163_vm0, %v4810_v5, %v4874_v28  ;;  %v4876_v47 = vadd.f32 -1.0, %v3951_v6  ;;  %v9812_v57 = vld [vmem:[#allocation71_spill] sm:$0xff] }
 0x6dc   : > { %v4934_v16 = vadd.f32 -1.0, %v4362_v51  ;;  %v4935_v54 = vadd.f32 -1.0, %v4363_v37  ;;  %v3953_v19 = vmul.f32 2.0, %v9811_v56  ;;  %v4431_v22 = vsel %vm2163_vm0, %v4811_v17, %v4875_v45 }
 0x6dd   : > { %v4308_v35 = vpop.xlane.xlu0 %4307  ;;  %v4311_v49 = vpop.xlane.xlu1 %4310  ;;  %v4877_v51 = vadd.f32 -1.0, %v3952_v8  ;;  %v4812_v10 = vadd.f32 -1.0, %v3534_v9  ;;  %v3536_v37 = vmul.f32 2.0, %v9812_v57  ;;  %v4813_v41 = vadd.f32 -1.0, %v3535_v27 }
 0x6de   : > { %v4458_v60 = vsel %vm2516_vm1, %v4426_v13, %v4934_v16  ;;  %v4364_v2 = vmul.f32 2.0, %v4308_v35  ;;  %v4459_v46 = vsel %vm2516_vm1, %v4427_v34, %v4935_v54  ;;  %v4365_v39 = vmul.f32 2.0, %v4311_v49 }
 0x6df   : > { %4491 = vst.msk [vmem:[%s8984_s21 + $0x88] sm:$0xff] %vm4473_vm4, %v4458_v60  ;;  %4492 = vst.msk [vmem:[%s8984_s21 + $0x90] sm:$0xff] %vm4473_vm4, %v4459_v46  ;;  %v4815_v36 = vadd.f32 -1.0, %v3537_v24  ;;  %v4879_v16 = vadd.f32 -1.0, %v3954_v23  ;;  %v4432_v59 = vsel %vm2163_vm0, %v4812_v10, %v4876_v47  ;;  %v4878_v62 = vadd.f32 -1.0, %v3953_v19  ;;  %v9820_v24 = vld [vmem:[#allocation21_spill] sm:$0xff] }
 0x6e0   : > { %v4936_v20 = vadd.f32 -1.0, %v4364_v2  ;;  %v4937_v1 = vadd.f32 -1.0, %v4365_v39  ;;  %v3955_v35 = vmul.f32 2.0, %v9813_v53  ;;  %v4433_v58 = vsel %vm2163_vm0, %v4813_v41, %v4877_v51 }
 0x6e1   : > { %v4314_v18 = vpop.xlane.xlu0 %4313  ;;  %v4317_v33 = vpop.xlane.xlu1 %4316  ;;  %v3956_v60 = vmul.f32 2.0, %v9814_v21  ;;  %v4814_v50 = vadd.f32 -1.0, %v3536_v37  ;;  %v3538_v46 = vmul.f32 2.0, %v9815_v42  ;;  %v3541_v4 = vmul.f32 2.0, %v9820_v24 }
 0x6e2   : > { %v4460_v3 = vsel %vm2516_vm1, %v4428_v44, %v4936_v20  ;;  %v4366_v38 = vmul.f32 2.0, %v4314_v18  ;;  %v4461_v32 = vsel %vm2516_vm1, %v4429_v61, %v4937_v1  ;;  %v4367_v40 = vmul.f32 2.0, %v4317_v33  ;;  %v9816_v61 = vld [vmem:[#allocation19_spill] sm:$0xff] }
 0x6e3   : > { %4493 = vst.msk [vmem:[%s8984_s21 + $0x98] sm:$0xff] %vm4473_vm4, %v4460_v3  ;;  %4494 = vst.msk [vmem:[%s8984_s21 + $0xa0] sm:$0xff] %vm4473_vm4, %v4461_v32  ;;  %v3539_v20 = vmul.f32 2.0, %v9816_v61  ;;  %v4435_v44 = vsel %vm2163_vm0, %v4815_v36, %v4879_v16  ;;  %v4434_v63 = vsel %vm2163_vm0, %v4814_v50, %v4878_v62  ;;  %v4880_v6 = vadd.f32 -1.0, %v3955_v35  ;;  %v9817_v18 = vld [vmem:[#allocation51_spill] sm:$0xff]  ;;  %v9818_v3 = vld [vmem:[#allocation78_spill] sm:$0xff] }
 0x6e4   : > { %v4938_v11 = vadd.f32 -1.0, %v4366_v38  ;;  %v4939_v26 = vadd.f32 -1.0, %v4367_v40  ;;  %v3957_v1 = vmul.f32 2.0, %v9817_v18  ;;  %v4881_v8 = vadd.f32 -1.0, %v3956_v60  ;;  %v9819_v32 = vld [vmem:[#allocation20_spill] sm:$0xff] }
 0x6e5   : > { %v4320_v55 = vpop.xlane.xlu0 %4319  ;;  %v4323_v14 = vpop.xlane.xlu1 %4322  ;;  %v3958_v38 = vmul.f32 2.0, %v9818_v3  ;;  %v4816_v9 = vadd.f32 -1.0, %v3538_v46  ;;  %v3540_v40 = vmul.f32 2.0, %v9819_v32  ;;  %v4817_v15 = vadd.f32 -1.0, %v3539_v20 }
 0x6e6   : > { %v4462_v25 = vsel %vm2516_vm1, %v4430_v43, %v4938_v11  ;;  %v4368_v0 = vmul.f32 2.0, %v4320_v55  ;;  %v4463_v30 = vsel %vm2516_vm1, %v4431_v22, %v4939_v26  ;;  %v4369_v29 = vmul.f32 2.0, %v4323_v14  ;;  %v9821_v14 = vld [vmem:[#allocation22_spill] sm:$0xff] }
 0x6e7   : > { %4495 = vst.msk [vmem:[%s8984_s21 + $0xa8] sm:$0xff] %vm4473_vm4, %v4462_v25  ;;  %4496 = vst.msk [vmem:[%s8984_s21 + $0xb0] sm:$0xff] %vm4473_vm4, %v4463_v30  ;;  %v4436_v11 = vsel %vm2163_vm0, %v4816_v9, %v4880_v6  ;;  %v4882_v43 = vadd.f32 -1.0, %v3957_v1  ;;  %v3959_v47 = vmul.f32 2.0, %v8876_v52  ;;  %v4437_v55 = vsel %vm2163_vm0, %v4817_v15, %v4881_v8 }
 0x6e8   : > { %v4940_v13 = vadd.f32 -1.0, %v4368_v0  ;;  %v4941_v34 = vadd.f32 -1.0, %v4369_v29  ;;  %v4883_v26 = vadd.f32 -1.0, %v3958_v38  ;;  %v4818_v0 = vadd.f32 -1.0, %v3540_v40 }
 0x6e9   : > { %v4326_v54 = vpop.xlane.xlu0 %4325  ;;  %v4329_v12 = vpop.xlane.xlu1 %4328  ;;  %v3542_v10 = vmul.f32 2.0, %v9821_v14  ;;  %v4819_v52 = vadd.f32 -1.0, %v3541_v4  ;;  %v4884_v41 = vadd.f32 -1.0, %v3959_v47 }
 0x6ea   : > { %v4464_v2 = vsel %vm2516_vm1, %v4432_v59, %v4940_v13  ;;  %v4370_v49 = vmul.f32 2.0, %v4326_v54  ;;  %v4465_v39 = vsel %vm2516_vm1, %v4433_v58, %v4941_v34  ;;  %v4371_v17 = vmul.f32 2.0, %v4329_v12 }
 0x6eb   : > { %4497 = vst.msk [vmem:[%s8984_s21 + $0xb8] sm:$0xff] %vm4473_vm4, %v4464_v2  ;;  %4498 = vst.msk [vmem:[%s8984_s21 + $0xc0] sm:$0xff] %vm4473_vm4, %v4465_v39  ;;  %v4438_v29 = vsel %vm2163_vm0, %v4818_v0, %v4882_v43  ;;  %v4439_v13 = vsel %vm2163_vm0, %v4819_v52, %v4883_v26  ;;  %v4820_v53 = vadd.f32 -1.0, %v3542_v10 }
 0x6ec   : > { %v4942_v28 = vadd.f32 -1.0, %v4370_v49  ;;  %v4943_v31 = vadd.f32 -1.0, %v4371_v17 }
 0x6ed   : > { %v4332_v45 = vpop.xlane.xlu0 %4331  ;;  %v4335_v48 = vpop.xlane.xlu1 %4334  ;;  %v4440_v34 = vsel %vm2163_vm0, %v4820_v53, %v4884_v41 }
 0x6ee   : > { %v4466_v33 = vsel %vm2516_vm1, %v4434_v63, %v4942_v28  ;;  %v4372_v5 = vmul.f32 2.0, %v4332_v45  ;;  %v4467_v7 = vsel %vm2516_vm1, %v4435_v44, %v4943_v31  ;;  %v4373_v27 = vmul.f32 2.0, %v4335_v48 }
 0x6ef   : > { %4499 = vst.msk [vmem:[%s8984_s21 + $0xc8] sm:$0xff] %vm4473_vm4, %v4466_v33  ;;  %4500 = vst.msk [vmem:[%s8984_s21 + $0xd0] sm:$0xff] %vm4473_vm4, %v4467_v7 }
 0x6f0   : > { %v4944_v23 = vadd.f32 -1.0, %v4372_v5  ;;  %v4945_v19 = vadd.f32 -1.0, %v4373_v27 }
 0x6f1   : > { %v4338_v56 = vpop.xlane.xlu0 %4337  ;;  %v4341_v25 = vpop.xlane.xlu1 %4340 }
 0x6f2   : > { %v4468_v22 = vsel %vm2516_vm1, %v4436_v11, %v4944_v23  ;;  %v4374_v51 = vmul.f32 2.0, %v4338_v56  ;;  %v4469_v57 = vsel %vm2516_vm1, %v4437_v55, %v4945_v19  ;;  %v4375_v37 = vmul.f32 2.0, %v4341_v25 }
 0x6f3   : > { %4501 = vst.msk [vmem:[%s8984_s21 + $0xd8] sm:$0xff] %vm4473_vm4, %v4468_v22  ;;  %4502 = vst.msk [vmem:[%s8984_s21 + $0xe0] sm:$0xff] %vm4473_vm4, %v4469_v57 }
 0x6f4   : > { %v4946_v30 = vadd.f32 -1.0, %v4374_v51  ;;  %v4947_v16 = vadd.f32 -1.0, %v4375_v37 }
 0x6f5   : > { %v4344_v36 = vpop.xlane.xlu0 %4343 }
 0x6f6   : > { %v4470_v59 = vsel %vm2516_vm1, %v4438_v29, %v4946_v30  ;;  %v4376_v62 = vmul.f32 2.0, %v4344_v36  ;;  %v4471_v35 = vsel %vm2516_vm1, %v4439_v13, %v4947_v16 }
 0x6f7   : > { %4503 = vst.msk [vmem:[%s8984_s21 + $0xe8] sm:$0xff] %vm4473_vm4, %v4470_v59  ;;  %4504 = vst.msk [vmem:[%s8984_s21 + $0xf0] sm:$0xff] %vm4473_vm4, %v4471_v35 }
 0x6f8   : > { %v4948_v54 = vadd.f32 -1.0, %v4376_v62 }
 0x6fa   : > { %v4472_v58 = vsel %vm2516_vm1, %v4440_v34, %v4948_v54 }
 0x6fb   : > { %4505 = vst.msk [vmem:[%s8984_s21 + $0xf8] sm:$0xff] %vm4473_vm4, %v4472_v58 }
 0x6fc PF: > { %s16_s24 = sadd.s32 1, %s5384_s24   ;;  %s9822_s18 = smov %s5364_s19 }
 0x6fd   : > { %p13_p12 = scmp.ge.s32.totalorder %s16_s24, 6   ;;  %s9823_s19 = smov %s5471_s6 }
 0x6fe   : > { %s9824_s20 = smov %s5376_s22  ;;  %s9825_s21 = smov %s5380_s23 }
 0x6ff   : > { %s9826_s22 = smov %s9829_s25  ;;  %s9827_s23 = smov %s9833_s26 }
 0x700   :  { %15 = sbr.rel (!%p13_p12) target bundleno = 4 (0x4), region = 137 }

</bundles_post_ra>
